<compile_context>
chip_gen: v7x
topology: tpu7x:2x2x1
jax: 0.10.0
libtpu: 0.0.40
codegen_flags: <defaults>
</compile_context>

<pallas_src>
import functools

import jax
import jax.numpy as jnp
import numpy as np
from jax import lax
from jax.experimental import pallas as pl
from jax.experimental.pallas import tpu as pltpu

_EPS = 1e-5


def _shift_lanes(x, s):
    """out[..., p] = x[..., p + s] if 0 <= p+s < n else 0  (static integer s)."""
    n = x.shape[-1]
    if s == 0:
        return x
    z = jnp.zeros(x.shape[:-1] + (abs(s),), x.dtype)
    if s > 0:
        return jnp.concatenate([x[..., s:], z], axis=-1)
    return jnp.concatenate([z, x[..., :n + s]], axis=-1)


# ----------------------------------------------------------------------------
# Fused kernel: conv3x3(+BN+ReLU) both heads -> conv3x3 (flow) -> conv1x1
# (mask, this u-tile) -> chunked softmax -> convex upsample.  All lane-dense.
# ----------------------------------------------------------------------------
def _fused_upsampler_kernel(
        patches_ref,   # (1, 9*Cin, HW)  bf16  im2col'ed input (wrapper-built)
        wcat_ref,      # (Cm+Cf, 9*Cin)  bf16  [mask rows | flow rows], BN scale folded
        shift_ref,     # (Cm+Cf, 1)      f32   folded BN shift
        w2_ref,        # (Cf, 9*Cf)      f32   flow 2nd conv, 8.0 folded
        b2_ref,        # (Cf, 1)         f32   8*b2
        wm2_ref,       # (9*CU, Cm)      bf16  mask 1x1 conv block (tile-permuted), 0.25 folded
        bm2_ref,       # (9*CU, 1)       f32   0.25*bm2 block (tile-permuted)
        o_ref,         # (1, Cf, CU, HW) f32   out[n, c, u, p]
        mask_sc,       # (9*CU, HW)      f32   scratch: mask logits for this tile
        *, H, W, Cm, Cf, CU, CHUNK):
    HW = H * W

    # ---- first conv3x3 (both heads), BN(eval) folded, ReLU; bf16 MXU/f32 acc ----
    cat = jnp.dot(wcat_ref[...], patches_ref[0],
                  preferred_element_type=jnp.float32)            # (Cm+Cf, HW)
    cat = jnp.maximum(cat + shift_ref[...], 0.0)
    hm_bf = cat[:Cm, :].astype(jnp.bfloat16)                     # mask hidden
    h1 = cat[Cm:Cm + Cf, :]                                      # flow hidden (f32)

    # ---- lane masks for the W (column) boundary of the 3x3 taps ----
    ww = lax.broadcasted_iota(jnp.int32, (1, HW), 1) % W
    left_ok = ww >= 1
    right_ok = ww < (W - 1)

    def taps9(img):
        """9 zero-padded 3x3 neighbour taps of img (C, HW); lane shifts only."""
        taps = []
        for dy in range(3):
            for dx in range(3):
                t = _shift_lanes(img, (dy - 1) * W + (dx - 1))
                if dx == 0:
                    t = jnp.where(left_ok, t, 0.0)
                elif dx == 2:
                    t = jnp.where(right_ok, t, 0.0)
                taps.append(t)
        return taps

    # ---- flow head second conv3x3 (Cf->Cf) as transposed matmul (dense lanes).
    # 8.0 and bias are folded into w2/b2; kept f32 (trivial MXU time, keeps
    # flow precision; bf16 buys nothing on an 18x2 weight).
    colf = jnp.concatenate(taps9(h1), axis=0)                    # (9*Cf, HW)
    flow8 = jnp.dot(w2_ref[...], colf,
                    preferred_element_type=jnp.float32) + b2_ref[...]   # (Cf, HW)

    # ---- 9 unfold taps of (8*flow), each (Cf, HW) ----
    ftaps = taps9(flow8)

    # ---- mask head 1x1 conv for this u-tile: (9*CU, Cm) @ (Cm, HW), bf16 MXU ----
    mask_sc[...] = (jnp.dot(wm2_ref[...], hm_bf,
                            preferred_element_type=jnp.float32) + bm2_ref[...])

    # ---- chunked 9-tap softmax + convex combine; dense (CHUNK, HW) stores ----
    @pl.loop(0, CU // CHUNK)
    def _(cc):
        r0 = pl.multiple_of(cc * CHUNK, CHUNK)
        m = mask_sc[pl.ds(r0, CHUNK), :]
        for k in range(1, 9):
            m = jnp.maximum(m, mask_sc[pl.ds(k * CU + r0, CHUNK), :])
        denom = jnp.zeros((CHUNK, HW), jnp.float32)
        accs = [jnp.zeros((CHUNK, HW), jnp.float32) for _ in range(Cf)]
        for k in range(9):
            e = jnp.exp(mask_sc[pl.ds(k * CU + r0, CHUNK), :] - m)
            denom = denom + e
            for c in range(Cf):
                # (1, HW) flow tap broadcasts along sublanes (stride-0): cheap.
                accs[c] = accs[c] + e * ftaps[k][c:c + 1, :]
        inv = pl.reciprocal(denom, approx=True)      # EUP slot; denom >= 1
        for c in range(Cf):
            o_ref[0, c, pl.ds(r0, CHUNK), :] = accs[c] * inv


# ----------------------------------------------------------------------------
# Wrapper: weight folding (one time, tiny) + single fused pallas_call.
# ----------------------------------------------------------------------------
def _conv3x3_rows(w_oihw):
    # OIHW (Co, Ci, 3, 3) -> (Co, 9*Ci); column index = (dy*3+dx)*Ci + ci
    co, ci, kh, kw = w_oihw.shape
    return jnp.transpose(w_oihw, (0, 2, 3, 1)).reshape(co, kh * kw * ci)


def _vmem_limit_bytes():
    # Generation-aware scoped-VMEM budget (v5e/v6e: 128 MiB phys; v7x: 64 MiB).
    try:
        cap = int(pltpu.get_tpu_info().vmem_capacity_bytes)
        return max(32 * 1024 * 1024, min((cap * 3) // 4, 100 * 1024 * 1024))
    except Exception:
        return 48 * 1024 * 1024


def upsampler_forward(x_nchw, p, up):
    N, Cin, H, W = x_nchw.shape
    Cf = p["w1"].shape[0]            # flow channels (out_dim)
    Cm = p["wm1"].shape[0]           # mask hidden channels (= up*up)
    up2 = up * up
    HW = H * W

    vmem_budget = _vmem_limit_bytes()

    # u-tile size: bounds the per-step mask block (9*CU, HW) for production
    # sizes and keeps both v7x cores busy (every grid step is independent).
    if up2 <= 128:
        CU = up2
    else:
        assert up2 % 128 == 0, "up_scale**2 must be a multiple of 128 to tile"
        CU = 128
        while CU > 32 and 9 * CU * HW * 4 > vmem_budget // 8:
            CU //= 2
    T = up2 // CU
    CHUNK = 32 if CU % 32 == 0 else CU

    # ---- first-conv im2col in the XLA wrapper (tiny; review option (b)) ----
    xpad = jnp.pad(x_nchw, ((0, 0), (0, 0), (1, 1), (1, 1)))
    patchesT = jnp.concatenate(
        [xpad[:, :, dy:dy + H, dx:dx + W].reshape(N, Cin, HW)
         for dy in range(3) for dx in range(3)], axis=1)         # (N, 9*Cin, HW)
    patchesT = patchesT.astype(jnp.bfloat16)

    # ---- BN(eval) with real running stats folded into weights / shift ----
    scale_f = p["g1"] / jnp.sqrt(p["rv1"] + _EPS)
    scale_m = p["gm"] / jnp.sqrt(p["rvm"] + _EPS)
    shift_f = scale_f * (p["b1"] - p["rm1"]) + p["be1"]
    shift_m = scale_m * (p["bm1"] - p["rmm"]) + p["bem"]

    # Concatenated first conv (mask rows first: sublane-aligned 256, flow last).
    wcat = jnp.concatenate([_conv3x3_rows(p["wm1"]) * scale_m[:, None],
                            _conv3x3_rows(p["w1"]) * scale_f[:, None]],
                           axis=0).astype(jnp.bfloat16)          # (Cm+Cf, 9*Cin)
    shift_cat = jnp.concatenate([shift_m, shift_f])[:, None]     # (Cm+Cf, 1) f32

    # Flow second conv with the 8.0 folded in.
    w2t = 8.0 * _conv3x3_rows(p["w2"])                           # (Cf, 9*Cf) f32
    b2c = (8.0 * p["b2"])[:, None]                               # (Cf, 1)    f32

    # Mask 1x1 conv with the 0.25 folded in; rows permuted to (tile, tap, u_local)
    # so each u-tile grid step reads one contiguous (9*CU, Cm) block.
    wm2 = (0.25 * p["wm2"][:, :, 0, 0]).reshape(9, T, CU, Cm)
    wm2p = jnp.transpose(wm2, (1, 0, 2, 3)).reshape(9 * up2, Cm).astype(jnp.bfloat16)
    bm2 = (0.25 * p["bm2"]).reshape(9, T, CU)
    bm2p = jnp.transpose(bm2, (1, 0, 2)).reshape(9 * up2, 1)     # f32

    kernel = functools.partial(_fused_upsampler_kernel,
                               H=H, W=W, Cm=Cm, Cf=Cf, CU=CU, CHUNK=CHUNK)

    flops = int(N * (T * 2 * (Cm + Cf) * 9 * Cin * HW
                     + T * 2 * Cf * (9 * Cf) * HW
                     + 2 * (9 * up2) * Cm * HW
                     + HW * up2 * (9 * (2 + 2 * Cf) + 2)))
    transcendentals = int(N * HW * up2 * 10)
    bytes_accessed = int(2 * N * 9 * Cin * HW
                         + 2 * N * 9 * up2 * Cm
                         + 4 * N * Cf * up2 * HW
                         + 2 * (Cm + Cf) * 9 * Cin
                         + 4 * (Cm + Cf + 9 * up2 + Cf * 9 * Cf + Cf))

    out = pl.pallas_call(
        kernel,
        out_shape=jax.ShapeDtypeStruct((N, Cf, up2, HW), jnp.float32),
        grid=(N, T),
        in_specs=[
            pl.BlockSpec((1, 9 * Cin, HW), lambda n, t: (n, 0, 0)),
            pl.BlockSpec((Cm + Cf, 9 * Cin), lambda n, t: (0, 0)),
            pl.BlockSpec((Cm + Cf, 1), lambda n, t: (0, 0)),
            pl.BlockSpec((Cf, 9 * Cf), lambda n, t: (0, 0)),
            pl.BlockSpec((Cf, 1), lambda n, t: (0, 0)),
            pl.BlockSpec((9 * CU, Cm), lambda n, t: (t, 0)),
            pl.BlockSpec((9 * CU, 1), lambda n, t: (t, 0)),
        ],
        out_specs=pl.BlockSpec((1, Cf, CU, HW), lambda n, t: (n, 0, t, 0)),
        scratch_shapes=[pltpu.VMEM((9 * CU, HW), jnp.float32)],
        compiler_params=pltpu.CompilerParams(
            dimension_semantics=("parallel", "parallel"),
            vmem_limit_bytes=vmem_budget),
        cost_estimate=pl.CostEstimate(flops=flops,
                                      transcendentals=transcendentals,
                                      bytes_accessed=bytes_accessed),
    )(patchesT, wcat, shift_cat, w2t, b2c, wm2p, bm2p)

    # out[n, c, uh*up+uw, h*W+w] -> (N, C, up*H, up*W)
    out = out.reshape(N, Cf, up, up, H, W)
    out = jnp.transpose(out, (0, 1, 4, 2, 5, 3))
    return out.reshape(N, Cf, up * H, up * W)


# ----------------------------------------------------------------------------
# Pure-JAX reference (mirrors the PyTorch forward in NCHW, eval-mode BN)
# ----------------------------------------------------------------------------
def _ref_conv(x, w, b, pad):
    out = jax.lax.conv_general_dilated(
        x, w, (1, 1), pad, dimension_numbers=("NCHW", "OIHW", "NCHW"),
        precision=jax.lax.Precision.HIGHEST)
    return out + b[None, :, None, None]


def _ref_bn(x, g, beta, mean, var):
    inv = g / jnp.sqrt(var + _EPS)
    return (x - mean[None, :, None, None]) * inv[None, :, None, None] \
        + beta[None, :, None, None]


def ref_forward(x, p, up):
    flow = _ref_conv(x, p["w1"], p["b1"], [(1, 1), (1, 1)])
    flow = jnp.maximum(_ref_bn(flow, p["g1"], p["be1"], p["rm1"], p["rv1"]), 0.0)
    flow = _ref_conv(flow, p["w2"], p["b2"], [(1, 1), (1, 1)])

    mask = _ref_conv(x, p["wm1"], p["bm1"], [(1, 1), (1, 1)])
    mask = jnp.maximum(_ref_bn(mask, p["gm"], p["bem"], p["rmm"], p["rvm"]), 0.0)
    mask = _ref_conv(mask, p["wm2"], p["bm2"], [(0, 0), (0, 0)]) * 0.25

    N, C, H, W = flow.shape
    mask = mask.reshape(N, 1, 9, up, up, H, W)
    mask = jax.nn.softmax(mask, axis=2)

    fp = jnp.pad(8.0 * flow, ((0, 0), (0, 0), (1, 1), (1, 1)))
    patches = jnp.stack([fp[:, :, dy:dy + H, dx:dx + W]
                         for dy in range(3) for dx in range(3)], axis=2)
    up_flow = patches.reshape(N, C, 9, 1, 1, H, W)
    up_flow = jnp.sum(mask * up_flow, axis=2)                    # (N,C,up,up,H,W)
    up_flow = jnp.transpose(up_flow, (0, 1, 4, 2, 5, 3))
    return up_flow.reshape(N, C, up * H, up * W)


# ----------------------------------------------------------------------------
# Main
# ----------------------------------------------------------------------------
if __name__ == "__main__":
    N, inp_dim, out_dim, H, W, up = 2, 4, 2, 16, 16, 16
    up2 = up * up

    keys = jax.random.split(jax.random.PRNGKey(0), 20)
    f32 = jnp.float32
    p = {
        # flow head (conv3x3 -> BN -> ReLU -> conv3x3)
        "w1": 0.1 * jax.random.normal(keys[0], (out_dim, inp_dim, 3, 3), f32),
        "b1": 0.1 * jax.random.normal(keys[1], (out_dim,), f32),
        "g1": 1.0 + 0.1 * jax.random.normal(keys[2], (out_dim,), f32),
        "be1": 0.1 * jax.random.normal(keys[3], (out_dim,), f32),
        "rm1": 0.1 * jax.random.normal(keys[13], (out_dim,), f32),
        "rv1": 0.5 + jax.random.uniform(keys[14], (out_dim,), f32),
        "w2": 0.1 * jax.random.normal(keys[4], (out_dim, out_dim, 3, 3), f32),
        "b2": 0.1 * jax.random.normal(keys[5], (out_dim,), f32),
        # mask head (conv3x3 -> BN -> ReLU -> conv1x1)
        "wm1": 0.1 * jax.random.normal(keys[6], (up2, inp_dim, 3, 3), f32),
        "bm1": 0.1 * jax.random.normal(keys[7], (up2,), f32),
        "gm": 1.0 + 0.1 * jax.random.normal(keys[8], (up2,), f32),
        "bem": 0.1 * jax.random.normal(keys[9], (up2,), f32),
        "rmm": 0.1 * jax.random.normal(keys[15], (up2,), f32),
        "rvm": 0.5 + jax.random.uniform(keys[16], (up2,), f32),
        "wm2": 0.05 * jax.random.normal(keys[10], (up2 * 9, up2, 1, 1), f32),
        "bm2": 0.1 * jax.random.normal(keys[11], (up2 * 9,), f32),
    }

    img_f = jax.random.normal(keys[12], (N, inp_dim, H, W), f32)   # NCHW like PyTorch

    out = jax.block_until_ready(upsampler_forward(img_f, p, up))
    assert out.shape == (N, out_dim, up * H, up * W), out.shape

    ref = jax.block_until_ready(ref_forward(img_f, p, up))
    np.testing.assert_allclose(np.asarray(out), np.asarray(ref), rtol=2e-2, atol=2e-2)

    print("KERNEL_OK")
</pallas_src>

<mosaic_0001>
module attributes {stable_mosaic.version = 11 : i64} {
  func.func @_fused_upsampler_kernel(%arg0: i32, %arg1: i32, %arg2: memref<1x36x256xbf16, #tpu.memory_space<vmem>>, %arg3: memref<258x36xbf16, #tpu.memory_space<vmem>>, %arg4: memref<258x1xf32, #tpu.memory_space<vmem>>, %arg5: memref<2x18xf32, #tpu.memory_space<vmem>>, %arg6: memref<2x1xf32, #tpu.memory_space<vmem>>, %arg7: memref<1152x256xbf16, #tpu.memory_space<vmem>>, %arg8: memref<1152x1xf32, #tpu.memory_space<vmem>>, %arg9: memref<1x2x128x256xf32, #tpu.memory_space<vmem>>, %arg10: memref<1152x256xf32, #tpu.memory_space<vmem>>) attributes {dimension_semantics = [#tpu.dimension_semantics<parallel>, #tpu.dimension_semantics<parallel>], iteration_bounds = array<i64: 2, 2>, scalar_prefetch = 0 : i64, scratch_operands = 1 : i64, tpu.core_type = #tpu.core_type<tc>, window_params = [{transform_indices = @transform_0, window_bounds = array<i64: 1, 36, 256>}, {pipeline_mode = #tpu.pipeline_mode<synchronous>, transform_indices = @transform_1, window_bounds = array<i64: 258, 36>}, {pipeline_mode = #tpu.pipeline_mode<synchronous>, transform_indices = @transform_2, window_bounds = array<i64: 258, 1>}, {pipeline_mode = #tpu.pipeline_mode<synchronous>, transform_indices = @transform_3, window_bounds = array<i64: 2, 18>}, {pipeline_mode = #tpu.pipeline_mode<synchronous>, transform_indices = @transform_4, window_bounds = array<i64: 2, 1>}, {transform_indices = @transform_5, window_bounds = array<i64: 1152, 256>}, {transform_indices = @transform_6, window_bounds = array<i64: 1152, 1>}, {transform_indices = @transform_7, window_bounds = array<i64: 1, 2, 128, 256>}]} {
    %c0 = arith.constant 0 : index
    %c0_0 = arith.constant 0 : index
    %0 = vector.load %arg3[%c0, %c0_0] : memref<258x36xbf16, #tpu.memory_space<vmem>>, vector<258x36xbf16>
    %c0_1 = arith.constant 0 : index
    %c0_2 = arith.constant 0 : index
    %c0_3 = arith.constant 0 : index
    %1 = vector.load %arg2[%c0_1, %c0_2, %c0_3] : memref<1x36x256xbf16, #tpu.memory_space<vmem>>, vector<1x36x256xbf16>
    %2 = vector.shape_cast %1 : vector<1x36x256xbf16> to vector<36x256xbf16>
    %cst = arith.constant dense<0.000000e+00> : vector<258x256xf32>
    %3 = tpu.matmul %0, %2, %cst {dimension_numbers = #tpu.dot_dimension_numbers<[1], [0], [0], [1], [0, 0, 1, 1], [], []>} : vector<258x36xbf16>, vector<36x256xbf16>, vector<258x256xf32> -> vector<258x256xf32>
    %c0_4 = arith.constant 0 : index
    %c0_5 = arith.constant 0 : index
    %4 = vector.load %arg4[%c0_4, %c0_5] : memref<258x1xf32, #tpu.memory_space<vmem>>, vector<258x1xf32>
    %5 = vector.broadcast %4 : vector<258x1xf32> to vector<258x256xf32>
    %6 = arith.addf %3, %5 : vector<258x256xf32>
    %cst_6 = arith.constant 0.000000e+00 : f32
    %7 = vector.broadcast %cst_6 : f32 to vector<258x256xf32>
    %8 = arith.maximumf %6, %7 : vector<258x256xf32>
    %9 = vector.extract_strided_slice %8 {offsets = [0, 0], sizes = [256, 256], strides = [1, 1]} : vector<258x256xf32> to vector<256x256xf32>
    %10 = arith.truncf %9 : vector<256x256xf32> to vector<256x256xbf16>
    %11 = vector.extract_strided_slice %8 {offsets = [256, 0], sizes = [2, 256], strides = [1, 1]} : vector<258x256xf32> to vector<2x256xf32>
    %12 = tpu.iota {dimensions = array<i32: 1>} : vector<1x256xi32>
    %c16_i32 = arith.constant 16 : i32
    %c0_i32 = arith.constant 0 : i32
    %13 = arith.cmpi eq, %c16_i32, %c0_i32 : i32
    %c1_i32 = arith.constant 1 : i32
    %14 = arith.select %13, %c1_i32, %c16_i32 : i32
    %15 = vector.broadcast %14 : i32 to vector<1x256xi32>
    %16 = arith.remsi %12, %15 : vector<1x256xi32>
    %c0_i32_7 = arith.constant 0 : i32
    %17 = vector.broadcast %c0_i32_7 : i32 to vector<1x256xi32>
    %18 = arith.cmpi ne, %16, %17 : vector<1x256xi32>
    %c0_i32_8 = arith.constant 0 : i32
    %19 = vector.broadcast %c0_i32_8 : i32 to vector<1x256xi32>
    %20 = arith.cmpi slt, %16, %19 : vector<1x256xi32>
    %c0_i32_9 = arith.constant 0 : i32
    %21 = arith.cmpi slt, %14, %c0_i32_9 : i32
    %22 = vector.broadcast %21 : i1 to vector<1x256xi1>
    %23 = vector.broadcast %22 : vector<1x256xi1> to vector<1x256xi1>
    %24 = arith.xori %20, %23 : vector<1x256xi1>
    %25 = arith.andi %24, %18 : vector<1x256xi1>
    %26 = vector.broadcast %14 : i32 to vector<1x256xi32>
    %27 = arith.addi %16, %26 : vector<1x256xi32>
    %28 = arith.select %25, %27, %16 : vector<1x256xi1>, vector<1x256xi32>
    %c1_i32_10 = arith.constant 1 : i32
    %29 = vector.broadcast %c1_i32_10 : i32 to vector<1x256xi32>
    %30 = arith.cmpi sge, %28, %29 : vector<1x256xi32>
    %c15_i32 = arith.constant 15 : i32
    %31 = vector.broadcast %c15_i32 : i32 to vector<1x256xi32>
    %32 = arith.cmpi slt, %28, %31 : vector<1x256xi32>
    %cst_11 = arith.constant 0.000000e+00 : f32
    %33 = vector.broadcast %cst_11 : f32 to vector<2x17xf32>
    %34 = vector.extract_strided_slice %11 {offsets = [0, 0], sizes = [2, 239], strides = [1, 1]} : vector<2x256xf32> to vector<2x239xf32>
    %35 = tpu.concatenate %33, %34 in 1 : vector<2x17xf32>, vector<2x239xf32> -> vector<2x256xf32>
    %cst_12 = arith.constant 0.000000e+00 : f32
    %36 = vector.shape_cast %30 : vector<1x256xi1> to vector<1x256xi1>
    %37 = vector.broadcast %36 : vector<1x256xi1> to vector<2x256xi1>
    %38 = vector.broadcast %cst_12 : f32 to vector<2x256xf32>
    %39 = arith.select %37, %35, %38 : vector<2x256xi1>, vector<2x256xf32>
    %cst_13 = arith.constant 0.000000e+00 : f32
    %40 = vector.broadcast %cst_13 : f32 to vector<2x16xf32>
    %41 = vector.extract_strided_slice %11 {offsets = [0, 0], sizes = [2, 240], strides = [1, 1]} : vector<2x256xf32> to vector<2x240xf32>
    %42 = tpu.concatenate %40, %41 in 1 : vector<2x16xf32>, vector<2x240xf32> -> vector<2x256xf32>
    %cst_14 = arith.constant 0.000000e+00 : f32
    %43 = vector.broadcast %cst_14 : f32 to vector<2x15xf32>
    %44 = vector.extract_strided_slice %11 {offsets = [0, 0], sizes = [2, 241], strides = [1, 1]} : vector<2x256xf32> to vector<2x241xf32>
    %45 = tpu.concatenate %43, %44 in 1 : vector<2x15xf32>, vector<2x241xf32> -> vector<2x256xf32>
    %cst_15 = arith.constant 0.000000e+00 : f32
    %46 = vector.shape_cast %32 : vector<1x256xi1> to vector<1x256xi1>
    %47 = vector.broadcast %46 : vector<1x256xi1> to vector<2x256xi1>
    %48 = vector.broadcast %cst_15 : f32 to vector<2x256xf32>
    %49 = arith.select %47, %45, %48 : vector<2x256xi1>, vector<2x256xf32>
    %cst_16 = arith.constant 0.000000e+00 : f32
    %50 = vector.broadcast %cst_16 : f32 to vector<2x1xf32>
    %51 = vector.extract_strided_slice %11 {offsets = [0, 0], sizes = [2, 255], strides = [1, 1]} : vector<2x256xf32> to vector<2x255xf32>
    %52 = tpu.concatenate %50, %51 in 1 : vector<2x1xf32>, vector<2x255xf32> -> vector<2x256xf32>
    %cst_17 = arith.constant 0.000000e+00 : f32
    %53 = vector.shape_cast %30 : vector<1x256xi1> to vector<1x256xi1>
    %54 = vector.broadcast %53 : vector<1x256xi1> to vector<2x256xi1>
    %55 = vector.broadcast %cst_17 : f32 to vector<2x256xf32>
    %56 = arith.select %54, %52, %55 : vector<2x256xi1>, vector<2x256xf32>
    %cst_18 = arith.constant 0.000000e+00 : f32
    %57 = vector.broadcast %cst_18 : f32 to vector<2x1xf32>
    %58 = vector.extract_strided_slice %11 {offsets = [0, 1], sizes = [2, 255], strides = [1, 1]} : vector<2x256xf32> to vector<2x255xf32>
    %59 = tpu.concatenate %58, %57 in 1 : vector<2x255xf32>, vector<2x1xf32> -> vector<2x256xf32>
    %cst_19 = arith.constant 0.000000e+00 : f32
    %60 = vector.shape_cast %32 : vector<1x256xi1> to vector<1x256xi1>
    %61 = vector.broadcast %60 : vector<1x256xi1> to vector<2x256xi1>
    %62 = vector.broadcast %cst_19 : f32 to vector<2x256xf32>
    %63 = arith.select %61, %59, %62 : vector<2x256xi1>, vector<2x256xf32>
    %cst_20 = arith.constant 0.000000e+00 : f32
    %64 = vector.broadcast %cst_20 : f32 to vector<2x15xf32>
    %65 = vector.extract_strided_slice %11 {offsets = [0, 15], sizes = [2, 241], strides = [1, 1]} : vector<2x256xf32> to vector<2x241xf32>
    %66 = tpu.concatenate %65, %64 in 1 : vector<2x241xf32>, vector<2x15xf32> -> vector<2x256xf32>
    %cst_21 = arith.constant 0.000000e+00 : f32
    %67 = vector.shape_cast %30 : vector<1x256xi1> to vector<1x256xi1>
    %68 = vector.broadcast %67 : vector<1x256xi1> to vector<2x256xi1>
    %69 = vector.broadcast %cst_21 : f32 to vector<2x256xf32>
    %70 = arith.select %68, %66, %69 : vector<2x256xi1>, vector<2x256xf32>
    %cst_22 = arith.constant 0.000000e+00 : f32
    %71 = vector.broadcast %cst_22 : f32 to vector<2x16xf32>
    %72 = vector.extract_strided_slice %11 {offsets = [0, 16], sizes = [2, 240], strides = [1, 1]} : vector<2x256xf32> to vector<2x240xf32>
    %73 = tpu.concatenate %72, %71 in 1 : vector<2x240xf32>, vector<2x16xf32> -> vector<2x256xf32>
    %cst_23 = arith.constant 0.000000e+00 : f32
    %74 = vector.broadcast %cst_23 : f32 to vector<2x17xf32>
    %75 = vector.extract_strided_slice %11 {offsets = [0, 17], sizes = [2, 239], strides = [1, 1]} : vector<2x256xf32> to vector<2x239xf32>
    %76 = tpu.concatenate %75, %74 in 1 : vector<2x239xf32>, vector<2x17xf32> -> vector<2x256xf32>
    %cst_24 = arith.constant 0.000000e+00 : f32
    %77 = vector.shape_cast %32 : vector<1x256xi1> to vector<1x256xi1>
    %78 = vector.broadcast %77 : vector<1x256xi1> to vector<2x256xi1>
    %79 = vector.broadcast %cst_24 : f32 to vector<2x256xf32>
    %80 = arith.select %78, %76, %79 : vector<2x256xi1>, vector<2x256xf32>
    %81 = tpu.concatenate %39, %42, %49, %56, %11, %63, %70, %73, %80 in 0 : vector<2x256xf32>, vector<2x256xf32>, vector<2x256xf32>, vector<2x256xf32>, vector<2x256xf32>, vector<2x256xf32>, vector<2x256xf32>, vector<2x256xf32>, vector<2x256xf32> -> vector<18x256xf32>
    %c0_25 = arith.constant 0 : index
    %c0_26 = arith.constant 0 : index
    %82 = vector.load %arg5[%c0_25, %c0_26] : memref<2x18xf32, #tpu.memory_space<vmem>>, vector<2x18xf32>
    %cst_27 = arith.constant dense<0.000000e+00> : vector<2x256xf32>
    %83 = tpu.matmul %82, %81, %cst_27 {dimension_numbers = #tpu.dot_dimension_numbers<[1], [0], [0], [1], [0, 0, 1, 1], [], []>} : vector<2x18xf32>, vector<18x256xf32>, vector<2x256xf32> -> vector<2x256xf32>
    %c0_28 = arith.constant 0 : index
    %c0_29 = arith.constant 0 : index
    %84 = vector.load %arg6[%c0_28, %c0_29] : memref<2x1xf32, #tpu.memory_space<vmem>>, vector<2x1xf32>
    %85 = vector.broadcast %84 : vector<2x1xf32> to vector<2x256xf32>
    %86 = arith.addf %83, %85 : vector<2x256xf32>
    %cst_30 = arith.constant 0.000000e+00 : f32
    %87 = vector.broadcast %cst_30 : f32 to vector<2x17xf32>
    %88 = vector.extract_strided_slice %86 {offsets = [0, 0], sizes = [2, 239], strides = [1, 1]} : vector<2x256xf32> to vector<2x239xf32>
    %89 = tpu.concatenate %87, %88 in 1 : vector<2x17xf32>, vector<2x239xf32> -> vector<2x256xf32>
    %cst_31 = arith.constant 0.000000e+00 : f32
    %90 = vector.shape_cast %30 : vector<1x256xi1> to vector<1x256xi1>
    %91 = vector.broadcast %90 : vector<1x256xi1> to vector<2x256xi1>
    %92 = vector.broadcast %cst_31 : f32 to vector<2x256xf32>
    %93 = arith.select %91, %89, %92 : vector<2x256xi1>, vector<2x256xf32>
    %cst_32 = arith.constant 0.000000e+00 : f32
    %94 = vector.broadcast %cst_32 : f32 to vector<2x16xf32>
    %95 = vector.extract_strided_slice %86 {offsets = [0, 0], sizes = [2, 240], strides = [1, 1]} : vector<2x256xf32> to vector<2x240xf32>
    %96 = tpu.concatenate %94, %95 in 1 : vector<2x16xf32>, vector<2x240xf32> -> vector<2x256xf32>
    %cst_33 = arith.constant 0.000000e+00 : f32
    %97 = vector.broadcast %cst_33 : f32 to vector<2x15xf32>
    %98 = vector.extract_strided_slice %86 {offsets = [0, 0], sizes = [2, 241], strides = [1, 1]} : vector<2x256xf32> to vector<2x241xf32>
    %99 = tpu.concatenate %97, %98 in 1 : vector<2x15xf32>, vector<2x241xf32> -> vector<2x256xf32>
    %cst_34 = arith.constant 0.000000e+00 : f32
    %100 = vector.shape_cast %32 : vector<1x256xi1> to vector<1x256xi1>
    %101 = vector.broadcast %100 : vector<1x256xi1> to vector<2x256xi1>
    %102 = vector.broadcast %cst_34 : f32 to vector<2x256xf32>
    %103 = arith.select %101, %99, %102 : vector<2x256xi1>, vector<2x256xf32>
    %cst_35 = arith.constant 0.000000e+00 : f32
    %104 = vector.broadcast %cst_35 : f32 to vector<2x1xf32>
    %105 = vector.extract_strided_slice %86 {offsets = [0, 0], sizes = [2, 255], strides = [1, 1]} : vector<2x256xf32> to vector<2x255xf32>
    %106 = tpu.concatenate %104, %105 in 1 : vector<2x1xf32>, vector<2x255xf32> -> vector<2x256xf32>
    %cst_36 = arith.constant 0.000000e+00 : f32
    %107 = vector.shape_cast %30 : vector<1x256xi1> to vector<1x256xi1>
    %108 = vector.broadcast %107 : vector<1x256xi1> to vector<2x256xi1>
    %109 = vector.broadcast %cst_36 : f32 to vector<2x256xf32>
    %110 = arith.select %108, %106, %109 : vector<2x256xi1>, vector<2x256xf32>
    %cst_37 = arith.constant 0.000000e+00 : f32
    %111 = vector.broadcast %cst_37 : f32 to vector<2x1xf32>
    %112 = vector.extract_strided_slice %86 {offsets = [0, 1], sizes = [2, 255], strides = [1, 1]} : vector<2x256xf32> to vector<2x255xf32>
    %113 = tpu.concatenate %112, %111 in 1 : vector<2x255xf32>, vector<2x1xf32> -> vector<2x256xf32>
    %cst_38 = arith.constant 0.000000e+00 : f32
    %114 = vector.shape_cast %32 : vector<1x256xi1> to vector<1x256xi1>
    %115 = vector.broadcast %114 : vector<1x256xi1> to vector<2x256xi1>
    %116 = vector.broadcast %cst_38 : f32 to vector<2x256xf32>
    %117 = arith.select %115, %113, %116 : vector<2x256xi1>, vector<2x256xf32>
    %cst_39 = arith.constant 0.000000e+00 : f32
    %118 = vector.broadcast %cst_39 : f32 to vector<2x15xf32>
    %119 = vector.extract_strided_slice %86 {offsets = [0, 15], sizes = [2, 241], strides = [1, 1]} : vector<2x256xf32> to vector<2x241xf32>
    %120 = tpu.concatenate %119, %118 in 1 : vector<2x241xf32>, vector<2x15xf32> -> vector<2x256xf32>
    %cst_40 = arith.constant 0.000000e+00 : f32
    %121 = vector.shape_cast %30 : vector<1x256xi1> to vector<1x256xi1>
    %122 = vector.broadcast %121 : vector<1x256xi1> to vector<2x256xi1>
    %123 = vector.broadcast %cst_40 : f32 to vector<2x256xf32>
    %124 = arith.select %122, %120, %123 : vector<2x256xi1>, vector<2x256xf32>
    %cst_41 = arith.constant 0.000000e+00 : f32
    %125 = vector.broadcast %cst_41 : f32 to vector<2x16xf32>
    %126 = vector.extract_strided_slice %86 {offsets = [0, 16], sizes = [2, 240], strides = [1, 1]} : vector<2x256xf32> to vector<2x240xf32>
    %127 = tpu.concatenate %126, %125 in 1 : vector<2x240xf32>, vector<2x16xf32> -> vector<2x256xf32>
    %cst_42 = arith.constant 0.000000e+00 : f32
    %128 = vector.broadcast %cst_42 : f32 to vector<2x17xf32>
    %129 = vector.extract_strided_slice %86 {offsets = [0, 17], sizes = [2, 239], strides = [1, 1]} : vector<2x256xf32> to vector<2x239xf32>
    %130 = tpu.concatenate %129, %128 in 1 : vector<2x239xf32>, vector<2x17xf32> -> vector<2x256xf32>
    %cst_43 = arith.constant 0.000000e+00 : f32
    %131 = vector.shape_cast %32 : vector<1x256xi1> to vector<1x256xi1>
    %132 = vector.broadcast %131 : vector<1x256xi1> to vector<2x256xi1>
    %133 = vector.broadcast %cst_43 : f32 to vector<2x256xf32>
    %134 = arith.select %132, %130, %133 : vector<2x256xi1>, vector<2x256xf32>
    %c0_44 = arith.constant 0 : index
    %c0_45 = arith.constant 0 : index
    %135 = vector.load %arg7[%c0_44, %c0_45] : memref<1152x256xbf16, #tpu.memory_space<vmem>>, vector<1152x256xbf16>
    %cst_46 = arith.constant dense<0.000000e+00> : vector<1152x256xf32>
    %136 = tpu.matmul %135, %10, %cst_46 {dimension_numbers = #tpu.dot_dimension_numbers<[1], [0], [0], [1], [0, 0, 1, 1], [], []>} : vector<1152x256xbf16>, vector<256x256xbf16>, vector<1152x256xf32> -> vector<1152x256xf32>
    %c0_47 = arith.constant 0 : index
    %c0_48 = arith.constant 0 : index
    %137 = vector.load %arg8[%c0_47, %c0_48] : memref<1152x1xf32, #tpu.memory_space<vmem>>, vector<1152x1xf32>
    %138 = vector.broadcast %137 : vector<1152x1xf32> to vector<1152x256xf32>
    %139 = arith.addf %136, %138 : vector<1152x256xf32>
    %c0_49 = arith.constant 0 : index
    %c0_50 = arith.constant 0 : index
    %140 = vector.load %arg10[%c0_49, %c0_50] : memref<1152x256xf32, #tpu.memory_space<vmem>>, vector<1152x256xf32>
    tpu.vector_store %arg10[%c0_49, %c0_50], %139 {strides = array<i32>} : memref<1152x256xf32, #tpu.memory_space<vmem>>, vector<1152x256xf32>,
    %c0_i32_51 = arith.constant 0 : i32
    %c4_i32 = arith.constant 4 : i32
    %141 = arith.addi %c0_i32_51, %c4_i32 : i32
    %c1_i32_52 = arith.constant 1 : i32
    scf.for %arg11 = %c0_i32_51 to %141 step %c1_i32_52  : i32 {
      %c1_i32_54 = arith.constant 1 : i32
      %142 = arith.muli %arg11, %c1_i32_54 : i32
      %c0_i32_55 = arith.constant 0 : i32
      %143 = arith.addi %c0_i32_55, %142 : i32
      %c32_i32 = arith.constant 32 : i32
      %144 = arith.muli %143, %c32_i32 : i32
      %145 = tpu.assume_multiple %144, 32 : i32
      %146 = arith.index_cast %145 : i32 to index
      %c0_56 = arith.constant 0 : index
      %147 = vector.load %arg10[%146, %c0_56] : memref<1152x256xf32, #tpu.memory_space<vmem>>, vector<32x256xf32>
      %c128_i32 = arith.constant 128 : i32
      %148 = arith.addi %c128_i32, %145 : i32
      %149 = arith.index_cast %148 : i32 to index
      %c0_57 = arith.constant 0 : index
      %150 = vector.load %arg10[%149, %c0_57] : memref<1152x256xf32, #tpu.memory_space<vmem>>, vector<32x256xf32>
      %151 = arith.maximumf %147, %150 : vector<32x256xf32>
      %c256_i32 = arith.constant 256 : i32
      %152 = arith.addi %c256_i32, %145 : i32
      %153 = arith.index_cast %152 : i32 to index
      %c0_58 = arith.constant 0 : index
      %154 = vector.load %arg10[%153, %c0_58] : memref<1152x256xf32, #tpu.memory_space<vmem>>, vector<32x256xf32>
      %155 = arith.maximumf %151, %154 : vector<32x256xf32>
      %c384_i32 = arith.constant 384 : i32
      %156 = arith.addi %c384_i32, %145 : i32
      %157 = arith.index_cast %156 : i32 to index
      %c0_59 = arith.constant 0 : index
      %158 = vector.load %arg10[%157, %c0_59] : memref<1152x256xf32, #tpu.memory_space<vmem>>, vector<32x256xf32>
      %159 = arith.maximumf %155, %158 : vector<32x256xf32>
      %c512_i32 = arith.constant 512 : i32
      %160 = arith.addi %c512_i32, %145 : i32
      %161 = arith.index_cast %160 : i32 to index
      %c0_60 = arith.constant 0 : index
      %162 = vector.load %arg10[%161, %c0_60] : memref<1152x256xf32, #tpu.memory_space<vmem>>, vector<32x256xf32>
      %163 = arith.maximumf %159, %162 : vector<32x256xf32>
      %c640_i32 = arith.constant 640 : i32
      %164 = arith.addi %c640_i32, %145 : i32
      %165 = arith.index_cast %164 : i32 to index
      %c0_61 = arith.constant 0 : index
      %166 = vector.load %arg10[%165, %c0_61] : memref<1152x256xf32, #tpu.memory_space<vmem>>, vector<32x256xf32>
      %167 = arith.maximumf %163, %166 : vector<32x256xf32>
      %c768_i32 = arith.constant 768 : i32
      %168 = arith.addi %c768_i32, %145 : i32
      %169 = arith.index_cast %168 : i32 to index
      %c0_62 = arith.constant 0 : index
      %170 = vector.load %arg10[%169, %c0_62] : memref<1152x256xf32, #tpu.memory_space<vmem>>, vector<32x256xf32>
      %171 = arith.maximumf %167, %170 : vector<32x256xf32>
      %c896_i32 = arith.constant 896 : i32
      %172 = arith.addi %c896_i32, %145 : i32
      %173 = arith.index_cast %172 : i32 to index
      %c0_63 = arith.constant 0 : index
      %174 = vector.load %arg10[%173, %c0_63] : memref<1152x256xf32, #tpu.memory_space<vmem>>, vector<32x256xf32>
      %175 = arith.maximumf %171, %174 : vector<32x256xf32>
      %c1024_i32 = arith.constant 1024 : i32
      %176 = arith.addi %c1024_i32, %145 : i32
      %177 = arith.index_cast %176 : i32 to index
      %c0_64 = arith.constant 0 : index
      %178 = vector.load %arg10[%177, %c0_64] : memref<1152x256xf32, #tpu.memory_space<vmem>>, vector<32x256xf32>
      %179 = arith.maximumf %175, %178 : vector<32x256xf32>
      %cst_65 = arith.constant 0.000000e+00 : f32
      %180 = vector.broadcast %cst_65 : f32 to vector<32x256xf32>
      %cst_66 = arith.constant 0.000000e+00 : f32
      %181 = vector.broadcast %cst_66 : f32 to vector<32x256xf32>
      %cst_67 = arith.constant 0.000000e+00 : f32
      %182 = vector.broadcast %cst_67 : f32 to vector<32x256xf32>
      %c0_i32_68 = arith.constant 0 : i32
      %183 = arith.addi %c0_i32_68, %145 : i32
      %184 = arith.index_cast %183 : i32 to index
      %c0_69 = arith.constant 0 : index
      %185 = vector.load %arg10[%184, %c0_69] : memref<1152x256xf32, #tpu.memory_space<vmem>>, vector<32x256xf32>
      %186 = arith.subf %185, %179 : vector<32x256xf32>
      %187 = math.exp %186 : vector<32x256xf32>
      %188 = arith.addf %180, %187 : vector<32x256xf32>
      %189 = vector.extract_strided_slice %93 {offsets = [0, 0], sizes = [1, 256], strides = [1, 1]} : vector<2x256xf32> to vector<1x256xf32>
      %190 = vector.broadcast %189 : vector<1x256xf32> to vector<32x256xf32>
      %191 = arith.mulf %187, %190 : vector<32x256xf32>
      %192 = arith.addf %181, %191 : vector<32x256xf32>
      %193 = vector.extract_strided_slice %93 {offsets = [1, 0], sizes = [1, 256], strides = [1, 1]} : vector<2x256xf32> to vector<1x256xf32>
      %194 = vector.broadcast %193 : vector<1x256xf32> to vector<32x256xf32>
      %195 = arith.mulf %187, %194 : vector<32x256xf32>
      %196 = arith.addf %182, %195 : vector<32x256xf32>
      %c128_i32_70 = arith.constant 128 : i32
      %197 = arith.addi %c128_i32_70, %145 : i32
      %198 = arith.index_cast %197 : i32 to index
      %c0_71 = arith.constant 0 : index
      %199 = vector.load %arg10[%198, %c0_71] : memref<1152x256xf32, #tpu.memory_space<vmem>>, vector<32x256xf32>
      %200 = arith.subf %199, %179 : vector<32x256xf32>
      %201 = math.exp %200 : vector<32x256xf32>
      %202 = arith.addf %188, %201 : vector<32x256xf32>
      %203 = vector.extract_strided_slice %96 {offsets = [0, 0], sizes = [1, 256], strides = [1, 1]} : vector<2x256xf32> to vector<1x256xf32>
      %204 = vector.broadcast %203 : vector<1x256xf32> to vector<32x256xf32>
      %205 = arith.mulf %201, %204 : vector<32x256xf32>
      %206 = arith.addf %192, %205 : vector<32x256xf32>
      %207 = vector.extract_strided_slice %96 {offsets = [1, 0], sizes = [1, 256], strides = [1, 1]} : vector<2x256xf32> to vector<1x256xf32>
      %208 = vector.broadcast %207 : vector<1x256xf32> to vector<32x256xf32>
      %209 = arith.mulf %201, %208 : vector<32x256xf32>
      %210 = arith.addf %196, %209 : vector<32x256xf32>
      %c256_i32_72 = arith.constant 256 : i32
      %211 = arith.addi %c256_i32_72, %145 : i32
      %212 = arith.index_cast %211 : i32 to index
      %c0_73 = arith.constant 0 : index
      %213 = vector.load %arg10[%212, %c0_73] : memref<1152x256xf32, #tpu.memory_space<vmem>>, vector<32x256xf32>
      %214 = arith.subf %213, %179 : vector<32x256xf32>
      %215 = math.exp %214 : vector<32x256xf32>
      %216 = arith.addf %202, %215 : vector<32x256xf32>
      %217 = vector.extract_strided_slice %103 {offsets = [0, 0], sizes = [1, 256], strides = [1, 1]} : vector<2x256xf32> to vector<1x256xf32>
      %218 = vector.broadcast %217 : vector<1x256xf32> to vector<32x256xf32>
      %219 = arith.mulf %215, %218 : vector<32x256xf32>
      %220 = arith.addf %206, %219 : vector<32x256xf32>
      %221 = vector.extract_strided_slice %103 {offsets = [1, 0], sizes = [1, 256], strides = [1, 1]} : vector<2x256xf32> to vector<1x256xf32>
      %222 = vector.broadcast %221 : vector<1x256xf32> to vector<32x256xf32>
      %223 = arith.mulf %215, %222 : vector<32x256xf32>
      %224 = arith.addf %210, %223 : vector<32x256xf32>
      %c384_i32_74 = arith.constant 384 : i32
      %225 = arith.addi %c384_i32_74, %145 : i32
      %226 = arith.index_cast %225 : i32 to index
      %c0_75 = arith.constant 0 : index
      %227 = vector.load %arg10[%226, %c0_75] : memref<1152x256xf32, #tpu.memory_space<vmem>>, vector<32x256xf32>
      %228 = arith.subf %227, %179 : vector<32x256xf32>
      %229 = math.exp %228 : vector<32x256xf32>
      %230 = arith.addf %216, %229 : vector<32x256xf32>
      %231 = vector.extract_strided_slice %110 {offsets = [0, 0], sizes = [1, 256], strides = [1, 1]} : vector<2x256xf32> to vector<1x256xf32>
      %232 = vector.broadcast %231 : vector<1x256xf32> to vector<32x256xf32>
      %233 = arith.mulf %229, %232 : vector<32x256xf32>
      %234 = arith.addf %220, %233 : vector<32x256xf32>
      %235 = vector.extract_strided_slice %110 {offsets = [1, 0], sizes = [1, 256], strides = [1, 1]} : vector<2x256xf32> to vector<1x256xf32>
      %236 = vector.broadcast %235 : vector<1x256xf32> to vector<32x256xf32>
      %237 = arith.mulf %229, %236 : vector<32x256xf32>
      %238 = arith.addf %224, %237 : vector<32x256xf32>
      %c512_i32_76 = arith.constant 512 : i32
      %239 = arith.addi %c512_i32_76, %145 : i32
      %240 = arith.index_cast %239 : i32 to index
      %c0_77 = arith.constant 0 : index
      %241 = vector.load %arg10[%240, %c0_77] : memref<1152x256xf32, #tpu.memory_space<vmem>>, vector<32x256xf32>
      %242 = arith.subf %241, %179 : vector<32x256xf32>
      %243 = math.exp %242 : vector<32x256xf32>
      %244 = arith.addf %230, %243 : vector<32x256xf32>
      %245 = vector.extract_strided_slice %86 {offsets = [0, 0], sizes = [1, 256], strides = [1, 1]} : vector<2x256xf32> to vector<1x256xf32>
      %246 = vector.broadcast %245 : vector<1x256xf32> to vector<32x256xf32>
      %247 = arith.mulf %243, %246 : vector<32x256xf32>
      %248 = arith.addf %234, %247 : vector<32x256xf32>
      %249 = vector.extract_strided_slice %86 {offsets = [1, 0], sizes = [1, 256], strides = [1, 1]} : vector<2x256xf32> to vector<1x256xf32>
      %250 = vector.broadcast %249 : vector<1x256xf32> to vector<32x256xf32>
      %251 = arith.mulf %243, %250 : vector<32x256xf32>
      %252 = arith.addf %238, %251 : vector<32x256xf32>
      %c640_i32_78 = arith.constant 640 : i32
      %253 = arith.addi %c640_i32_78, %145 : i32
      %254 = arith.index_cast %253 : i32 to index
      %c0_79 = arith.constant 0 : index
      %255 = vector.load %arg10[%254, %c0_79] : memref<1152x256xf32, #tpu.memory_space<vmem>>, vector<32x256xf32>
      %256 = arith.subf %255, %179 : vector<32x256xf32>
      %257 = math.exp %256 : vector<32x256xf32>
      %258 = arith.addf %244, %257 : vector<32x256xf32>
      %259 = vector.extract_strided_slice %117 {offsets = [0, 0], sizes = [1, 256], strides = [1, 1]} : vector<2x256xf32> to vector<1x256xf32>
      %260 = vector.broadcast %259 : vector<1x256xf32> to vector<32x256xf32>
      %261 = arith.mulf %257, %260 : vector<32x256xf32>
      %262 = arith.addf %248, %261 : vector<32x256xf32>
      %263 = vector.extract_strided_slice %117 {offsets = [1, 0], sizes = [1, 256], strides = [1, 1]} : vector<2x256xf32> to vector<1x256xf32>
      %264 = vector.broadcast %263 : vector<1x256xf32> to vector<32x256xf32>
      %265 = arith.mulf %257, %264 : vector<32x256xf32>
      %266 = arith.addf %252, %265 : vector<32x256xf32>
      %c768_i32_80 = arith.constant 768 : i32
      %267 = arith.addi %c768_i32_80, %145 : i32
      %268 = arith.index_cast %267 : i32 to index
      %c0_81 = arith.constant 0 : index
      %269 = vector.load %arg10[%268, %c0_81] : memref<1152x256xf32, #tpu.memory_space<vmem>>, vector<32x256xf32>
      %270 = arith.subf %269, %179 : vector<32x256xf32>
      %271 = math.exp %270 : vector<32x256xf32>
      %272 = arith.addf %258, %271 : vector<32x256xf32>
      %273 = vector.extract_strided_slice %124 {offsets = [0, 0], sizes = [1, 256], strides = [1, 1]} : vector<2x256xf32> to vector<1x256xf32>
      %274 = vector.broadcast %273 : vector<1x256xf32> to vector<32x256xf32>
      %275 = arith.mulf %271, %274 : vector<32x256xf32>
      %276 = arith.addf %262, %275 : vector<32x256xf32>
      %277 = vector.extract_strided_slice %124 {offsets = [1, 0], sizes = [1, 256], strides = [1, 1]} : vector<2x256xf32> to vector<1x256xf32>
      %278 = vector.broadcast %277 : vector<1x256xf32> to vector<32x256xf32>
      %279 = arith.mulf %271, %278 : vector<32x256xf32>
      %280 = arith.addf %266, %279 : vector<32x256xf32>
      %c896_i32_82 = arith.constant 896 : i32
      %281 = arith.addi %c896_i32_82, %145 : i32
      %282 = arith.index_cast %281 : i32 to index
      %c0_83 = arith.constant 0 : index
      %283 = vector.load %arg10[%282, %c0_83] : memref<1152x256xf32, #tpu.memory_space<vmem>>, vector<32x256xf32>
      %284 = arith.subf %283, %179 : vector<32x256xf32>
      %285 = math.exp %284 : vector<32x256xf32>
      %286 = arith.addf %272, %285 : vector<32x256xf32>
      %287 = vector.extract_strided_slice %127 {offsets = [0, 0], sizes = [1, 256], strides = [1, 1]} : vector<2x256xf32> to vector<1x256xf32>
      %288 = vector.broadcast %287 : vector<1x256xf32> to vector<32x256xf32>
      %289 = arith.mulf %285, %288 : vector<32x256xf32>
      %290 = arith.addf %276, %289 : vector<32x256xf32>
      %291 = vector.extract_strided_slice %127 {offsets = [1, 0], sizes = [1, 256], strides = [1, 1]} : vector<2x256xf32> to vector<1x256xf32>
      %292 = vector.broadcast %291 : vector<1x256xf32> to vector<32x256xf32>
      %293 = arith.mulf %285, %292 : vector<32x256xf32>
      %294 = arith.addf %280, %293 : vector<32x256xf32>
      %c1024_i32_84 = arith.constant 1024 : i32
      %295 = arith.addi %c1024_i32_84, %145 : i32
      %296 = arith.index_cast %295 : i32 to index
      %c0_85 = arith.constant 0 : index
      %297 = vector.load %arg10[%296, %c0_85] : memref<1152x256xf32, #tpu.memory_space<vmem>>, vector<32x256xf32>
      %298 = arith.subf %297, %179 : vector<32x256xf32>
      %299 = math.exp %298 : vector<32x256xf32>
      %300 = arith.addf %286, %299 : vector<32x256xf32>
      %301 = vector.extract_strided_slice %134 {offsets = [0, 0], sizes = [1, 256], strides = [1, 1]} : vector<2x256xf32> to vector<1x256xf32>
      %302 = vector.broadcast %301 : vector<1x256xf32> to vector<32x256xf32>
      %303 = arith.mulf %299, %302 : vector<32x256xf32>
      %304 = arith.addf %290, %303 : vector<32x256xf32>
      %305 = vector.extract_strided_slice %134 {offsets = [1, 0], sizes = [1, 256], strides = [1, 1]} : vector<2x256xf32> to vector<1x256xf32>
      %306 = vector.broadcast %305 : vector<1x256xf32> to vector<32x256xf32>
      %307 = arith.mulf %299, %306 : vector<32x256xf32>
      %308 = arith.addf %294, %307 : vector<32x256xf32>
      %309 = tpu.reciprocal %300 {approx = true} : vector<32x256xf32> -> vector<32x256xf32>
      %310 = arith.mulf %304, %309 : vector<32x256xf32>
      %c0_86 = arith.constant 0 : index
      %c0_87 = arith.constant 0 : index
      %311 = arith.index_cast %145 : i32 to index
      %c0_88 = arith.constant 0 : index
      %312 = vector.load %arg9[%c0_86, %c0_87, %311, %c0_88] : memref<1x2x128x256xf32, #tpu.memory_space<vmem>>, vector<1x1x32x256xf32>
      %313 = vector.shape_cast %312 : vector<1x1x32x256xf32> to vector<32x256xf32>
      %314 = vector.shape_cast %310 : vector<32x256xf32> to vector<1x1x32x256xf32>
      tpu.vector_store %arg9[%c0_86, %c0_87, %311, %c0_88], %314 {strides = array<i32>} : memref<1x2x128x256xf32, #tpu.memory_space<vmem>>, vector<1x1x32x256xf32>,
      %315 = arith.mulf %308, %309 : vector<32x256xf32>
      %c0_89 = arith.constant 0 : index
      %c1 = arith.constant 1 : index
      %316 = arith.index_cast %145 : i32 to index
      %c0_90 = arith.constant 0 : index
      %317 = vector.load %arg9[%c0_89, %c1, %316, %c0_90] : memref<1x2x128x256xf32, #tpu.memory_space<vmem>>, vector<1x1x32x256xf32>
      %318 = vector.shape_cast %317 : vector<1x1x32x256xf32> to vector<32x256xf32>
      %319 = vector.shape_cast %315 : vector<32x256xf32> to vector<1x1x32x256xf32>
      tpu.vector_store %arg9[%c0_89, %c1, %316, %c0_90], %319 {strides = array<i32>} : memref<1x2x128x256xf32, #tpu.memory_space<vmem>>, vector<1x1x32x256xf32>,
    }
    %c4_i32_53 = arith.constant 4 : i32
    return
  }
  func.func @transform_0(%arg0: i32, %arg1: i32) -> (i32, i32, i32) {
    %c0_i32 = arith.constant 0 : i32
    %c0_i32_0 = arith.constant 0 : i32
    %c0_i32_1 = arith.constant 0 : i32
    return %arg0, %c0_i32, %c0_i32_0 : i32, i32, i32
  }
  func.func @transform_1(%arg0: i32, %arg1: i32) -> (i32, i32) {
    %c0_i32 = arith.constant 0 : i32
    %c0_i32_0 = arith.constant 0 : i32
    %c0_i32_1 = arith.constant 0 : i32
    return %c0_i32, %c0_i32_0 : i32, i32
  }
  func.func @transform_2(%arg0: i32, %arg1: i32) -> (i32, i32) {
    %c0_i32 = arith.constant 0 : i32
    %c0_i32_0 = arith.constant 0 : i32
    %c0_i32_1 = arith.constant 0 : i32
    return %c0_i32, %c0_i32_0 : i32, i32
  }
  func.func @transform_3(%arg0: i32, %arg1: i32) -> (i32, i32) {
    %c0_i32 = arith.constant 0 : i32
    %c0_i32_0 = arith.constant 0 : i32
    %c0_i32_1 = arith.constant 0 : i32
    return %c0_i32, %c0_i32_0 : i32, i32
  }
  func.func @transform_4(%arg0: i32, %arg1: i32) -> (i32, i32) {
    %c0_i32 = arith.constant 0 : i32
    %c0_i32_0 = arith.constant 0 : i32
    %c0_i32_1 = arith.constant 0 : i32
    return %c0_i32, %c0_i32_0 : i32, i32
  }
  func.func @transform_5(%arg0: i32, %arg1: i32) -> (i32, i32) {
    %c0_i32 = arith.constant 0 : i32
    %c0_i32_0 = arith.constant 0 : i32
    return %arg1, %c0_i32 : i32, i32
  }
  func.func @transform_6(%arg0: i32, %arg1: i32) -> (i32, i32) {
    %c0_i32 = arith.constant 0 : i32
    %c0_i32_0 = arith.constant 0 : i32
    return %arg1, %c0_i32 : i32, i32
  }
  func.func @transform_7(%arg0: i32, %arg1: i32) -> (i32, i32, i32, i32) {
    %c0_i32 = arith.constant 0 : i32
    %c0_i32_0 = arith.constant 0 : i32
    %c0_i32_1 = arith.constant 0 : i32
    return %arg0, %c0_i32, %arg1, %c0_i32_0 : i32, i32, i32, i32
  }
}

</mosaic_0001>

<bundles_post_ra>
// kernel: tpu_custom_call.1
= control target key start
LH: loop header
LB: loop body
LE: loop exit
PB: predicated region body
PF: predicated region fallthrough
CT: control target
= control target key end

     0   :  { %s8989_s0 = inlined_call_operand.vmem [shape: bf16[2,36,256], index: 0, kind: input, shape index: {}]   ;;  %s8990_s1 = inlined_call_operand.vmem [shape: bf16[258,36], index: 1, kind: input, shape index: {}]   ;;  %s8991_s2 = inlined_call_operand.vmem [shape: f32[258,1], index: 2, kind: input, shape index: {}]   ;;  %s8992_s3 = inlined_call_operand.vmem [shape: f32[2,18], index: 3, kind: input, shape index: {}]   ;;  %s8993_s4 = inlined_call_operand.vmem [shape: f32[2,1], index: 4, kind: input, shape index: {}]   ;;  %s8994_s5 = inlined_call_operand.vmem [shape: bf16[2304,256], index: 5, kind: input, shape index: {}]   ;;  %s8995_s6 = inlined_call_operand.vmem [shape: f32[2304,1], index: 6, kind: input, shape index: {}]   ;;  %s8996_s7 = inlined_call_operand.hbm [shape: f32[2,2,256,256], index: 7, kind: output, shape index: {}]  }
   0x1   :  { %9212 = sst [smem:[#allocation153_spill]] %s8989_s0 }
   0x2   :  { %9213 = sst [smem:[#allocation154_spill]] %s8990_s1 }
   0x3   :  { %9214 = sst [smem:[#allocation155_spill]] %s8991_s2 }
   0x4   :  { %9215 = sst [smem:[#allocation156_spill]] %s8994_s5 }
   0x5   :  { %12 = vsyncpa [#allocation4], 0 }
   0x6   :  { %14 = vsyncpa [#allocation4 + $0x1], 0  ;;  %s6240_s24 = smov 0   ;;  %s6242_s25 = smov 0  }
   0x7   :  { %s6244_s26 = smov 0   ;;  %s6246_s27 = smov 0  }
   0x8   :  { %s6248_s28 = smov 0   ;;  %s6250_s29 = smov 0  }
   0x9   :  { %s6252_s30 = smov 0   ;;  %s6254_s8 = smov 0  }
   0xa LB: > { %s5284_s9 = sadd.s32 4294967295, %s6178_s8   ;;  %s5285_s10 = sadd.s32 4294967294, %s6178_s8   ;;  %s6178_s8 = sphi %s6254_s8, %s20_s8   ;;  %s6174_s30 = sphi %s6252_s30, %s9659_s30   ;;  %s6170_s29 = sphi %s6250_s29, %s9658_s29   ;;  %s6166_s28 = sphi %s6248_s28, %s9657_s28   ;;  %s6162_s27 = sphi %s6246_s27, %s9656_s27   ;;  %s6158_s26 = sphi %s6244_s26, %s9655_s26   ;;  %s6154_s25 = sphi %s6242_s25, %s9654_s25   ;;  %s6150_s24 = sphi %s6240_s24, %s9653_s24  }
   0xb   : > { %s29_s11 = sadd.s32 1, %s6170_s29  ;;  %s32_s12 = sadd.s32 1, %s6174_s30 }
   0xc   : > { %p30_p0 = scmp.ge.s32.totalorder %s29_s11, 2  ;;  %p213_p1 = scmp.ne.s32.totalorder %s6158_s26, %s6154_s25 }
   0xd   : > { %p214_p2 = scmp.eq.s32.totalorder %s5284_s9, 3  ;;  %p219_p5 = scmp.ne.s32.totalorder %s6154_s25, %s6150_s24 }
   0xe   : > { %s9661_s11 = smov (%p30_p0, %s29_s11), 0  ;;  %s9663_s12 = smov (!%p30_p0, %s32_s12), %s6174_s30 }
   0xf   : > { %s199_s13 = ssub.s32 %s6170_s29, %s9661_s11  ;;  %p6291_p3 = por %p214_p2, %p213_p1 }
  0x10   : > { %p34_p4 = scmp.ge.s32.totalorder %s9663_s12, 2  ;;  %p220_p6 = scmp.eq.s32.totalorder %s5285_s10, 3 }
  0x11   : > { %p5288_p7 = scmp.ge.s32.totalorder %s6178_s8, 1  ;;  %p277_p9 = scmp.lt.s32.totalorder %s6178_s8, 5 }
  0x12   : > { %s9665_s12 = smov (%p34_p4, %s9663_s12), 0  ;;  %p6300_p8 = por %p220_p6, %p219_p5 }
  0x13   : > { %9217 = sst [smem:[#allocation8_spill]] %s9665_s12  ;;  %s198_s16 = ssub.s32 %s6174_s30, %s9665_s12 }
  0x14   : > { %s203_s17 = sadd.s32 1, %s6158_s26  ;;  %s200_s18 = sor.u32 %s199_s13, %s198_s16 }
  0x15   : > { %p278_p10 = pnand %p5288_p7, %p277_p9  ;;  %p201_p11 = scmp.eq.s32.totalorder %s200_s18, 0 }
  0x17   : > { %s6309_s19 = scalar_select %p201_p11, %s6158_s26, %s203_s17  }
  0x18   : > { %281 = sbr.rel (%p278_p10) target bundleno = 1352 (0x548), region = 48 }
  0x1f   : > { %s8997_s20 = sand.u32 1, %s6154_s25   ;;  %p320_p12 = scmp.lt.s32.totalorder %s6166_s28, 1  ;;  %v6184_v0 = vmov 0   ;;  %vm736_vm0 = vcmask 1041408   ;;  %vm684_vm1 = vcmask 293888   ;;  %vm1094_vm2 = vcmask 130048  }
  0x20   : > { %s6315_s21 = sshll.u32 %s8997_s20, 9  ;;  %775 = vmatprep.mubr.bf16.mxu0 %v6184_v0  ;;  %5670 = vset.pattern.permute.xlu0 %v6184_v0  ;;  %s9219_s0 = sld [smem:[#allocation153_spill]]  ;;  %vm1128_vm3 = vcmask 1039360   ;;  %vm1139_vm8 = vcmask 924672   ;;  %vm1102_vm9 = vcmask 121856   ;;  %vm1117_vm10 = vcmask 7168  }
  0x21   : > { %5671 = vset.pattern.permute.xlu1 %v6184_v0  ;;  %s321_s22 = scalar_select %p320_p12, %s6166_s28, 1  ;;  %vm1079_vm11 = vcmask 138240   ;;  %vm1150_vm12 = vcmask 916480   ;;  %vm1201_vm13 = vcmask 1043456   ;;  %vm1204_vm14 = vcmask 1045504  }
  0x22   : > { %s9220_s2 = sld [smem:[#allocation155_spill]]  ;;  %s9221_s1 = sld [smem:[#allocation154_spill]]  ;;  %vm1158_vm15 = vcmask 908288  }
  0x23   : > { %s5568_s23 = smul.u32 40, %s321_s22  ;;  %s9222_s5 = sld [smem:[#allocation156_spill]] }
  0x24   : > { %s325_s10 = smul.u32 144, %s6162_s27  ;;  %s9002_s17 = smov 16  }
  0x25   : > { %s8998_s18 = smov 127   ;;  %s9000_s22 = smov 113  }
  0x26   : > { %s324_s13 = scalar_lea.vmem %s9219_s0, %s5568_s23  ;;  %p326_p13 = scmp.lt.s32.totalorder %s325_s10, 287 }
  0x27   : > { %v5707_v1 = vld [vmem:[%s324_s13 + $0x4] ss:$8 sps:$4 sm:$0xff]   ;;  %v5709_v2 = vld [vmem:[%s324_s13] ss:$8 sps:$4 sm:$0xff]   ;;  %v5710_v3 = vld [vmem:[%s324_s13 + $0x14] ss:$8 sps:$4 sm:$0xff]  }
  0x28   : > { %743 = vmatprep.subr.bf16.mxu0 %v5707_v1  ;;  %v377_v4 = vld [vmem:[%s324_s13 + $0x20] sm:$0x33]  ;;  %v5712_v5 = vld [vmem:[%s324_s13 + $0x10] ss:$8 sps:$4 sm:$0xff]   ;;  %v379_v10 = vld [vmem:[%s9220_s2 + $0x8] sm:$0xff]  ;;  %s9667_s10 = smov (!%p326_p13, %s325_s10), 287 }
  0x29   : > { %744 = vmatpush1.bf16.msra.mxu0 %v5709_v2  ;;  %v5316_v6 = vcombine.high %v377_v4, %v377_v4  ;;  %v5315_v7 = vcombine.low %v377_v4, %v377_v4  ;;  %v378_v8 = vld [vmem:[%s9220_s2] sm:$0xff]  ;;  %v380_v11 = vld [vmem:[%s9220_s2 + $0x10] sm:$0xff]  ;;  %v381_v13 = vld [vmem:[%s9220_s2 + $0x18] sm:$0xff]  ;;  %s9010_s13 = sshll.u32 %s9667_s10, 3  ;;  %s9006_s23 = smov 15  }
  0x2a   : > { %745 = vmatprep.subr.bf16.mxu0 %v5710_v3  ;;  %413 = vperm.xlu0 %5670, %v378_v8   ;;  %v5715_v12 = vld [vmem:[%s9221_s1] sm:$0xff]   ;;  %v383_v15 = vld [vmem:[%s9220_s2 + $0x28] sm:$0xff]  ;;  %v384_v16 = vld [vmem:[%s9220_s2 + $0x30] sm:$0xff]  ;;  %s6527_s16 = scalar_lea.vmem %s9222_s5, %s9010_s13  ;;  %s9004_s9 = smov 1  }
  0x2b   : > { %v738_v9 = vsel %vm736_vm0, %v5315_v7, 0  ;;  %423 = vperm.xlu1 %5671, %v380_v11   ;;  %v382_v14 = vld [vmem:[%s9220_s2 + $0x20] sm:$0xff]  ;;  %v5716_v17 = vld [vmem:[%s9221_s1 + $0x8] sm:$0xff]   ;;  %v385_v18 = vld [vmem:[%s9220_s2 + $0x38] sm:$0xff]  ;;  %s9008_s0 = smov 17   ;;  %s9013_s20 = smov 111  }
  0x2c   : > { %v386_v19 = vld [vmem:[%s9220_s2 + $0x40] sm:$0xff]  ;;  %v387_v21 = vld [vmem:[%s9220_s2 + $0x48] sm:$0xff]  ;;  %v5717_v22 = vld [vmem:[%s9221_s1 + $0x10] sm:$0xff]   ;;  %s9320_s13 = smov 127   ;;  %s9328_s5 = smov 111  }
  0x2d   : > { %746 = vmatpush1.bf16.msra.mxu0 %v5712_v5  ;;  %v410_v20 = vld [vmem:[%s9220_s2 + $0x100] sm:$0x3]  ;;  %v388_v23 = vld [vmem:[%s9220_s2 + $0x50] sm:$0xff]  ;;  %v389_v24 = vld [vmem:[%s9220_s2 + $0x58] sm:$0xff] }
  0x2e   : > { %5317 = vmatprep.subr.msk.bf16.mxu0 %vm736_vm0, %v5316_v6  ;;  %418 = vperm.xlu0 %5670, %v379_v10   ;;  %v390_v25 = vld [vmem:[%s9220_s2 + $0x60] sm:$0xff]  ;;  %v391_v26 = vld [vmem:[%s9220_s2 + $0x68] sm:$0xff]  ;;  %v5718_v27 = vld [vmem:[%s9221_s1 + $0x18] sm:$0xff]  }
  0x2f   : > { %428 = vperm.xlu1 %5671, %v381_v13   ;;  %v392_v28 = vld [vmem:[%s9220_s2 + $0x70] sm:$0xff]  ;;  %v393_v29 = vld [vmem:[%s9220_s2 + $0x78] sm:$0xff]  ;;  %v394_v30 = vld [vmem:[%s9220_s2 + $0x80] sm:$0xff] }
  0x30   : > { %v395_v31 = vld [vmem:[%s9220_s2 + $0x88] sm:$0xff]  ;;  %v5719_v32 = vld [vmem:[%s9221_s1 + $0x20] sm:$0xff]   ;;  %v396_v33 = vld [vmem:[%s9220_s2 + $0x90] sm:$0xff] }
  0x31   : > { %748 = vmatpush1.bf16.msra.mxu0 %v738_v9  ;;  %v397_v34 = vld [vmem:[%s9220_s2 + $0x98] sm:$0xff]  ;;  %v398_v35 = vld [vmem:[%s9220_s2 + $0xa0] sm:$0xff]  ;;  %v399_v36 = vld [vmem:[%s9220_s2 + $0xa8] sm:$0xff] }
  0x32   : > { %433 = vperm.xlu0 %5670, %v382_v14   ;;  %v5720_v37 = vld [vmem:[%s9221_s1 + $0x28] sm:$0xff]   ;;  %v400_v38 = vld [vmem:[%s9220_s2 + $0xb0] sm:$0xff]  ;;  %v401_v39 = vld [vmem:[%s9220_s2 + $0xb8] sm:$0xff] }
  0x33   : > { %438 = vperm.xlu1 %5671, %v383_v15   ;;  %v402_v40 = vld [vmem:[%s9220_s2 + $0xc0] sm:$0xff]  ;;  %v5721_v41 = vld [vmem:[%s9221_s1 + $0x30] sm:$0xff]   ;;  %v5722_v42 = vld [vmem:[%s9221_s1 + $0x38] sm:$0xff]  }
  0x34   : > { %5318 = vmatmul.mubr.msk.bf16.vlgmr.msra.gmra.mrb[0].mxu0 %vm684_vm1, %v5715_v12  ;;  %v5723_v43 = vld [vmem:[%s9221_s1 + $0x40] sm:$0xff]   ;;  %v5724_v44 = vld [vmem:[%s9221_s1 + $0x48] sm:$0xff]   ;;  %v5725_v45 = vld [vmem:[%s9221_s1 + $0x50] sm:$0xff]  }
  0x35   : > { %785 = vmatprep.mubr.bf16.mxu0 %v6184_v0  ;;  %v5726_v46 = vld [vmem:[%s9221_s1 + $0x58] sm:$0xff]   ;;  %v5727_v47 = vld [vmem:[%s9221_s1 + $0x60] sm:$0xff]   ;;  %v5728_v48 = vld [vmem:[%s9221_s1 + $0x68] sm:$0xff]  }
  0x36   : > { %443 = vperm.xlu0 %5670, %v384_v16   ;;  %v5729_v49 = vld [vmem:[%s9221_s1 + $0x70] sm:$0xff]   ;;  %v5730_v50 = vld [vmem:[%s9221_s1 + $0x78] sm:$0xff]   ;;  %v5731_v51 = vld [vmem:[%s9221_s1 + $0x80] ss:$0 sps:$4 sm:$0x11]  }
  0x37   : > { %448 = vperm.xlu1 %5671, %v385_v18  }
  0x3a   : > { %453 = vperm.xlu0 %5670, %v386_v19  }
  0x3b   : > { %573 = vperm.xlu1 %5671, %v410_v20  }
  0x3c   : > { %5319 = vmatmul.mubr.msk.bf16.gmra.mrb[4].mxu0 %vm684_vm1, %v5716_v17 }
  0x3d   : > { %795 = vmatprep.mubr.bf16.mxu0 %v6184_v0 }
  0x3e   : > { %458 = vperm.xlu0 %5670, %v387_v21  }
  0x3f   : > { %463 = vperm.xlu1 %5671, %v388_v23  }
  0x42   : > { %468 = vperm.xlu0 %5670, %v389_v24  }
  0x43   : > { %473 = vperm.xlu1 %5671, %v390_v25  }
  0x44   : > { %5320 = vmatmul.mubr.msk.bf16.gmra.mrb[8].mxu0 %vm684_vm1, %v5717_v22 }
  0x45   : > { %805 = vmatprep.mubr.bf16.mxu0 %v6184_v0 }
  0x46   : > { %478 = vperm.xlu0 %5670, %v391_v26  }
  0x47   : > { %483 = vperm.xlu1 %5671, %v392_v28  }
  0x4a   : > { %488 = vperm.xlu0 %5670, %v393_v29  }
  0x4b   : > { %493 = vperm.xlu1 %5671, %v394_v30  }
  0x4c   : > { %5321 = vmatmul.mubr.msk.bf16.gmra.mrb[12].mxu0 %vm684_vm1, %v5718_v27 }
  0x4d   : > { %815 = vmatprep.mubr.bf16.mxu0 %v6184_v0 }
  0x4e   : > { %498 = vperm.xlu0 %5670, %v395_v31  }
  0x4f   : > { %503 = vperm.xlu1 %5671, %v396_v33  }
  0x52   : > { %508 = vperm.xlu0 %5670, %v397_v34  }
  0x53   : > { %513 = vperm.xlu1 %5671, %v398_v35  }
  0x54   : > { %5322 = vmatmul.mubr.msk.bf16.gmra.mrb[16].mxu0 %vm684_vm1, %v5719_v32 }
  0x55   : > { %825 = vmatprep.mubr.bf16.mxu0 %v6184_v0 }
  0x56   : > { %518 = vperm.xlu0 %5670, %v399_v36  }
  0x57   : > { %523 = vperm.xlu1 %5671, %v400_v38  }
  0x5a   : > { %528 = vperm.xlu0 %5670, %v401_v39  }
  0x5b   : > { %533 = vperm.xlu1 %5671, %v402_v40  }
  0x5c   : > { %5323 = vmatmul.mubr.msk.bf16.gmra.mrb[20].mxu0 %vm684_vm1, %v5720_v37 }
  0x5d   : > { %835 = vmatprep.mubr.bf16.mxu0 %v6184_v0 }
  0x64   : > { %5324 = vmatmul.mubr.msk.bf16.gmra.mrb[24].mxu0 %vm684_vm1, %v5721_v41 }
  0x65   : > { %845 = vmatprep.mubr.bf16.mxu0 %v6184_v0 }
  0x6c   : > { %5325 = vmatmul.mubr.msk.bf16.gmra.mrb[28].mxu0 %vm684_vm1, %v5722_v42 }
  0x6d   : > { %855 = vmatprep.mubr.bf16.mxu0 %v6184_v0 }
  0x74   : > { %5326 = vmatmul.mubr.msk.bf16.gmra.mrb[32].mxu0 %vm684_vm1, %v5723_v43 }
  0x75   : > { %865 = vmatprep.mubr.bf16.mxu0 %v6184_v0 }
  0x7c   : > { %5327 = vmatmul.mubr.msk.bf16.gmra.mrb[36].mxu0 %vm684_vm1, %v5724_v44 }
  0x7d   : > { %875 = vmatprep.mubr.bf16.mxu0 %v6184_v0 }
  0x84   : > { %5328 = vmatmul.mubr.msk.bf16.gmra.mrb[40].mxu0 %vm684_vm1, %v5725_v45 }
  0x85   : > { %885 = vmatprep.mubr.bf16.mxu0 %v6184_v0 }
  0x8c   : > { %5329 = vmatmul.mubr.msk.bf16.gmra.mrb[44].mxu0 %vm684_vm1, %v5726_v46 }
  0x8d   : > { %895 = vmatprep.mubr.bf16.mxu0 %v6184_v0 }
  0x94   : > { %5330 = vmatmul.mubr.msk.bf16.gmra.mrb[48].mxu0 %vm684_vm1, %v5727_v47 }
  0x95   : > { %905 = vmatprep.mubr.bf16.mxu0 %v6184_v0 }
  0x9c   : > { %5331 = vmatmul.mubr.msk.bf16.gmra.mrb[52].mxu0 %vm684_vm1, %v5728_v48 }
  0x9d   : > { %915 = vmatprep.mubr.bf16.mxu0 %v6184_v0 }
  0xa4   : > { %5332 = vmatmul.mubr.msk.bf16.gmra.mrb[56].mxu0 %vm684_vm1, %v5729_v49 }
  0xa5   : > { %925 = vmatprep.mubr.bf16.mxu0 %v6184_v0 }
  0xa9   : > { %v414_v52 = vpop.permute.xlu0 %413 }
  0xaa   : > { %v424_v59 = vpop.permute.xlu1 %423 }
  0xac   : > { %5333 = vmatmul.mubr.msk.bf16.gmra.mrb[60].mxu0 %vm684_vm1, %v5730_v50 }
  0xad   : > { %935 = vmatprep.mubr.bf16.mxu0 %v6184_v0  ;;  %v419_v54 = vpop.permute.xlu0 %418 }
  0xae   : > { %v429_v6 = vpop.permute.xlu1 %428 }
  0xb1   : > { %v434_v18 = vpop.permute.xlu0 %433 }
  0xb2   : > { %v439_v22 = vpop.permute.xlu1 %438 }
  0xb4   : > { %5334 = vmatmul.mubr.msk.bf16.gmra.mrb[64].mxu0 %vm684_vm1, %v5731_v51  ;;  %vm1220_vm1 = vcmask 146432  }
  0xb5   : > { %v444_v34 = vpop.permute.xlu0 %443 }
  0xb6   : > { %v449_v38 = vpop.permute.xlu1 %448 }
  0xb9   : > { %v454_v43 = vpop.permute.xlu0 %453 }
 0x107   : > { %v777_v53 = vpop.f32.mrb[0].mxu0 }
 0x108   : > { %v778_v55 = vadd.f32 %v777_v53, %v414_v52  ;;  %v779_v56 = vpop.f32.mrb[1].mxu0 }
 0x109   : > { %v780_v57 = vadd.f32 %v779_v56, %v414_v52  ;;  %v781_v58 = vpop.f32.mrb[2].mxu0  ;;  %v6508_v52 = vpop.permute.xlu1 %573 }
 0x10a   : > { %v782_v60 = vadd.f32 %v781_v58, %v419_v54  ;;  %v783_v61 = vpop.f32.mrb[3].mxu0  ;;  %v944_v63 = vmax.f32 %v778_v55, 0.0  ;;  %v459_v55 = vpop.permute.xlu0 %458 }
 0x10b   : > { %v784_v62 = vadd.f32 %v783_v61, %v419_v54  ;;  %v945_v0 = vmax.f32 %v780_v57, 0.0 }
 0x10c   : > { %v946_v1 = vmax.f32 %v782_v60, 0.0 }
 0x10d   : > { %v947_v2 = vmax.f32 %v784_v62, 0.0 }
 0x10e   : > { %v6488_v3 = vpack.c.bf16 %v946_v1, %v944_v63 }
 0x10f   : > { %v6490_v4 = vpack.c.bf16 %v947_v2, %v945_v0  ;;  %v787_v5 = vpop.f32.mrb[4].mxu0 }
 0x110   : > { %v788_v7 = vadd.f32 %v787_v5, %v424_v59  ;;  %v789_v8 = vpop.f32.mrb[5].mxu0  ;;  %v464_v5 = vpop.permute.xlu1 %463 }
 0x111   : > { %v790_v9 = vadd.f32 %v789_v8, %v424_v59  ;;  %v791_v10 = vpop.f32.mrb[6].mxu0  ;;  %3107 = vmatprep.subr.bf16.mxu0 %v6490_v4 }
 0x112   : > { %v792_v11 = vadd.f32 %v791_v10, %v429_v6  ;;  %v793_v12 = vpop.f32.mrb[7].mxu0  ;;  %3108 = vmatpush1.bf16.msra.mxu0 %v6488_v3  ;;  %v948_v14 = vmax.f32 %v788_v7, 0.0 }
 0x113   : > { %v794_v13 = vadd.f32 %v793_v12, %v429_v6  ;;  %v949_v16 = vmax.f32 %v790_v9, 0.0  ;;  %v469_v9 = vpop.permute.xlu0 %468 }
 0x114   : > { %v950_v15 = vmax.f32 %v792_v11, 0.0 }
 0x115   : > { %v951_v17 = vmax.f32 %v794_v13, 0.0 }
 0x116   : > { %v6494_v19 = vpack.c.bf16 %v950_v15, %v948_v14 }
 0x117   : > { %v6496_v20 = vpack.c.bf16 %v951_v17, %v949_v16  ;;  %v797_v21 = vpop.f32.mrb[8].mxu0 }
 0x118   : > { %v798_v23 = vadd.f32 %v797_v21, %v434_v18  ;;  %v799_v24 = vpop.f32.mrb[9].mxu0 }
 0x119   : > { %v800_v25 = vadd.f32 %v799_v24, %v434_v18  ;;  %v801_v26 = vpop.f32.mrb[10].mxu0  ;;  %3109 = vmatprep.subr.bf16.mxu0 %v6496_v20 }
 0x11a   : > { %v802_v27 = vadd.f32 %v801_v26, %v439_v22  ;;  %v803_v28 = vpop.f32.mrb[11].mxu0  ;;  %3110 = vmatpush1.bf16.msra.mxu0 %v6494_v19  ;;  %v952_v30 = vmax.f32 %v798_v23, 0.0  ;;  %v474_v23 = vpop.permute.xlu1 %473 }
 0x11b   : > { %v804_v29 = vadd.f32 %v803_v28, %v439_v22  ;;  %v953_v32 = vmax.f32 %v800_v25, 0.0 }
 0x11c   : > { %v954_v31 = vmax.f32 %v802_v27, 0.0  ;;  %v479_v27 = vpop.permute.xlu0 %478 }
 0x11d   : > { %v955_v33 = vmax.f32 %v804_v29, 0.0 }
 0x11e   : > { %v6500_v35 = vpack.c.bf16 %v954_v31, %v952_v30 }
 0x11f   : > { %v6502_v36 = vpack.c.bf16 %v955_v33, %v953_v32  ;;  %v807_v37 = vpop.f32.mrb[12].mxu0 }
 0x120   : > { %v808_v39 = vadd.f32 %v807_v37, %v444_v34  ;;  %v809_v40 = vpop.f32.mrb[13].mxu0 }
 0x121   : > { %v810_v41 = vadd.f32 %v809_v40, %v444_v34  ;;  %v811_v42 = vpop.f32.mrb[14].mxu0  ;;  %3111 = vmatprep.subr.bf16.mxu0 %v6502_v36 }
 0x122   : > { %v812_v44 = vadd.f32 %v811_v42, %v449_v38  ;;  %v813_v45 = vpop.f32.mrb[15].mxu0  ;;  %3112 = vmatpush1.bf16.msra.mxu0 %v6500_v35  ;;  %v956_v47 = vmax.f32 %v808_v39, 0.0 }
 0x123   : > { %v814_v46 = vadd.f32 %v813_v45, %v449_v38  ;;  %v957_v49 = vmax.f32 %v810_v41, 0.0  ;;  %v484_v41 = vpop.permute.xlu1 %483  ;;  %v489_v45 = vpop.permute.xlu0 %488 }
 0x124   : > { %v958_v48 = vmax.f32 %v812_v44, 0.0 }
 0x125   : > { %v959_v50 = vmax.f32 %v814_v46, 0.0 }
 0x126   : > { %v6506_v51 = vpack.c.bf16 %v958_v48, %v956_v47 }
 0x127   : > { %v6510_v53 = vpack.c.bf16 %v959_v50, %v957_v49  ;;  %v817_v54 = vpop.f32.mrb[16].mxu0 }
 0x128   : > { %v818_v56 = vadd.f32 %v817_v54, %v454_v43  ;;  %v819_v57 = vpop.f32.mrb[17].mxu0 }
 0x129   : > { %v820_v58 = vadd.f32 %v819_v57, %v454_v43  ;;  %v821_v59 = vpop.f32.mrb[18].mxu0  ;;  %3113 = vmatprep.subr.bf16.mxu0 %v6510_v53 }
 0x12a   : > { %v822_v60 = vadd.f32 %v821_v59, %v459_v55  ;;  %v823_v61 = vpop.f32.mrb[19].mxu0  ;;  %3114 = vmatpush1.bf16.msra.mxu0 %v6506_v51  ;;  %v960_v63 = vmax.f32 %v818_v56, 0.0 }
 0x12b   : > { %v824_v62 = vadd.f32 %v823_v61, %v459_v55  ;;  %v961_v0 = vmax.f32 %v820_v58, 0.0 }
 0x12c   : > { %v962_v1 = vmax.f32 %v822_v60, 0.0  ;;  %v494_v60 = vpop.permute.xlu1 %493 }
 0x12d   : > { %v963_v2 = vmax.f32 %v824_v62, 0.0 }
 0x12e   : > { %v6517_v6 = vpack.c.bf16 %v962_v1, %v960_v63  ;;  %v499_v1 = vpop.permute.xlu0 %498 }
 0x12f   : > { %v6520_v7 = vpack.c.bf16 %v963_v2, %v961_v0  ;;  %v827_v8 = vpop.f32.mrb[20].mxu0 }
 0x130   : > { %v828_v10 = vadd.f32 %v827_v8, %v464_v5  ;;  %v829_v11 = vpop.f32.mrb[21].mxu0 }
 0x131   : > { %v830_v12 = vadd.f32 %v829_v11, %v464_v5  ;;  %v831_v13 = vpop.f32.mrb[22].mxu0  ;;  %3115 = vmatprep.subr.bf16.mxu0 %v6520_v7 }
 0x132   : > { %v832_v14 = vadd.f32 %v831_v13, %v469_v9  ;;  %v833_v15 = vpop.f32.mrb[23].mxu0  ;;  %3116 = vmatpush1.bf16.msra.mxu0 %v6517_v6  ;;  %v964_v17 = vmax.f32 %v828_v10, 0.0 }
 0x133   : > { %v834_v16 = vadd.f32 %v833_v15, %v469_v9  ;;  %v965_v21 = vmax.f32 %v830_v12, 0.0 }
 0x134   : > { %v966_v18 = vmax.f32 %v832_v14, 0.0 }
 0x135   : > { %v967_v22 = vmax.f32 %v834_v16, 0.0  ;;  %v504_v16 = vpop.permute.xlu1 %503 }
 0x136   : > { %v6531_v24 = vpack.c.bf16 %v966_v18, %v964_v17 }
 0x137   : > { %v6533_v25 = vpack.c.bf16 %v967_v22, %v965_v21  ;;  %v837_v26 = vpop.f32.mrb[24].mxu0  ;;  %v509_v22 = vpop.permute.xlu0 %508 }
 0x138   : > { %v838_v28 = vadd.f32 %v837_v26, %v474_v23  ;;  %v839_v29 = vpop.f32.mrb[25].mxu0 }
 0x139   : > { %v840_v30 = vadd.f32 %v839_v29, %v474_v23  ;;  %v841_v31 = vpop.f32.mrb[26].mxu0  ;;  %3117 = vmatprep.subr.bf16.mxu0 %v6533_v25 }
 0x13a   : > { %v842_v32 = vadd.f32 %v841_v31, %v479_v27  ;;  %v843_v33 = vpop.f32.mrb[27].mxu0  ;;  %3118 = vmatpush1.bf16.msra.mxu0 %v6531_v24  ;;  %v968_v37 = vmax.f32 %v838_v28, 0.0 }
 0x13b   : > { %v844_v34 = vadd.f32 %v843_v33, %v479_v27  ;;  %v969_v39 = vmax.f32 %v840_v30, 0.0 }
 0x13c   : > { %v970_v38 = vmax.f32 %v842_v32, 0.0 }
 0x13d   : > { %v971_v40 = vmax.f32 %v844_v34, 0.0 }
 0x13e   : > { %v6537_v42 = vpack.c.bf16 %v970_v38, %v968_v37  ;;  %v514_v38 = vpop.permute.xlu1 %513 }
 0x13f   : > { %v6539_v43 = vpack.c.bf16 %v971_v40, %v969_v39  ;;  %v847_v44 = vpop.f32.mrb[28].mxu0 }
 0x140   : > { %9223 = vst [vmem:[#allocation9_spill] sm:$0xff] %v6537_v42  ;;  %v848_v46 = vadd.f32 %v847_v44, %v484_v41  ;;  %v849_v47 = vpop.f32.mrb[29].mxu0  ;;  %v519_v44 = vpop.permute.xlu0 %518 }
 0x141   : > { %v850_v48 = vadd.f32 %v849_v47, %v484_v41  ;;  %v851_v49 = vpop.f32.mrb[30].mxu0  ;;  %3119 = vmatprep.subr.bf16.mxu0 %v6539_v43 }
 0x142   : > { %v852_v50 = vadd.f32 %v851_v49, %v489_v45  ;;  %v853_v54 = vpop.f32.mrb[31].mxu0  ;;  %3120 = vmatpush1.bf16.msra.mxu0 %v6537_v42  ;;  %v972_v56 = vmax.f32 %v848_v46, 0.0 }
 0x143   : > { %v854_v55 = vadd.f32 %v853_v54, %v489_v45  ;;  %v973_v58 = vmax.f32 %v850_v48, 0.0 }
 0x144   : > { %v974_v57 = vmax.f32 %v852_v50, 0.0 }
 0x145   : > { %v975_v59 = vmax.f32 %v854_v55, 0.0 }
 0x146   : > { %v6543_v61 = vpack.c.bf16 %v974_v57, %v972_v56 }
 0x147   : > { %v6545_v62 = vpack.c.bf16 %v975_v59, %v973_v58  ;;  %v857_v63 = vpop.f32.mrb[32].mxu0  ;;  %v524_v59 = vpop.permute.xlu1 %523 }
 0x148   : > { %9224 = vst [vmem:[#allocation10_spill] sm:$0xff] %v6543_v61  ;;  %v858_v0 = vadd.f32 %v857_v63, %v494_v60  ;;  %v859_v2 = vpop.f32.mrb[33].mxu0 }
 0x149   : > { %9225 = vst [vmem:[#allocation11_spill] sm:$0xff] %v6545_v62  ;;  %v860_v5 = vadd.f32 %v859_v2, %v494_v60  ;;  %v861_v8 = vpop.f32.mrb[34].mxu0  ;;  %3121 = vmatprep.subr.bf16.mxu0 %v6545_v62 }
 0x14a   : > { %v862_v9 = vadd.f32 %v861_v8, %v499_v1  ;;  %v863_v10 = vpop.f32.mrb[35].mxu0  ;;  %3122 = vmatpush1.bf16.msra.mxu0 %v6543_v61  ;;  %v976_v12 = vmax.f32 %v858_v0, 0.0  ;;  %v529_v0 = vpop.permute.xlu0 %528 }
 0x14b   : > { %v864_v11 = vadd.f32 %v863_v10, %v499_v1  ;;  %v977_v14 = vmax.f32 %v860_v5, 0.0 }
 0x14c   : > { %v978_v13 = vmax.f32 %v862_v9, 0.0 }
 0x14d   : > { %v979_v15 = vmax.f32 %v864_v11, 0.0 }
 0x14e   : > { %v6549_v17 = vpack.c.bf16 %v978_v13, %v976_v12 }
 0x14f   : > { %v6551_v18 = vpack.c.bf16 %v979_v15, %v977_v14  ;;  %v867_v21 = vpop.f32.mrb[36].mxu0 }
 0x150   : > { %9226 = vst [vmem:[#allocation12_spill] sm:$0xff] %v6549_v17  ;;  %v868_v23 = vadd.f32 %v867_v21, %v504_v16  ;;  %v869_v26 = vpop.f32.mrb[37].mxu0 }
 0x151   : > { %9227 = vst [vmem:[#allocation13_spill] sm:$0xff] %v6551_v18  ;;  %v870_v27 = vadd.f32 %v869_v26, %v504_v16  ;;  %v871_v28 = vpop.f32.mrb[38].mxu0  ;;  %3123 = vmatprep.subr.bf16.mxu0 %v6551_v18 }
 0x152   : > { %v872_v29 = vadd.f32 %v871_v28, %v509_v22  ;;  %v873_v30 = vpop.f32.mrb[39].mxu0  ;;  %3124 = vmatpush1.bf16.msra.mxu0 %v6549_v17  ;;  %v980_v32 = vmax.f32 %v868_v23, 0.0 }
 0x153   : > { %v874_v31 = vadd.f32 %v873_v30, %v509_v22  ;;  %v981_v34 = vmax.f32 %v870_v27, 0.0 }
 0x154   : > { %v982_v33 = vmax.f32 %v872_v29, 0.0 }
 0x155   : > { %v983_v37 = vmax.f32 %v874_v31, 0.0 }
 0x156   : > { %v6555_v39 = vpack.c.bf16 %v982_v33, %v980_v32 }
 0x157   : > { %v6557_v40 = vpack.c.bf16 %v983_v37, %v981_v34  ;;  %v877_v41 = vpop.f32.mrb[40].mxu0 }
 0x158   : > { %9228 = vst [vmem:[#allocation14_spill] sm:$0xff] %v6555_v39  ;;  %v878_v45 = vadd.f32 %v877_v41, %v514_v38  ;;  %v879_v46 = vpop.f32.mrb[41].mxu0 }
 0x159   : > { %9229 = vst [vmem:[#allocation15_spill] sm:$0xff] %v6557_v40  ;;  %v880_v47 = vadd.f32 %v879_v46, %v514_v38  ;;  %v881_v48 = vpop.f32.mrb[42].mxu0  ;;  %3125 = vmatprep.subr.bf16.mxu0 %v6557_v40 }
 0x15a   : > { %v882_v49 = vadd.f32 %v881_v48, %v519_v44  ;;  %v883_v50 = vpop.f32.mrb[43].mxu0  ;;  %3126 = vmatpush1.bf16.msra.mxu0 %v6555_v39  ;;  %v984_v55 = vmax.f32 %v878_v45, 0.0 }
 0x15b   : > { %v884_v54 = vadd.f32 %v883_v50, %v519_v44  ;;  %v985_v57 = vmax.f32 %v880_v47, 0.0 }
 0x15c   : > { %v986_v56 = vmax.f32 %v882_v49, 0.0 }
 0x15d   : > { %v987_v58 = vmax.f32 %v884_v54, 0.0 }
 0x15e   : > { %v6561_v60 = vpack.c.bf16 %v986_v56, %v984_v55 }
 0x15f   : > { %v6563_v63 = vpack.c.bf16 %v987_v58, %v985_v57  ;;  %v887_v1 = vpop.f32.mrb[44].mxu0 }
 0x160   : > { %9230 = vst [vmem:[#allocation16_spill] sm:$0xff] %v6561_v60  ;;  %v888_v2 = vadd.f32 %v887_v1, %v524_v59  ;;  %v889_v5 = vpop.f32.mrb[45].mxu0  ;;  %v403_v1 = vld [vmem:[%s9220_s2 + $0xc8] sm:$0xff] }
 0x161   : > { %9231 = vst [vmem:[#allocation17_spill] sm:$0xff] %v6563_v63  ;;  %v890_v8 = vadd.f32 %v889_v5, %v524_v59  ;;  %v891_v9 = vpop.f32.mrb[46].mxu0  ;;  %3127 = vmatprep.subr.bf16.mxu0 %v6563_v63  ;;  %v407_v5 = vld [vmem:[%s9220_s2 + $0xe8] sm:$0xff] }
 0x162   : > { %v892_v10 = vadd.f32 %v891_v9, %v529_v0  ;;  %v893_v11 = vpop.f32.mrb[47].mxu0  ;;  %3128 = vmatpush1.bf16.msra.mxu0 %v6561_v60  ;;  %v988_v13 = vmax.f32 %v888_v2, 0.0  ;;  %v404_v2 = vld [vmem:[%s9220_s2 + $0xd0] sm:$0xff]  ;;  %v409_v9 = vld [vmem:[%s9220_s2 + $0xf8] sm:$0xff] }
 0x163   : > { %v894_v12 = vadd.f32 %v893_v11, %v529_v0  ;;  %v989_v15 = vmax.f32 %v890_v8, 0.0  ;;  %v405_v0 = vld [vmem:[%s9220_s2 + $0xd8] sm:$0xff]  ;;  %v406_v8 = vld [vmem:[%s9220_s2 + $0xe0] sm:$0xff] }
 0x164   : > { %v990_v14 = vmax.f32 %v892_v10, 0.0  ;;  %v408_v10 = vld [vmem:[%s9220_s2 + $0xf0] sm:$0xff] }
 0x165   : > { %v991_v16 = vmax.f32 %v894_v12, 0.0  ;;  %v1214_v12 = vld [vmem:[%s8993_s4] sm:$0x3] }
 0x166   : > { %v6567_v21 = vpack.c.bf16 %v990_v14, %v988_v13 }
 0x167   : > { %v6569_v22 = vpack.c.bf16 %v991_v16, %v989_v15  ;;  %v6571_v23 = vpop.f32.mrb[48].mxu0 }
 0x168   : > { %9232 = vst [vmem:[#allocation18_spill] sm:$0xff] %v6567_v21  ;;  %v6573_v26 = vpop.f32.mrb[49].mxu0 }
 0x169   : > { %9233 = vst [vmem:[#allocation19_spill] sm:$0xff] %v6569_v22  ;;  %v6575_v27 = vpop.f32.mrb[50].mxu0  ;;  %3129 = vmatprep.subr.bf16.mxu0 %v6569_v22 }
 0x16a   : > { %v6578_v28 = vpop.f32.mrb[51].mxu0  ;;  %3130 = vmatpush1.bf16.msra.mxu0 %v6567_v21 }
 0x16f   : > { %v6581_v29 = vpop.f32.mrb[52].mxu0 }
 0x170   : > { %v6583_v30 = vpop.f32.mrb[53].mxu0 }
 0x171   : > { %v6585_v31 = vpop.f32.mrb[54].mxu0 }
 0x172   : > { %v6587_v32 = vpop.f32.mrb[55].mxu0 }
 0x177   : > { %v6589_v33 = vpop.f32.mrb[56].mxu0 }
 0x178   : > { %v6591_v34 = vpop.f32.mrb[57].mxu0 }
 0x179   : > { %v6593_v37 = vpop.f32.mrb[58].mxu0 }
 0x17a   : > { %v6595_v38 = vpop.f32.mrb[59].mxu0 }
 0x17f   : > { %v6597_v41 = vpop.f32.mrb[60].mxu0 }
 0x180   : > { %v6599_v44 = vpop.f32.mrb[61].mxu0 }
 0x181   : > { %v6601_v45 = vpop.f32.mrb[62].mxu0 }
 0x182   : > { %v6603_v46 = vpop.f32.mrb[63].mxu0 }
 0x187   : > { %v937_v47 = vpop.f32.mrb[64].mxu0 }
 0x188   : > { %v938_v48 = vadd.f32 %v937_v47, %v6508_v52  ;;  %v939_v49 = vpop.f32.mrb[65].mxu0  ;;  %v5734_v47 = vld [vmem:[%s6527_s16 + $0x4] ss:$8 sps:$4 sm:$0xff]  }
 0x189   : > { %v940_v50 = vadd.f32 %v939_v49, %v6508_v52  ;;  %v941_v54 = vpop.f32.mrb[66].mxu0  ;;  %v6191_v52 = vmov 0.0   ;;  %3139 = vmatprep.mubr.bf16.mxu0 %v5734_v47 }
 0x18a   : > { %v6607_v55 = vmax.f32 %v938_v48, 0.0  ;;  %v942_v56 = vpop.f32.mrb[67].mxu0  ;;  %1294 = vmatprep.mubr.f32.mxu1 %v6191_v52 }
 0x18b   : > { %v6609_v57 = vmax.f32 %v940_v50, 0.0 }
 0x18d   : > { %v5677_v58 = vpack.i.bf16 %v6609_v57, %v6607_v55  ;;  %v5672_v59 = vpack.i.bf16 %v6607_v55, %v6609_v57 }
 0x18f   : > { %5678 = vrot.lane.b32.xlu1 %v5677_v58, %s9002_s17  ;;  %5673 = vrot.lane.b32.xlu0 %v5672_v59, %s8998_s18  ;;  %s9011_s18 = smov 112   ;;  %s9311_s17 = smov 16  }
 0x193   : > { %5688 = vrot.lane.b32.xlu1 %v5672_v59, %s9000_s22  ;;  %5683 = vrot.lane.b32.xlu0 %v5677_v58, %s9006_s23  ;;  %s9314_s22 = smov 15   ;;  %s9317_s23 = smov 1  }
 0x197   : > { %5698 = vrot.lane.b32.xlu1 %v5677_v58, %s9004_s9  ;;  %5693 = vrot.lane.b32.xlu0 %v5677_v58, %s9008_s0  ;;  %s9234_s9 = sshll.u32 %s9667_s10, 3  ;;  %s9326_s0 = smov 112  }
 0x198   : > { %s6652_s1 = scalar_lea.vmem %s8995_s6, %s9234_s9  ;;  %s9323_s9 = smov 113  }
 0x199   : > { %v1523_v11 = vld [vmem:[%s6652_s1] sm:$0xff]  ;;  %v1525_v13 = vld [vmem:[%s6652_s1 + $0x10] sm:$0xff]  ;;  %v1524_v14 = vld [vmem:[%s6652_s1 + $0x8] sm:$0xff] }
 0x19a   : > { %v1527_v15 = vld [vmem:[%s6652_s1 + $0x20] sm:$0xff]  ;;  %v1526_v16 = vld [vmem:[%s6652_s1 + $0x18] sm:$0xff]  ;;  %v1529_v48 = vld [vmem:[%s6652_s1 + $0x30] sm:$0xff] }
 0x19b   : > { %1156 = vrot.lane.b32.xlu1 %v6609_v57, %s9013_s20  ;;  %5703 = vrot.lane.b32.xlu0 %v5672_v59, %s9011_s18  ;;  %v1528_v49 = vld [vmem:[%s6652_s1 + $0x28] sm:$0xff]  ;;  %v1531_v50 = vld [vmem:[%s6652_s1 + $0x40] sm:$0xff] }
 0x19c   : > { %v1530_v54 = vld [vmem:[%s6652_s1 + $0x38] sm:$0xff]  ;;  %v1533_v56 = vld [vmem:[%s6652_s1 + $0x50] sm:$0xff]  ;;  %v1532_v58 = vld [vmem:[%s6652_s1 + $0x48] sm:$0xff] }
 0x19d   : > { %v1535_v59 = vld [vmem:[%s6652_s1 + $0x60] sm:$0xff]  ;;  %v1534_v52 = vld [vmem:[%s6652_s1 + $0x58] sm:$0xff]  ;;  %v1548_v47 = vld [vmem:[%s6652_s1 + $0xc8] sm:$0xff] }
 0x19e   : > { %v1569_v22 = vld [vmem:[%s6652_s1 + $0x170] sm:$0xff]  ;;  %v1568_v60 = vld [vmem:[%s6652_s1 + $0x168] sm:$0xff] }
 0x19f   : > { %538 = vperm.xlu1 %5671, %v403_v1   ;;  %1154 = vrot.lane.b32.xlu0 %v6607_v55, %s9013_s20  ;;  %v1537_v1 = vld [vmem:[%s6652_s1 + $0x70] sm:$0xff]  ;;  %v1572_v62 = vld [vmem:[%s6652_s1 + $0x188] sm:$0xff]  ;;  %s9308_s20 = smov 17  }
 0x1a3   : > { %548 = vperm.xlu1 %5671, %v405_v0   ;;  %543 = vperm.xlu0 %5670, %v404_v2   ;;  %v1536_v0 = vld [vmem:[%s6652_s1 + $0x68] sm:$0xff]  ;;  %v1539_v2 = vld [vmem:[%s6652_s1 + $0x80] sm:$0xff] }
 0x1a7   : > { %558 = vperm.xlu1 %5671, %v407_v5   ;;  %553 = vperm.xlu0 %5670, %v406_v8   ;;  %v1538_v5 = vld [vmem:[%s6652_s1 + $0x78] sm:$0xff]  ;;  %v1541_v8 = vld [vmem:[%s6652_s1 + $0x90] sm:$0xff] }
 0x1ab   : > { %568 = vperm.xlu1 %5671, %v409_v9   ;;  %563 = vperm.xlu0 %5670, %v408_v10   ;;  %v1540_v9 = vld [vmem:[%s6652_s1 + $0x88] sm:$0xff]  ;;  %v1543_v10 = vld [vmem:[%s6652_s1 + $0xa0] sm:$0xff] }
 0x1af   : > { %1669 = vperm.xlu1 %5671, %v1523_v11   ;;  %1217 = vperm.xlu0 %5670, %v1214_v12   ;;  %v1542_v11 = vld [vmem:[%s6652_s1 + $0x98] sm:$0xff]  ;;  %v1545_v12 = vld [vmem:[%s6652_s1 + $0xb0] sm:$0xff] }
 0x1b3   : > { %1679 = vperm.xlu1 %5671, %v1525_v13   ;;  %1674 = vperm.xlu0 %5670, %v1524_v14   ;;  %v1544_v13 = vld [vmem:[%s6652_s1 + $0xa8] sm:$0xff]  ;;  %v1547_v14 = vld [vmem:[%s6652_s1 + $0xc0] sm:$0xff] }
 0x1b7   : > { %1689 = vperm.xlu1 %5671, %v1527_v15   ;;  %1684 = vperm.xlu0 %5670, %v1526_v16   ;;  %v1546_v15 = vld [vmem:[%s6652_s1 + $0xb8] sm:$0xff]  ;;  %v1549_v16 = vld [vmem:[%s6652_s1 + $0xd0] sm:$0xff] }
 0x1bb   : > { %1699 = vperm.xlu1 %5671, %v1529_v48   ;;  %1694 = vperm.xlu0 %5670, %v1528_v49   ;;  %v1551_v48 = vld [vmem:[%s6652_s1 + $0xe0] sm:$0xff]  ;;  %v1550_v49 = vld [vmem:[%s6652_s1 + $0xd8] sm:$0xff] }
 0x1bf   : > { %1709 = vperm.xlu1 %5671, %v1531_v50   ;;  %1704 = vperm.xlu0 %5670, %v1530_v54   ;;  %v1553_v50 = vld [vmem:[%s6652_s1 + $0xf0] sm:$0xff]  ;;  %v1552_v54 = vld [vmem:[%s6652_s1 + $0xe8] sm:$0xff] }
 0x1c3   : > { %1719 = vperm.xlu1 %5671, %v1533_v56   ;;  %1714 = vperm.xlu0 %5670, %v1532_v58   ;;  %v1555_v56 = vld [vmem:[%s6652_s1 + $0x100] sm:$0xff]  ;;  %v1554_v58 = vld [vmem:[%s6652_s1 + $0xf8] sm:$0xff] }
 0x1c7   : > { %1729 = vperm.xlu1 %5671, %v1535_v59   ;;  %1724 = vperm.xlu0 %5670, %v1534_v52   ;;  %v1557_v59 = vld [vmem:[%s6652_s1 + $0x110] sm:$0xff]  ;;  %v1556_v52 = vld [vmem:[%s6652_s1 + $0x108] sm:$0xff] }
 0x1cb   : > { %1739 = vperm.xlu1 %5671, %v1537_v1   ;;  %1734 = vperm.xlu0 %5670, %v1536_v0   ;;  %v9016_v1 = vlaneseq  ;;  %v1559_v0 = vld [vmem:[%s6652_s1 + $0x120] sm:$0xff] }
 0x1cf   : > { %1749 = vperm.xlu1 %5671, %v1539_v2   ;;  %1744 = vperm.xlu0 %5670, %v1538_v5   ;;  %v1558_v2 = vld [vmem:[%s6652_s1 + $0x118] sm:$0xff]  ;;  %v1043_v5 = vand.u32 127, %v9016_v1 }
 0x1d3   : > { %1759 = vperm.xlu1 %5671, %v1541_v8   ;;  %1754 = vperm.xlu0 %5670, %v1540_v9   ;;  %v1561_v8 = vld [vmem:[%s6652_s1 + $0x130] sm:$0xff]  ;;  %v1560_v9 = vld [vmem:[%s6652_s1 + $0x128] sm:$0xff] }
 0x1d7   : > { %1769 = vperm.xlu1 %5671, %v1543_v10   ;;  %1764 = vperm.xlu0 %5670, %v1542_v11   ;;  %v1044_v10 = vadd.s32 128, %v1043_v5  ;;  %v1563_v11 = vld [vmem:[%s6652_s1 + $0x140] sm:$0xff] }
 0x1db   : > { %1779 = vperm.xlu1 %5671, %v1545_v12   ;;  %1774 = vperm.xlu0 %5670, %v1544_v13   ;;  %v1562_v12 = vld [vmem:[%s6652_s1 + $0x138] sm:$0xff]  ;;  %v6700_v13 = vpop.permute.xlu1 %533 }
 0x1df   : > { %1789 = vperm.xlu1 %5671, %v1547_v14   ;;  %1784 = vperm.xlu0 %5670, %v1546_v15   ;;  %v1049_v14 = vand.u32 15, %v1043_v5  ;;  %v1056_v15 = vand.u32 15, %v1044_v10  ;;  %v1566_v10 = vld [vmem:[%s6652_s1 + $0x158] sm:$0xff] }
 0x1e1   : > { %vm6704_vm4 = vcmp.lt.s32.totalorder %v1049_v14, 15  ;;  %vm6708_vm5 = vcmp.lt.s32.totalorder %v1056_v15, 15  ;;  %vm6714_vm6 = vcmp.ge.s32.totalorder %v1049_v14, 1  ;;  %vm6718_vm7 = vcmp.ge.s32.totalorder %v1056_v15, 1 }
 0x1e3   : > { %1799 = vperm.xlu1 %5671, %v1549_v16   ;;  %1794 = vperm.xlu0 %5670, %v1548_v47   ;;  %v1565_v16 = vld [vmem:[%s6652_s1 + $0x150] sm:$0xff]  ;;  %v1564_v47 = vld [vmem:[%s6652_s1 + $0x148] sm:$0xff] }
 0x1e7   : > { %1809 = vperm.xlu1 %5671, %v1551_v48   ;;  %1804 = vperm.xlu0 %5670, %v1550_v49  }
 0x1eb   : > { %1819 = vperm.xlu1 %5671, %v1553_v50   ;;  %1814 = vperm.xlu0 %5670, %v1552_v54  }
 0x1ef   : > { %1829 = vperm.xlu1 %5671, %v1555_v56   ;;  %1824 = vperm.xlu0 %5670, %v1554_v58  }
 0x1f3   : > { %1839 = vperm.xlu1 %5671, %v1557_v59   ;;  %1834 = vperm.xlu0 %5670, %v1556_v52  }
 0x1f7   : > { %1849 = vperm.xlu1 %5671, %v1559_v0   ;;  %1844 = vperm.xlu0 %5670, %v1558_v2  }
 0x1fb   : > { %1859 = vperm.xlu1 %5671, %v1561_v8   ;;  %1854 = vperm.xlu0 %5670, %v1560_v9   ;;  %v1567_v9 = vld [vmem:[%s6652_s1 + $0x160] sm:$0xff] }
 0x1ff   : > { %1869 = vperm.xlu1 %5671, %v1563_v11   ;;  %1864 = vperm.xlu0 %5670, %v1562_v12  }
 0x201   : > { %v5679_v48 = vpop.permute.xlu1 %5678  ;;  %v5674_v49 = vpop.permute.xlu0 %5673 }
 0x202   : > { %v5681_v50 = vunpack.i.h.bf16 %v5679_v48  ;;  %v5680_v54 = vunpack.i.l.bf16 %v5679_v48  ;;  %v5676_v56 = vunpack.i.h.bf16 %v5674_v49  ;;  %v5675_v58 = vunpack.i.l.bf16 %v5674_v49 }
 0x203   : > { %1879 = vperm.xlu1 %5671, %v1565_v16   ;;  %1874 = vperm.xlu0 %5670, %v1564_v47  }
 0x204   : > { %v1129_v0 = vsel %vm1128_vm3, %v5676_v56, %v5675_v58  ;;  %v1132_v2 = vsel %vm1128_vm3, %v5675_v58, 0.0  ;;  %v6725_v11 = vsel %vm1094_vm2, 0.0, %v5680_v54  ;;  %v1095_v14 = vsel %vm1094_vm2, %v5680_v54, %v5681_v50 }
 0x205   : > { %v5689_v12 = vpop.permute.xlu1 %5688  ;;  %v5684_v16 = vpop.permute.xlu0 %5683  ;;  %v1133_v15 = vsel %vm6704_vm4, %v1129_v0, 0.0  ;;  %v1134_v49 = vsel %vm6708_vm5, %v1132_v2, 0.0  ;;  %v1166_v1 = vrot.slane %v6725_v11, 6  ;;  %v1167_v50 = vrot.slane %v1095_v14, 6 }
 0x206   : > { %v5691_v47 = vunpack.i.h.bf16 %v5689_v12  ;;  %v5690_v48 = vunpack.i.l.bf16 %v5689_v12  ;;  %v5686_v56 = vunpack.i.h.bf16 %v5684_v16  ;;  %v5685_v58 = vunpack.i.l.bf16 %v5684_v16 }
 0x207   : > { %1889 = vperm.xlu1 %5671, %v1567_v9   ;;  %1884 = vperm.xlu0 %5670, %v1566_v10   ;;  %v1184_v9 = vrot.slane %v1133_v15, 6  ;;  %v1185_v10 = vrot.slane %v1134_v49, 6  ;;  %v1571_v15 = vld [vmem:[%s6652_s1 + $0x180] sm:$0xff]  ;;  %v1570_v49 = vld [vmem:[%s6652_s1 + $0x178] sm:$0xff] }
 0x208   : > { %v1143_v21 = vsel %vm1139_vm8, %v5690_v48, 0.0  ;;  %v1140_v54 = vsel %vm1139_vm8, %v5691_v47, %v5690_v48  ;;  %v1103_v0 = vsel %vm1102_vm9, %v5685_v58, %v5686_v56  ;;  %v1106_v12 = vsel %vm1102_vm9, 0.0, %v5685_v58 }
 0x209   : > { %v5699_v2 = vpop.permute.xlu1 %5698  ;;  %v5694_v16 = vpop.permute.xlu0 %5693  ;;  %v1145_v39 = vsel %vm6718_vm7, %v1143_v21, 0.0  ;;  %v1111_v14 = vsel %vm6704_vm4, %v1106_v12, 0.0  ;;  %v1144_v56 = vsel %vm6714_vm6, %v1140_v54, 0.0 }
 0x20a   : > { %v5701_v11 = vunpack.i.h.bf16 %v5699_v2  ;;  %v5700_v63 = vunpack.i.l.bf16 %v5699_v2  ;;  %v5696_v47 = vunpack.i.h.bf16 %v5694_v16  ;;  %v5695_v48 = vunpack.i.l.bf16 %v5694_v16 }
 0x20b   : > { %1899 = vperm.xlu1 %5671, %v1569_v22   ;;  %1894 = vperm.xlu0 %5670, %v1568_v60   ;;  %v1112_v2 = vsel %vm6708_vm5, %v1103_v0, 0.0  ;;  %v1191_v16 = vrot.slane %v1145_v39, 4  ;;  %v1172_v17 = vrot.slane %v1111_v14, 4 }
 0x20c   : > { %v1121_v58 = vsel %vm1117_vm10, 0.0, %v5700_v63  ;;  %v1118_v40 = vsel %vm1117_vm10, %v5700_v63, %v5701_v11  ;;  %v1080_v12 = vsel %vm1079_vm11, %v5695_v48, %v5696_v47  ;;  %v1083_v60 = vsel %vm1079_vm11, 0.0, %v5695_v48  ;;  %v1573_v48 = vld [vmem:[%s6652_s1 + $0x190] sm:$0xff] }
 0x20d   : > { %v1122_v21 = vsel %vm6714_vm6, %v1121_v58, 0.0  ;;  %v5704_v22 = vpop.permute.xlu0 %5703  ;;  %v1123_v54 = vsel %vm6718_vm7, %v1118_v40, 0.0  ;;  %v1088_v0 = vsel %vm6714_vm6, %v1083_v60, 0.0  ;;  %v1089_v11 = vsel %vm6718_vm7, %v1080_v12, 0.0  ;;  %v1157_v12 = vpop.permute.xlu1 %1156 }
 0x20e   : > { %v5706_v18 = vunpack.i.h.bf16 %v5704_v22  ;;  %v5705_v63 = vunpack.i.l.bf16 %v5704_v22  ;;  %v1173_v47 = vrot.slane %v1112_v2, 4  ;;  %v1190_v58 = vrot.slane %v1144_v56, 4 }
 0x20f   : > { %1909 = vperm.xlu1 %5671, %v1571_v15   ;;  %1904 = vperm.xlu0 %5670, %v1570_v49   ;;  %v1178_v61 = vrot.slane %v1122_v21, 2  ;;  %v1179_v42 = vrot.slane %v1123_v54, 2  ;;  %v1200_v40 = vsel %vm736_vm0, %v1089_v11, %v1167_v50  ;;  %v1199_v39 = vsel %vm736_vm0, %v1088_v0, %v1166_v1  ;;  %v1575_v54 = vld [vmem:[%s6652_s1 + $0x1a0] sm:$0xff]  ;;  %v1576_v11 = vld [vmem:[%s6652_s1 + $0x1a8] sm:$0xff] }
 0x210   : > { %v1153_v14 = vsel %vm1150_vm12, %v5705_v63, 0.0  ;;  %v1203_v60 = vsel %vm1201_vm13, %v1200_v40, %v1173_v47  ;;  %v1151_v15 = vsel %vm1150_vm12, %v5706_v18, %v5705_v63  ;;  %v1202_v49 = vsel %vm1201_vm13, %v1199_v39, %v1172_v17  ;;  %v1577_v63 = vld [vmem:[%s6652_s1 + $0x1b0] sm:$0xff]  ;;  %v1213_v47 = vld [vmem:[%s8992_s3] sm:$0x3] }
 0x211   : > { %v1196_v2 = vrot.slane %v1153_v14, 2  ;;  %v1208_v56 = vsel %vm736_vm0, %v6609_v57, %v1185_v10  ;;  %v1195_v21 = vrot.slane %v1151_v15, 2  ;;  %v1207_v50 = vsel %vm736_vm0, %v6607_v55, %v1184_v9  ;;  %v1155_v55 = vpop.permute.xlu0 %1154  ;;  %v1574_v9 = vld [vmem:[%s6652_s1 + $0x198] sm:$0xff]  ;;  %v1579_v40 = vld [vmem:[%s6652_s1 + $0x1c0] sm:$0xff] }
 0x212   : > { %v1210_v1 = vsel %vm1201_vm13, %v1208_v56, %v1191_v16  ;;  %v1209_v22 = vsel %vm1201_vm13, %v1207_v50, %v1190_v58  ;;  %v1206_v18 = vsel %vm1204_vm14, %v1203_v60, %v1179_v42  ;;  %v1205_v0 = vsel %vm1204_vm14, %v1202_v49, %v1178_v61  ;;  %v5749_v58 = vld [vmem:[%s6527_s16 + $0x1f4] ss:$8 sps:$4 sm:$0xff]  }
 0x213   : > { %1919 = vperm.xlu1 %5671, %v1573_v48   ;;  %1914 = vperm.xlu0 %5670, %v1572_v62   ;;  %v1212_v17 = vsel %vm1204_vm14, %v1210_v1, %v1196_v2  ;;  %v1211_v57 = vsel %vm1204_vm14, %v1209_v22, %v1195_v21  ;;  %v1162_v10 = vsel %vm1158_vm15, %v1157_v12, 0.0  ;;  %v1159_v42 = vsel %vm1158_vm15, %v1155_v55, %v1157_v12  ;;  %v1578_v14 = vld [vmem:[%s6652_s1 + $0x1b8] sm:$0xff]  ;;  %v1580_v21 = vld [vmem:[%s6652_s1 + $0x1c8] sm:$0xff] }
 0x214   : > { %v5532_v62 = vpack.c.bf16 %v1212_v17, %v1206_v18  ;;  %v5534_v16 = vpack.c.bf16 %v1211_v57, %v1205_v0  ;;  %v1164_v61 = vsel %vm6708_vm5, %v1162_v10, 0.0  ;;  %v1163_v48 = vsel %vm6704_vm4, %v1159_v42, 0.0  ;;  %v1585_v42 = vld [vmem:[%s6652_s1 + $0x1f0] sm:$0xff] }
 0x215   : > { %v898_v39 = vadd.f32 %v6571_v23, %v6700_v13  ;;  %v900_v60 = vadd.f32 %v6573_v26, %v6700_v13 }
 0x216   : > { %5533 = vmatprep.subr.bf16.mxu1 %v5532_v62 }
 0x217   : > { %1929 = vperm.xlu1 %5671, %v1575_v54   ;;  %1924 = vperm.xlu0 %5670, %v1574_v9   ;;  %v992_v23 = vmax.f32 %v898_v39, 0.0  ;;  %v993_v50 = vmax.f32 %v900_v60, 0.0  ;;  %v1583_v54 = vld [vmem:[%s6652_s1 + $0x1e0] sm:$0xff] }
 0x218   : > { %5535 = vmatpush1.bf16.msra.mxu1 %v5534_v16 }
 0x219   : > { %5335 = vmatprep.subr.msk.mxu1 %vm736_vm0, %v1164_v61 }
 0x21b   : > { %1939 = vperm.xlu1 %5671, %v1577_v63   ;;  %1934 = vperm.xlu0 %5670, %v1576_v11  }
 0x21c   : > { %5336 = vmatpush1.msk.msra.mxu1 %vm736_vm0, %v1163_v48 }
 0x21d   : > { %5337 = vmatmul.mubr.msk.f32.vlgmr.msra.gmra.mrb[0].mxu1 %vm1220_vm1, %v1213_v47  ;;  %5536 = vmatprep.subr.bf16.mxu1 %v6490_v4  ;;  %v1581_v4 = vld [vmem:[%s6652_s1 + $0x1d0] sm:$0xff] }
 0x21e   : > { %5552 = vmatpush1.bf16.msra.mxu1 %v6488_v3  ;;  %v539_v15 = vpop.permute.xlu1 %538  ;;  %3449 = vmatprep.mubr.bf16.mxu1 %v5749_v58 }
 0x21f   : > { %v902_v49 = vadd.f32 %v6575_v27, %v539_v15  ;;  %v904_v12 = vadd.f32 %v6578_v28, %v539_v15  ;;  %5537 = vmatprep.subr.bf16.mxu1 %v6496_v20  ;;  %1949 = vperm.xlu1 %5671, %v1579_v40  }
 0x220   : > { %1944 = vperm.xlu0 %5670, %v1578_v14  }
 0x221   : > { %v994_v2 = vmax.f32 %v902_v49, 0.0  ;;  %v995_v56 = vmax.f32 %v904_v12, 0.0  ;;  %v1588_v49 = vld [vmem:[%s6652_s1 + $0x208] sm:$0xff]  ;;  %v5735_v12 = vld [vmem:[%s6527_s16 + $0x14] ss:$8 sps:$4 sm:$0xff]  }
 0x222   : > { %5553 = vmatpush1.bf16.msra.mxu1 %v6494_v19  ;;  %v549_v3 = vpop.permute.xlu1 %548  ;;  %v544_v26 = vpop.permute.xlu0 %543 }
 0x223   : > { %v6809_v13 = vpack.c.bf16 %v994_v2, %v992_v23  ;;  %v912_v27 = vadd.f32 %v6585_v31, %v549_v3  ;;  %v914_v28 = vadd.f32 %v6587_v32, %v549_v3  ;;  %v908_v20 = vadd.f32 %v6581_v29, %v544_v26  ;;  %5538 = vmatprep.subr.bf16.mxu1 %v6502_v36  ;;  %v1582_v32 = vld [vmem:[%s6652_s1 + $0x1d8] sm:$0xff]  ;;  %v1591_v23 = vld [vmem:[%s6652_s1 + $0x220] sm:$0xff] }
 0x224   : > { %v910_v1 = vadd.f32 %v6583_v30, %v544_v26  ;;  %1959 = vperm.xlu1 %5671, %v1581_v4   ;;  %1954 = vperm.xlu0 %5670, %v1580_v21   ;;  %v6816_v22 = vpack.c.bf16 %v995_v56, %v993_v50  ;;  %v9243_v2 = vld [vmem:[#allocation9_spill] sm:$0xff]  ;;  %v1590_v4 = vld [vmem:[%s6652_s1 + $0x218] sm:$0xff]  ;;  %v1593_v21 = vld [vmem:[%s6652_s1 + $0x230] sm:$0xff] }
 0x225   : > { %v998_v19 = vmax.f32 %v912_v27, 0.0  ;;  %v999_v18 = vmax.f32 %v914_v28, 0.0  ;;  %v996_v17 = vmax.f32 %v908_v20, 0.0  ;;  %v9245_v50 = vld [vmem:[#allocation10_spill] sm:$0xff]  ;;  %v9246_v28 = vld [vmem:[#allocation13_spill] sm:$0xff] }
 0x226   : > { %v997_v0 = vmax.f32 %v910_v1, 0.0  ;;  %5554 = vmatpush1.bf16.msra.mxu1 %v6500_v35  ;;  %3131 = vmatprep.subr.bf16.mxu0 %v6816_v22  ;;  %v559_v31 = vpop.permute.xlu1 %558  ;;  %v554_v29 = vpop.permute.xlu0 %553  ;;  %v1592_v27 = vld [vmem:[%s6652_s1 + $0x228] sm:$0xff]  ;;  %v5737_v20 = vld [vmem:[%s6527_s16 + $0x10] ss:$8 sps:$4 sm:$0xff]  }
 0x227   : > { %v6822_v36 = vpack.c.bf16 %v998_v19, %v996_v17  ;;  %v922_v30 = vadd.f32 %v6593_v37, %v559_v31  ;;  %v924_v57 = vadd.f32 %v6595_v38, %v559_v31  ;;  %v918_v10 = vadd.f32 %v6589_v33, %v554_v29  ;;  %5539 = vmatprep.subr.bf16.mxu1 %v6510_v53  ;;  %v1584_v38 = vld [vmem:[%s6652_s1 + $0x1e8] sm:$0xff]  ;;  %v1595_v19 = vld [vmem:[%s6652_s1 + $0x240] sm:$0xff]  ;;  %v9248_v31 = vld [vmem:[#allocation15_spill] sm:$0xff] }
 0x228   : > { %v920_v55 = vadd.f32 %v6591_v34, %v554_v29  ;;  %3132 = vmatpush1.bf16.msra.mxu0 %v6809_v13  ;;  %1969 = vperm.xlu1 %5671, %v1583_v54   ;;  %v6830_v35 = vpack.c.bf16 %v999_v18, %v997_v0  ;;  %v5738_v1 = vld [vmem:[%s6527_s16 + $0x24] ss:$8 sps:$4 sm:$0xff]   ;;  %v9247_v18 = vld [vmem:[#allocation12_spill] sm:$0xff]  ;;  %v1597_v29 = vld [vmem:[%s6652_s1 + $0x250] sm:$0xff] }
 0x229   : > { %v1002_v62 = vmax.f32 %v922_v30, 0.0  ;;  %v1003_v9 = vmax.f32 %v924_v57, 0.0  ;;  %v1000_v16 = vmax.f32 %v918_v10, 0.0  ;;  %1964 = vperm.xlu0 %5670, %v1582_v32   ;;  %v1594_v0 = vld [vmem:[%s6652_s1 + $0x238] sm:$0xff]  ;;  %v9249_v32 = vld [vmem:[#allocation14_spill] sm:$0xff] }
 0x22a   : > { %v1001_v37 = vmax.f32 %v920_v55, 0.0  ;;  %5555 = vmatpush1.bf16.msra.mxu1 %v6506_v51  ;;  %3133 = vmatprep.subr.bf16.mxu0 %v6830_v35  ;;  %v569_v33 = vpop.permute.xlu1 %568  ;;  %v564_v53 = vpop.permute.xlu0 %563  ;;  %v1596_v10 = vld [vmem:[%s6652_s1 + $0x248] sm:$0xff]  ;;  %v9250_v55 = vld [vmem:[#allocation17_spill] sm:$0xff] }
 0x22b   : > { %v6836_v34 = vpack.c.bf16 %v1002_v62, %v1000_v16  ;;  %v932_v61 = vadd.f32 %v6601_v45, %v569_v33  ;;  %v934_v63 = vadd.f32 %v6603_v46, %v569_v33  ;;  %v928_v11 = vadd.f32 %v6597_v41, %v564_v53  ;;  %5540 = vmatprep.subr.bf16.mxu1 %v6520_v7  ;;  %v1587_v45 = vld [vmem:[%s6652_s1 + $0x200] sm:$0xff] }
 0x22c   : > { %v930_v47 = vadd.f32 %v6599_v44, %v564_v53  ;;  %3134 = vmatpush1.bf16.msra.mxu0 %v6822_v36  ;;  %1979 = vperm.xlu1 %5671, %v1585_v42   ;;  %v6844_v51 = vpack.c.bf16 %v1003_v9, %v1001_v37  ;;  %v1586_v44 = vld [vmem:[%s6652_s1 + $0x1f8] sm:$0xff]  ;;  %v5740_v62 = vld [vmem:[%s6527_s16 + $0x20] ss:$8 sps:$4 sm:$0xff]  }
 0x22d   : > { %v1006_v58 = vmax.f32 %v932_v61, 0.0  ;;  %v1007_v48 = vmax.f32 %v934_v63, 0.0  ;;  %v1004_v40 = vmax.f32 %v928_v11, 0.0  ;;  %1974 = vperm.xlu0 %5670, %v1584_v38   ;;  %v5741_v9 = vld [vmem:[%s6527_s16 + $0x34] ss:$8 sps:$4 sm:$0xff]   ;;  %v1599_v16 = vld [vmem:[%s6652_s1 + $0x260] sm:$0xff] }
 0x22e   : > { %v1005_v39 = vmax.f32 %v930_v47, 0.0  ;;  %5556 = vmatpush1.bf16.msra.mxu1 %v6517_v6  ;;  %3135 = vmatprep.subr.bf16.mxu0 %v6844_v51  ;;  %v6849_v7 = vpop.permute.xlu1 %1669  ;;  %v6851_v41 = vpop.permute.xlu0 %1217  ;;  %v1589_v6 = vld [vmem:[%s6652_s1 + $0x210] sm:$0xff]  ;;  %v9251_v42 = vld [vmem:[#allocation16_spill] sm:$0xff]  ;;  %v9253_v63 = vld [vmem:[#allocation18_spill] sm:$0xff] }
 0x22f   : > { %v6854_v46 = vpack.c.bf16 %v1006_v58, %v1004_v40  ;;  %5541 = vmatprep.subr.bf16.mxu1 %v6533_v25  ;;  %v5732_v25 = vld [vmem:[%s6527_s16] ss:$8 sps:$4 sm:$0xff]   ;;  %v1598_v53 = vld [vmem:[%s6652_s1 + $0x258] sm:$0xff]  ;;  %v9252_v38 = vld [vmem:[#allocation19_spill] sm:$0xff] }
 0x230   : > { %3136 = vmatpush1.bf16.msra.mxu0 %v6836_v34  ;;  %1989 = vperm.xlu1 %5671, %v1587_v45   ;;  %v6858_v14 = vpack.c.bf16 %v1007_v48, %v1005_v39  ;;  %v1601_v61 = vld [vmem:[%s6652_s1 + $0x270] sm:$0xff]  ;;  %v1600_v58 = vld [vmem:[%s6652_s1 + $0x268] sm:$0xff]  ;;  %v1603_v45 = vld [vmem:[%s6652_s1 + $0x280] sm:$0xff] }
 0x231   : > { %1984 = vperm.xlu0 %5670, %v1586_v44   ;;  %v5743_v48 = vld [vmem:[%s6527_s16 + $0x30] ss:$8 sps:$4 sm:$0xff]   ;;  %v5744_v40 = vld [vmem:[%s6527_s16 + $0x44] ss:$8 sps:$4 sm:$0xff]  }
 0x232   : > { %5557 = vmatpush1.bf16.msra.mxu1 %v6531_v24  ;;  %3137 = vmatprep.subr.bf16.mxu0 %v6858_v14  ;;  %v6863_v60 = vpop.permute.xlu1 %1679  ;;  %v6865_v15 = vpop.permute.xlu0 %1674 }
 0x233   : > { %5542 = vmatprep.subr.bf16.mxu1 %v6539_v43  ;;  %v9244_v43 = vld [vmem:[#allocation11_spill] sm:$0xff] }
 0x234   : > { %3138 = vmatpush1.bf16.msra.mxu0 %v6854_v46  ;;  %1999 = vperm.xlu1 %5671, %v1589_v6   ;;  %v1602_v6 = vld [vmem:[%s6652_s1 + $0x278] sm:$0xff] }
 0x235   : > { %1994 = vperm.xlu0 %5670, %v1588_v49  }
 0x236   : > { %5558 = vmatpush1.bf16.msra.mxu1 %v9243_v2  ;;  %v6874_v24 = vpop.permute.xlu1 %1689  ;;  %v6876_v56 = vpop.permute.xlu0 %1684 }
 0x237   : > { %3140 = vmatmul.mubr.bf16.vlgmr.msra.gmra.mrb[68].mxu0 %v5732_v25  ;;  %5543 = vmatprep.subr.bf16.mxu1 %v9244_v43  ;;  %v1604_v25 = vld [vmem:[%s6652_s1 + $0x288] sm:$0xff]  ;;  %v5747_v43 = vld [vmem:[%s6527_s16 + $0x1f0] ss:$8 sps:$4 sm:$0xff]  }
 0x238   : > { %2009 = vperm.xlu1 %5671, %v1591_v23   ;;  %3149 = vmatprep.mubr.bf16.mxu0 %v5735_v12  ;;  %v5746_v12 = vld [vmem:[%s6527_s16 + $0x40] ss:$8 sps:$4 sm:$0xff]   ;;  %v5750_v23 = vld [vmem:[%s6527_s16 + $0x54] ss:$8 sps:$4 sm:$0xff]  }
 0x239   : > { %2004 = vperm.xlu0 %5670, %v1590_v4   ;;  %v1606_v4 = vld [vmem:[%s6652_s1 + $0x298] sm:$0xff] }
 0x23a   : > { %5559 = vmatpush1.bf16.msra.mxu1 %v9245_v50  ;;  %v6882_v3 = vpop.permute.xlu1 %1699  ;;  %v6884_v26 = vpop.permute.xlu0 %1694  ;;  %v1608_v50 = vld [vmem:[%s6652_s1 + $0x2a8] sm:$0xff] }
 0x23b   : > { %5544 = vmatprep.subr.bf16.mxu1 %v9246_v28  ;;  %v5752_v28 = vld [vmem:[%s6527_s16 + $0x50] ss:$8 sps:$4 sm:$0xff]  }
 0x23c   : > { %2019 = vperm.xlu1 %5671, %v1593_v21  }
 0x23d   : > { %2014 = vperm.xlu0 %5670, %v1592_v27   ;;  %v5753_v27 = vld [vmem:[%s6527_s16 + $0x204] ss:$8 sps:$4 sm:$0xff]  }
 0x23e   : > { %5560 = vmatpush1.bf16.msra.mxu1 %v9247_v18  ;;  %v6892_v17 = vpop.permute.xlu1 %1709  ;;  %v6894_v54 = vpop.permute.xlu0 %1704  ;;  %v1613_v18 = vld [vmem:[%s6652_s1 + $0x2d0] sm:$0xff] }
 0x23f   : > { %3150 = vmatmul.mubr.bf16.gmra.mrb[72].mxu0 %v5737_v20  ;;  %5545 = vmatprep.subr.bf16.mxu1 %v9248_v31  ;;  %v1611_v20 = vld [vmem:[%s6652_s1 + $0x2c0] sm:$0xff] }
 0x240   : > { %2029 = vperm.xlu1 %5671, %v1595_v19   ;;  %3159 = vmatprep.mubr.bf16.mxu0 %v5738_v1  ;;  %v1610_v19 = vld [vmem:[%s6652_s1 + $0x2b8] sm:$0xff] }
 0x241   : > { %2024 = vperm.xlu0 %5670, %v1594_v0   ;;  %v5757_v0 = vld [vmem:[%s6527_s16 + $0x200] ss:$8 sps:$4 sm:$0xff]  }
 0x242   : > { %5561 = vmatpush1.bf16.msra.mxu1 %v9249_v32  ;;  %v6900_v30 = vpop.permute.xlu1 %1719  ;;  %v6902_v57 = vpop.permute.xlu0 %1714  ;;  %v1612_v32 = vld [vmem:[%s6652_s1 + $0x2c8] sm:$0xff] }
 0x243   : > { %5546 = vmatprep.subr.bf16.mxu1 %v9250_v55  ;;  %v5758_v55 = vld [vmem:[%s6527_s16 + $0x60] ss:$8 sps:$4 sm:$0xff]  }
 0x244   : > { %2039 = vperm.xlu1 %5671, %v1597_v29  }
 0x245   : > { %2034 = vperm.xlu0 %5670, %v1596_v10   ;;  %v5759_v10 = vld [vmem:[%s6527_s16 + $0x214] ss:$8 sps:$4 sm:$0xff]  }
 0x246   : > { %5562 = vmatpush1.bf16.msra.mxu1 %v9251_v42  ;;  %v6910_v37 = vpop.permute.xlu1 %1729  ;;  %v6912_v33 = vpop.permute.xlu0 %1724 }
 0x247   : > { %3160 = vmatmul.mubr.bf16.gmra.mrb[76].mxu0 %v5740_v62  ;;  %5547 = vmatprep.subr.bf16.mxu1 %v9252_v38  ;;  %v5761_v62 = vld [vmem:[%s6527_s16 + $0x74] ss:$8 sps:$4 sm:$0xff]  }
 0x248   : > { %2049 = vperm.xlu1 %5671, %v1599_v16   ;;  %3169 = vmatprep.mubr.bf16.mxu0 %v5741_v9  ;;  %v1615_v9 = vld [vmem:[%s6652_s1 + $0x2e0] sm:$0xff]  ;;  %v1617_v38 = vld [vmem:[%s6652_s1 + $0x2f0] sm:$0xff] }
 0x249   : > { %2044 = vperm.xlu0 %5670, %v1598_v53   ;;  %v1614_v53 = vld [vmem:[%s6652_s1 + $0x2d8] sm:$0xff] }
 0x24a   : > { %5563 = vmatpush1.bf16.msra.mxu1 %v9253_v63  ;;  %v6918_v11 = vpop.permute.xlu1 %1739  ;;  %v6920_v47 = vpop.permute.xlu0 %1734 }
 0x24b   : > { %5548 = vmatprep.subr.bf16.mxu1 %v6816_v22  ;;  %v1605_v22 = vld [vmem:[%s6652_s1 + $0x290] sm:$0xff] }
 0x24c   : > { %2059 = vperm.xlu1 %5671, %v1601_v61   ;;  %v5763_v61 = vld [vmem:[%s6527_s16 + $0x210] ss:$8 sps:$4 sm:$0xff]  }
 0x24d   : > { %2054 = vperm.xlu0 %5670, %v1600_v58  }
 0x24e   : > { %5564 = vmatpush1.bf16.msra.mxu1 %v6809_v13  ;;  %v6928_v39 = vpop.permute.xlu1 %1749  ;;  %v6930_v44 = vpop.permute.xlu0 %1744 }
 0x24f   : > { %3170 = vmatmul.mubr.bf16.gmra.mrb[80].mxu0 %v5743_v48  ;;  %5549 = vmatprep.subr.bf16.mxu1 %v6830_v35  ;;  %v1607_v35 = vld [vmem:[%s6652_s1 + $0x2a0] sm:$0xff]  ;;  %v1616_v48 = vld [vmem:[%s6652_s1 + $0x2e8] sm:$0xff] }
 0x250   : > { %2069 = vperm.xlu1 %5671, %v1603_v45   ;;  %3179 = vmatprep.mubr.bf16.mxu0 %v5744_v40  ;;  %v5765_v40 = vld [vmem:[%s6527_s16 + $0x224] ss:$8 sps:$4 sm:$0xff]   ;;  %v5764_v45 = vld [vmem:[%s6527_s16 + $0x70] ss:$8 sps:$4 sm:$0xff]  }
 0x251   : > { %2064 = vperm.xlu0 %5670, %v1602_v6   ;;  %v5767_v6 = vld [vmem:[%s6527_s16 + $0x84] ss:$8 sps:$4 sm:$0xff]  }
 0x252   : > { %5565 = vmatpush1.bf16.msra.mxu1 %v6822_v36  ;;  %v6936_v49 = vpop.permute.xlu1 %1759  ;;  %v6938_v13 = vpop.permute.xlu0 %1754 }
 0x253   : > { %5550 = vmatprep.subr.bf16.mxu1 %v6844_v51  ;;  %v1609_v51 = vld [vmem:[%s6652_s1 + $0x2b0] sm:$0xff] }
 0x254   : > { %2079 = vperm.xlu1 %5671, %v1605_v22   ;;  %v1619_v22 = vld [vmem:[%s6652_s1 + $0x300] sm:$0xff] }
 0x255   : > { %2074 = vperm.xlu0 %5670, %v1604_v25  }
 0x256   : > { %5566 = vmatpush1.bf16.msra.mxu1 %v6836_v34  ;;  %v6946_v36 = vpop.permute.xlu1 %1769  ;;  %v6948_v2 = vpop.permute.xlu0 %1764 }
 0x257   : > { %3180 = vmatmul.mubr.bf16.gmra.mrb[84].mxu0 %v5746_v12  ;;  %5551 = vmatprep.subr.bf16.mxu1 %v6858_v14  ;;  %v5755_v14 = vld [vmem:[%s6527_s16 + $0x64] ss:$8 sps:$4 sm:$0xff]  }
 0x258   : > { %2089 = vperm.xlu1 %5671, %v1607_v35   ;;  %3189 = vmatprep.mubr.bf16.mxu0 %v5750_v23  ;;  %v1618_v23 = vld [vmem:[%s6652_s1 + $0x2f8] sm:$0xff]  ;;  %v1621_v35 = vld [vmem:[%s6652_s1 + $0x310] sm:$0xff] }
 0x259   : > { %2084 = vperm.xlu0 %5670, %v1606_v4   ;;  %v5769_v4 = vld [vmem:[%s6527_s16 + $0x220] ss:$8 sps:$4 sm:$0xff]  }
 0x25a   : > { %5567 = vmatpush1.bf16.msra.mxu1 %v6854_v46  ;;  %v6955_v34 = vpop.permute.xlu1 %1779  ;;  %v6957_v21 = vpop.permute.xlu0 %1774 }
 0x25c   : > { %2099 = vperm.xlu1 %5671, %v1609_v51  }
 0x25d   : > { %2094 = vperm.xlu0 %5670, %v1608_v50   ;;  %3450 = vmatmul.mubr.bf16.vlgmr.msra.gmra.mrb[4].mxu1 %v5747_v43  ;;  %v1620_v50 = vld [vmem:[%s6652_s1 + $0x308] sm:$0xff] }
 0x25e   : > { %v6964_v1 = vpop.permute.xlu1 %1789  ;;  %v6966_v46 = vpop.permute.xlu0 %1784  ;;  %3459 = vmatprep.mubr.bf16.mxu1 %v5753_v27  ;;  %v5771_v27 = vld [vmem:[%s6527_s16 + $0x234] ss:$8 sps:$4 sm:$0xff]  }
 0x25f   : > { %3190 = vmatmul.mubr.bf16.gmra.mrb[88].mxu0 %v5752_v28  ;;  %v5770_v28 = vld [vmem:[%s6527_s16 + $0x80] ss:$8 sps:$4 sm:$0xff]  }
 0x260   : > { %2109 = vperm.xlu1 %5671, %v1611_v20   ;;  %3199 = vmatprep.mubr.bf16.mxu0 %v5755_v14  ;;  %v5773_v14 = vld [vmem:[%s6527_s16 + $0x94] ss:$8 sps:$4 sm:$0xff]   ;;  %v1623_v20 = vld [vmem:[%s6652_s1 + $0x320] sm:$0xff] }
 0x261   : > { %2104 = vperm.xlu0 %5670, %v1610_v19  }
 0x262   : > { %v6971_v31 = vpop.permute.xlu1 %1799  ;;  %v6973_v29 = vpop.permute.xlu0 %1794 }
 0x264   : > { %2119 = vperm.xlu1 %5671, %v1613_v18  }
 0x265   : > { %2114 = vperm.xlu0 %5670, %v1612_v32   ;;  %3460 = vmatmul.mubr.bf16.gmra.mrb[8].mxu1 %v5757_v0  ;;  %v1622_v0 = vld [vmem:[%s6652_s1 + $0x318] sm:$0xff]  ;;  %v1625_v32 = vld [vmem:[%s6652_s1 + $0x330] sm:$0xff] }
 0x266   : > { %v6980_v16 = vpop.permute.xlu1 %1809  ;;  %v6982_v42 = vpop.permute.xlu0 %1804  ;;  %3469 = vmatprep.mubr.bf16.mxu1 %v5759_v10  ;;  %v5775_v10 = vld [vmem:[%s6527_s16 + $0x230] ss:$8 sps:$4 sm:$0xff]  }
 0x267   : > { %9254 = vst [vmem:[#allocation9_spill] sm:$0xff] %v6980_v16  ;;  %3200 = vmatmul.mubr.bf16.gmra.mrb[92].mxu0 %v5758_v55 }
 0x268   : > { %2129 = vperm.xlu1 %5671, %v1615_v9   ;;  %3209 = vmatprep.mubr.bf16.mxu0 %v5761_v62  ;;  %v1624_v9 = vld [vmem:[%s6652_s1 + $0x328] sm:$0xff] }
 0x269   : > { %2124 = vperm.xlu0 %5670, %v1614_v53   ;;  %v5777_v53 = vld [vmem:[%s6527_s16 + $0x244] ss:$8 sps:$4 sm:$0xff]  }
 0x26a   : > { %v6987_v63 = vpop.permute.xlu1 %1819  ;;  %v6989_v58 = vpop.permute.xlu0 %1814 }
 0x26b   : > { %9255 = vst [vmem:[#allocation11_spill] sm:$0xff] %v6987_v63  ;;  %9256 = vst [vmem:[#allocation10_spill] sm:$0xff] %v6989_v58 }
 0x26c   : > { %2139 = vperm.xlu1 %5671, %v1617_v38   ;;  %v5776_v38 = vld [vmem:[%s6527_s16 + $0x90] ss:$8 sps:$4 sm:$0xff]  }
 0x26d   : > { %2134 = vperm.xlu0 %5670, %v1616_v48   ;;  %3470 = vmatmul.mubr.bf16.gmra.mrb[12].mxu1 %v5763_v61  ;;  %v5779_v61 = vld [vmem:[%s6527_s16 + $0xa4] ss:$8 sps:$4 sm:$0xff]  }
 0x26e   : > { %v6996_v25 = vpop.permute.xlu1 %1829  ;;  %v6998_v12 = vpop.permute.xlu0 %1824  ;;  %3479 = vmatprep.mubr.bf16.mxu1 %v5765_v40  ;;  %v1627_v48 = vld [vmem:[%s6652_s1 + $0x340] sm:$0xff] }
 0x26f   : > { %9257 = vst [vmem:[#allocation13_spill] sm:$0xff] %v6996_v25  ;;  %9258 = vst [vmem:[#allocation12_spill] sm:$0xff] %v6998_v12  ;;  %3210 = vmatmul.mubr.bf16.gmra.mrb[96].mxu0 %v5764_v45  ;;  %v5842_v12 = vld [vmem:[%s6527_s16 + $0x140] ss:$8 sps:$4 sm:$0xff]  }
 0x270   : > { %2149 = vperm.xlu1 %5671, %v1619_v22   ;;  %3219 = vmatprep.mubr.bf16.mxu0 %v5767_v6  ;;  %v1626_v6 = vld [vmem:[%s6652_s1 + $0x338] sm:$0xff]  ;;  %v1629_v22 = vld [vmem:[%s6652_s1 + $0x350] sm:$0xff] }
 0x271   : > { %2144 = vperm.xlu0 %5670, %v1618_v23   ;;  %v5781_v23 = vld [vmem:[%s6527_s16 + $0x240] ss:$8 sps:$4 sm:$0xff]  }
 0x272   : > { %v7003_v51 = vpop.permute.xlu1 %1839  ;;  %v7005_v43 = vpop.permute.xlu0 %1834 }
 0x273   : > { %9259 = vst [vmem:[#allocation15_spill] sm:$0xff] %v7003_v51  ;;  %9260 = vst [vmem:[#allocation14_spill] sm:$0xff] %v7005_v43  ;;  %v5837_v51 = vld [vmem:[%s6527_s16 + $0x2e4] ss:$8 sps:$4 sm:$0xff]  }
 0x274   : > { %2159 = vperm.xlu1 %5671, %v1621_v35  }
 0x275   : > { %2154 = vperm.xlu0 %5670, %v1620_v50   ;;  %3480 = vmatmul.mubr.bf16.gmra.mrb[16].mxu1 %v5769_v4  ;;  %v1628_v50 = vld [vmem:[%s6652_s1 + $0x348] sm:$0xff] }
 0x276   : > { %v7012_v19 = vpop.permute.xlu1 %1849  ;;  %v7014_v18 = vpop.permute.xlu0 %1844  ;;  %3489 = vmatprep.mubr.bf16.mxu1 %v5771_v27  ;;  %v5783_v27 = vld [vmem:[%s6527_s16 + $0x254] ss:$8 sps:$4 sm:$0xff]  }
 0x277   : > { %9261 = vst [vmem:[#allocation17_spill] sm:$0xff] %v7012_v19  ;;  %9262 = vst [vmem:[#allocation16_spill] sm:$0xff] %v7014_v18  ;;  %3220 = vmatmul.mubr.bf16.gmra.mrb[100].mxu0 %v5770_v28  ;;  %v5782_v28 = vld [vmem:[%s6527_s16 + $0xa0] ss:$8 sps:$4 sm:$0xff]   ;;  %v5835_v18 = vld [vmem:[%s6527_s16 + $0x2d0] ss:$8 sps:$4 sm:$0xff]  }
 0x278   : > { %2169 = vperm.xlu1 %5671, %v1623_v20   ;;  %3229 = vmatprep.mubr.bf16.mxu0 %v5773_v14  ;;  %v5785_v14 = vld [vmem:[%s6527_s16 + $0xb4] ss:$8 sps:$4 sm:$0xff]   ;;  %v1631_v20 = vld [vmem:[%s6652_s1 + $0x360] sm:$0xff] }
 0x279   : > { %2164 = vperm.xlu0 %5670, %v1622_v0  }
 0x27a   : > { %v7019_v55 = vpop.permute.xlu1 %1859  ;;  %v7021_v62 = vpop.permute.xlu0 %1854 }
 0x27b   : > { %9263 = vst [vmem:[#allocation19_spill] sm:$0xff] %v7019_v55  ;;  %9264 = vst [vmem:[#allocation18_spill] sm:$0xff] %v7021_v62  ;;  %v1660_v55 = vld [vmem:[%s6652_s1 + $0x448] sm:$0xff] }
 0x27c   : > { %2179 = vperm.xlu1 %5671, %v1625_v32  }
 0x27d   : > { %2174 = vperm.xlu0 %5670, %v1624_v9   ;;  %3490 = vmatmul.mubr.bf16.gmra.mrb[20].mxu1 %v5775_v10  ;;  %v1630_v10 = vld [vmem:[%s6652_s1 + $0x358] sm:$0xff]  ;;  %v1633_v9 = vld [vmem:[%s6652_s1 + $0x370] sm:$0xff] }
 0x27e   : > { %v7028_v40 = vpop.permute.xlu1 %1869  ;;  %v7030_v45 = vpop.permute.xlu0 %1864  ;;  %3499 = vmatprep.mubr.bf16.mxu1 %v5777_v53  ;;  %v5787_v53 = vld [vmem:[%s6527_s16 + $0x250] ss:$8 sps:$4 sm:$0xff]  }
 0x27f   : > { %9265 = vst [vmem:[#allocation20_spill] sm:$0xff] %v7028_v40  ;;  %9266 = vst [vmem:[#allocation21_spill] sm:$0xff] %v7030_v45  ;;  %3230 = vmatmul.mubr.bf16.gmra.mrb[104].mxu0 %v5776_v38  ;;  %v5829_v45 = vld [vmem:[%s6527_s16 + $0x2c0] ss:$8 sps:$4 sm:$0xff]  }
 0x280   : > { %2189 = vperm.xlu1 %5671, %v1627_v48   ;;  %3239 = vmatprep.mubr.bf16.mxu0 %v5779_v61  ;;  %v1632_v48 = vld [vmem:[%s6652_s1 + $0x368] sm:$0xff] }
 0x281   : > { %2184 = vperm.xlu0 %5670, %v1626_v6   ;;  %v5789_v6 = vld [vmem:[%s6527_s16 + $0x264] ss:$8 sps:$4 sm:$0xff]  }
 0x282   : > { %v7035_v35 = vpop.permute.xlu1 %1879  ;;  %v7037_v4 = vpop.permute.xlu0 %1874 }
 0x283   : > { %9267 = vst [vmem:[#allocation22_spill] sm:$0xff] %v7035_v35  ;;  %9268 = vst [vmem:[#allocation23_spill] sm:$0xff] %v7037_v4  ;;  %v1656_v35 = vld [vmem:[%s6652_s1 + $0x428] sm:$0xff] }
 0x284   : > { %2199 = vperm.xlu1 %5671, %v1629_v22   ;;  %v5788_v22 = vld [vmem:[%s6527_s16 + $0xb0] ss:$8 sps:$4 sm:$0xff]  }
 0x285   : > { %2194 = vperm.xlu0 %5670, %v1628_v50   ;;  %3500 = vmatmul.mubr.bf16.gmra.mrb[24].mxu1 %v5781_v23  ;;  %v5791_v23 = vld [vmem:[%s6527_s16 + $0xc4] ss:$8 sps:$4 sm:$0xff]  }
 0x286   : > { %v7044_v0 = vpop.permute.xlu1 %1889  ;;  %v7046_v32 = vpop.permute.xlu0 %1884  ;;  %3509 = vmatprep.mubr.bf16.mxu1 %v5783_v27  ;;  %v1635_v50 = vld [vmem:[%s6652_s1 + $0x380] sm:$0xff] }
 0x287   : > { %9269 = vst [vmem:[#allocation24_spill] sm:$0xff] %v7044_v0  ;;  %9270 = vst [vmem:[#allocation25_spill] sm:$0xff] %v7046_v32  ;;  %3240 = vmatmul.mubr.bf16.gmra.mrb[108].mxu0 %v5782_v28  ;;  %v5823_v32 = vld [vmem:[%s6527_s16 + $0x2b0] ss:$8 sps:$4 sm:$0xff]  }
 0x288   : > { %2209 = vperm.xlu1 %5671, %v1631_v20   ;;  %3249 = vmatprep.mubr.bf16.mxu0 %v5785_v14  ;;  %v1634_v14 = vld [vmem:[%s6652_s1 + $0x378] sm:$0xff]  ;;  %v1637_v20 = vld [vmem:[%s6652_s1 + $0x390] sm:$0xff] }
 0x289   : > { %2204 = vperm.xlu0 %5670, %v1630_v10   ;;  %v5793_v10 = vld [vmem:[%s6527_s16 + $0x260] ss:$8 sps:$4 sm:$0xff]  }
 0x28a   : > { %v7051_v38 = vpop.permute.xlu1 %1899  ;;  %v7053_v61 = vpop.permute.xlu0 %1894 }
 0x28b   : > { %9271 = vst [vmem:[#allocation26_spill] sm:$0xff] %v7051_v38  ;;  %9272 = vst [vmem:[#allocation27_spill] sm:$0xff] %v7053_v61  ;;  %v5794_v38 = vld [vmem:[%s6527_s16 + $0xc0] ss:$8 sps:$4 sm:$0xff]  }
 0x28c   : > { %2219 = vperm.xlu1 %5671, %v1633_v9  }
 0x28d   : > { %2214 = vperm.xlu0 %5670, %v1632_v48   ;;  %3510 = vmatmul.mubr.bf16.gmra.mrb[28].mxu1 %v5787_v53  ;;  %v1636_v48 = vld [vmem:[%s6652_s1 + $0x388] sm:$0xff] }
 0x28e   : > { %v7060_v27 = vpop.permute.xlu1 %1909  ;;  %v7062_v28 = vpop.permute.xlu0 %1904  ;;  %3519 = vmatprep.mubr.bf16.mxu1 %v5789_v6  ;;  %v5797_v6 = vld [vmem:[%s6527_s16 + $0xd4] ss:$8 sps:$4 sm:$0xff]  }
 0x28f   : > { %9273 = vst [vmem:[#allocation28_spill] sm:$0xff] %v7060_v27  ;;  %9274 = vst [vmem:[#allocation29_spill] sm:$0xff] %v7062_v28  ;;  %3250 = vmatmul.mubr.bf16.gmra.mrb[112].mxu0 %v5788_v22  ;;  %v5795_v27 = vld [vmem:[%s6527_s16 + $0x274] ss:$8 sps:$4 sm:$0xff]   ;;  %v1639_v22 = vld [vmem:[%s6652_s1 + $0x3a0] sm:$0xff] }
 0x290   : > { %2229 = vperm.xlu1 %5671, %v1635_v50   ;;  %3259 = vmatprep.mubr.bf16.mxu0 %v5791_v23  ;;  %v1638_v50 = vld [vmem:[%s6652_s1 + $0x398] sm:$0xff] }
 0x291   : > { %2224 = vperm.xlu0 %5670, %v1634_v14  }
 0x292   : > { %v7067_v9 = vpop.permute.xlu1 %1919  ;;  %v7069_v53 = vpop.permute.xlu0 %1914 }
 0x293   : > { %9275 = vst [vmem:[#allocation30_spill] sm:$0xff] %v7067_v9  ;;  %9276 = vst [vmem:[#allocation31_spill] sm:$0xff] %v7069_v53  ;;  %v5799_v9 = vld [vmem:[%s6527_s16 + $0x270] ss:$8 sps:$4 sm:$0xff]  }
 0x294   : > { %2239 = vperm.xlu1 %5671, %v1637_v20   ;;  %v1641_v20 = vld [vmem:[%s6652_s1 + $0x3b0] sm:$0xff] }
 0x295   : > { %2234 = vperm.xlu0 %5670, %v1636_v48   ;;  %3520 = vmatmul.mubr.bf16.gmra.mrb[32].mxu1 %v5793_v10  ;;  %v1640_v10 = vld [vmem:[%s6652_s1 + $0x3a8] sm:$0xff] }
 0x296   : > { %v7076_v23 = vpop.permute.xlu1 %1929  ;;  %3529 = vmatprep.mubr.bf16.mxu1 %v5795_v27  ;;  %v7079_v14 = vpop.permute.xlu0 %1924  ;;  %v5801_v48 = vld [vmem:[%s6527_s16 + $0x284] ss:$8 sps:$4 sm:$0xff]  }
 0x297   : > { %9277 = vst [vmem:[#allocation32_spill] sm:$0xff] %v7076_v23  ;;  %3260 = vmatmul.mubr.bf16.gmra.mrb[116].mxu0 %v5794_v38  ;;  %9278 = vst [vmem:[#allocation33_spill] sm:$0xff] %v7079_v14  ;;  %v5800_v23 = vld [vmem:[%s6527_s16 + $0xd0] ss:$8 sps:$4 sm:$0xff]   ;;  %v5803_v38 = vld [vmem:[%s6527_s16 + $0xe4] ss:$8 sps:$4 sm:$0xff]  }
 0x298   : > { %2249 = vperm.xlu1 %5671, %v1639_v22   ;;  %3269 = vmatprep.mubr.bf16.mxu0 %v5797_v6  ;;  %v1643_v27 = vld [vmem:[%s6652_s1 + $0x3c0] sm:$0xff]  ;;  %v1642_v22 = vld [vmem:[%s6652_s1 + $0x3b8] sm:$0xff] }
 0x299   : > { %2244 = vperm.xlu0 %5670, %v1638_v50  }
 0x29a   : > { %v7083_v53 = vpop.permute.xlu1 %1939  ;;  %v7087_v28 = vpop.permute.xlu0 %1934 }
 0x29b   : > { %9279 = vst [vmem:[#allocation34_spill] sm:$0xff] %v7083_v53  ;;  %9280 = vst [vmem:[#allocation35_spill] sm:$0xff] %v7087_v28  ;;  %v5805_v53 = vld [vmem:[%s6527_s16 + $0x280] ss:$8 sps:$4 sm:$0xff]  }
 0x29c   : > { %2259 = vperm.xlu1 %5671, %v1641_v20   ;;  %v1645_v20 = vld [vmem:[%s6652_s1 + $0x3d0] sm:$0xff]  ;;  %v1644_v28 = vld [vmem:[%s6652_s1 + $0x3c8] sm:$0xff] }
 0x29d   : > { %2254 = vperm.xlu0 %5670, %v1640_v10   ;;  %3530 = vmatmul.mubr.bf16.gmra.mrb[36].mxu1 %v5799_v9  ;;  %v5807_v10 = vld [vmem:[%s6527_s16 + $0x294] ss:$8 sps:$4 sm:$0xff]  }
 0x29e   : > { %v7092_v6 = vpop.permute.xlu1 %1949  ;;  %3539 = vmatprep.mubr.bf16.mxu1 %v5801_v48  ;;  %v1647_v48 = vld [vmem:[%s6652_s1 + $0x3e0] sm:$0xff] }
 0x29f   : > { %9281 = vst [vmem:[#allocation36_spill] sm:$0xff] %v7092_v6  ;;  %3270 = vmatmul.mubr.bf16.gmra.mrb[120].mxu0 %v5800_v23  ;;  %v7095_v50 = vpop.permute.xlu0 %1944  ;;  %v5806_v6 = vld [vmem:[%s6527_s16 + $0xe0] ss:$8 sps:$4 sm:$0xff]   ;;  %v5809_v23 = vld [vmem:[%s6527_s16 + $0xf4] ss:$8 sps:$4 sm:$0xff]  }
 0x2a0   : > { %9282 = vst [vmem:[#allocation37_spill] sm:$0xff] %v7095_v50  ;;  %2269 = vperm.xlu1 %5671, %v1643_v27   ;;  %3279 = vmatprep.mubr.bf16.mxu0 %v5803_v38  ;;  %v1646_v38 = vld [vmem:[%s6652_s1 + $0x3d8] sm:$0xff] }
 0x2a1   : > { %2264 = vperm.xlu0 %5670, %v1642_v22  }
 0x2a3   : > { %v7101_v9 = vpop.permute.xlu1 %1959  ;;  %v7103_v14 = vpop.permute.xlu0 %1954 }
 0x2a4   : > { %9283 = vst [vmem:[#allocation38_spill] sm:$0xff] %v7101_v9  ;;  %9284 = vst [vmem:[#allocation39_spill] sm:$0xff] %v7103_v14  ;;  %2279 = vperm.xlu1 %5671, %v1645_v20   ;;  %v1649_v20 = vld [vmem:[%s6652_s1 + $0x3f0] sm:$0xff]  ;;  %v1648_v14 = vld [vmem:[%s6652_s1 + $0x3e8] sm:$0xff] }
 0x2a5   : > { %2274 = vperm.xlu0 %5670, %v1644_v28   ;;  %3540 = vmatmul.mubr.bf16.gmra.mrb[40].mxu1 %v5805_v53  ;;  %v5811_v9 = vld [vmem:[%s6527_s16 + $0x290] ss:$8 sps:$4 sm:$0xff]   ;;  %v5813_v28 = vld [vmem:[%s6527_s16 + $0x2a4] ss:$8 sps:$4 sm:$0xff]  }
 0x2a6   : > { %3549 = vmatprep.mubr.bf16.mxu1 %v5807_v10  ;;  %v5812_v53 = vld [vmem:[%s6527_s16 + $0xf0] ss:$8 sps:$4 sm:$0xff]  }
 0x2a7   : > { %3280 = vmatmul.mubr.bf16.gmra.mrb[124].mxu0 %v5806_v6  ;;  %v7109_v27 = vpop.permute.xlu1 %1969  ;;  %v5815_v6 = vld [vmem:[%s6527_s16 + $0x104] ss:$8 sps:$4 sm:$0xff]  }
 0x2a8   : > { %9285 = vst [vmem:[#allocation40_spill] sm:$0xff] %v7109_v27  ;;  %v7111_v22 = vpop.permute.xlu0 %1964  ;;  %2289 = vperm.xlu1 %5671, %v1647_v48   ;;  %3289 = vmatprep.mubr.bf16.mxu0 %v5809_v23  ;;  %v1651_v23 = vld [vmem:[%s6652_s1 + $0x400] sm:$0xff]  ;;  %v1650_v48 = vld [vmem:[%s6652_s1 + $0x3f8] sm:$0xff] }
 0x2a9   : > { %9286 = vst [vmem:[#allocation41_spill] sm:$0xff] %v7111_v22  ;;  %2284 = vperm.xlu0 %5670, %v1646_v38   ;;  %v1652_v22 = vld [vmem:[%s6652_s1 + $0x408] sm:$0xff] }
 0x2ab   : > { %v7117_v50 = vpop.permute.xlu1 %1979 }
 0x2ac   : > { %v7120_v10 = vpop.permute.xlu0 %1974  ;;  %2299 = vperm.xlu1 %5671, %v1649_v20   ;;  %v1653_v20 = vld [vmem:[%s6652_s1 + $0x410] sm:$0xff] }
 0x2ad   : > { %9287 = vst [vmem:[#allocation42_spill] sm:$0xff] %v7120_v10  ;;  %2294 = vperm.xlu0 %5670, %v1648_v14   ;;  %3550 = vmatmul.mubr.bf16.gmra.mrb[44].mxu1 %v5811_v9  ;;  %v5817_v10 = vld [vmem:[%s6527_s16 + $0x2a0] ss:$8 sps:$4 sm:$0xff]   ;;  %v5819_v14 = vld [vmem:[%s6527_s16 + $0x2b4] ss:$8 sps:$4 sm:$0xff]  }
 0x2ae   : > { %3559 = vmatprep.mubr.bf16.mxu1 %v5813_v28  ;;  %v5818_v9 = vld [vmem:[%s6527_s16 + $0x100] ss:$8 sps:$4 sm:$0xff]  }
 0x2af   : > { %3290 = vmatmul.mubr.bf16.gmra.mrb[128].mxu0 %v5812_v53  ;;  %v7125_v38 = vpop.permute.xlu1 %1989  ;;  %v5821_v53 = vld [vmem:[%s6527_s16 + $0x114] ss:$8 sps:$4 sm:$0xff]  }
 0x2b0   : > { %v7127_v27 = vpop.permute.xlu0 %1984  ;;  %2309 = vperm.xlu1 %5671, %v1651_v23   ;;  %3299 = vmatprep.mubr.bf16.mxu0 %v5815_v6  ;;  %v1655_v6 = vld [vmem:[%s6652_s1 + $0x420] sm:$0xff]  ;;  %v1654_v23 = vld [vmem:[%s6652_s1 + $0x418] sm:$0xff] }
 0x2b1   : > { %2304 = vperm.xlu0 %5670, %v1650_v48  }
 0x2b3   : > { %v7133_v61 = vpop.permute.xlu1 %1999 }
 0x2b4   : > { %v7136_v28 = vpop.permute.xlu0 %1994  ;;  %2319 = vperm.xlu1 %5671, %v1653_v20   ;;  %v1657_v20 = vld [vmem:[%s6652_s1 + $0x430] sm:$0xff] }
 0x2b5   : > { %2314 = vperm.xlu0 %5670, %v1652_v22   ;;  %3560 = vmatmul.mubr.bf16.gmra.mrb[48].mxu1 %v5817_v10  ;;  %v5825_v22 = vld [vmem:[%s6527_s16 + $0x2c4] ss:$8 sps:$4 sm:$0xff]   ;;  %v5824_v10 = vld [vmem:[%s6527_s16 + $0x110] ss:$8 sps:$4 sm:$0xff]  }
 0x2b6   : > { %3569 = vmatprep.mubr.bf16.mxu1 %v5819_v14 }
 0x2b7   : > { %3300 = vmatmul.mubr.bf16.gmra.mrb[132].mxu0 %v5818_v9  ;;  %v7141_v48 = vpop.permute.xlu1 %2009  ;;  %v5827_v9 = vld [vmem:[%s6527_s16 + $0x124] ss:$8 sps:$4 sm:$0xff]  }
 0x2b8   : > { %v7143_v0 = vpop.permute.xlu0 %2004  ;;  %2329 = vperm.xlu1 %5671, %v1655_v6   ;;  %3309 = vmatprep.mubr.bf16.mxu0 %v5821_v53  ;;  %v1659_v53 = vld [vmem:[%s6652_s1 + $0x440] sm:$0xff]  ;;  %v1658_v6 = vld [vmem:[%s6652_s1 + $0x438] sm:$0xff] }
 0x2b9   : > { %2324 = vperm.xlu0 %5670, %v1654_v23  }
 0x2bb   : > { %v7149_v4 = vpop.permute.xlu1 %2019 }
 0x2bc   : > { %v7152_v14 = vpop.permute.xlu0 %2014  ;;  %2339 = vperm.xlu1 %5671, %v1657_v20   ;;  %v1661_v20 = vld [vmem:[%s6652_s1 + $0x450] sm:$0xff] }
 0x2bd   : > { %2334 = vperm.xlu0 %5670, %v1656_v35   ;;  %3570 = vmatmul.mubr.bf16.gmra.mrb[52].mxu1 %v5823_v32  ;;  %v5831_v35 = vld [vmem:[%s6527_s16 + $0x2d4] ss:$8 sps:$4 sm:$0xff]   ;;  %v5830_v32 = vld [vmem:[%s6527_s16 + $0x120] ss:$8 sps:$4 sm:$0xff]  }
 0x2be   : > { %3579 = vmatprep.mubr.bf16.mxu1 %v5825_v22 }
 0x2bf   : > { %3310 = vmatmul.mubr.bf16.gmra.mrb[136].mxu0 %v5824_v10  ;;  %v7157_v23 = vpop.permute.xlu1 %2029  ;;  %v5833_v10 = vld [vmem:[%s6527_s16 + $0x134] ss:$8 sps:$4 sm:$0xff]  }
 0x2c0   : > { %v7159_v40 = vpop.permute.xlu0 %2024  ;;  %2349 = vperm.xlu1 %5671, %v1659_v53   ;;  %3319 = vmatprep.mubr.bf16.mxu0 %v5827_v9  ;;  %v1663_v9 = vld [vmem:[%s6652_s1 + $0x460] sm:$0xff]  ;;  %v1662_v53 = vld [vmem:[%s6652_s1 + $0x458] sm:$0xff] }
 0x2c1   : > { %2344 = vperm.xlu0 %5670, %v1658_v6  }
 0x2c3   : > { %v7165_v62 = vpop.permute.xlu1 %2039 }
 0x2c4   : > { %v7168_v22 = vpop.permute.xlu0 %2034  ;;  %2359 = vperm.xlu1 %5671, %v1661_v20   ;;  %v1664_v20 = vld [vmem:[%s6652_s1 + $0x468] sm:$0xff] }
 0x2c5   : > { %2354 = vperm.xlu0 %5670, %v1660_v55   ;;  %3580 = vmatmul.mubr.bf16.gmra.mrb[56].mxu1 %v5829_v45  ;;  %v5836_v45 = vld [vmem:[%s6527_s16 + $0x130] ss:$8 sps:$4 sm:$0xff]  }
 0x2c6   : > { %3589 = vmatprep.mubr.bf16.mxu1 %v5831_v35  ;;  %v5839_v35 = vld [vmem:[%s6527_s16 + $0x144] ss:$8 sps:$4 sm:$0xff]  }
 0x2c7   : > { %3320 = vmatmul.mubr.bf16.gmra.mrb[140].mxu0 %v5830_v32  ;;  %v7173_v6 = vpop.permute.xlu1 %2049 }
 0x2c8   : > { %v7175_v19 = vpop.permute.xlu0 %2044  ;;  %2369 = vperm.xlu1 %5671, %v1663_v9   ;;  %3329 = vmatprep.mubr.bf16.mxu0 %v5833_v10  ;;  %v5841_v9 = vld [vmem:[%s6527_s16 + $0x2e0] ss:$8 sps:$4 sm:$0xff]  }
 0x2c9   : > { %2364 = vperm.xlu0 %5670, %v1662_v53   ;;  %v5843_v53 = vld [vmem:[%s6527_s16 + $0x2f4] ss:$8 sps:$4 sm:$0xff]  }
 0x2cb   : > { %v7180_v55 = vpop.permute.xlu1 %2059 }
 0x2cc   : > { %v7183_v43 = vpop.permute.xlu0 %2054 }
 0x2cd   : > { %2374 = vperm.xlu0 %5670, %v1664_v20   ;;  %3590 = vmatmul.mubr.bf16.gmra.mrb[60].mxu1 %v5835_v18  ;;  %v5845_v20 = vld [vmem:[%s6527_s16 + $0x154] ss:$8 sps:$4 sm:$0xff]  }
 0x2ce   : > { %3599 = vmatprep.mubr.bf16.mxu1 %v5837_v51 }
 0x2cf   : > { %3330 = vmatmul.mubr.bf16.gmra.mrb[144].mxu0 %v5836_v45  ;;  %v7186_v32 = vpop.permute.xlu1 %2069  ;;  %v5847_v45 = vld [vmem:[%s6527_s16 + $0x2f0] ss:$8 sps:$4 sm:$0xff]  }
 0x2d0   : > { %9288 = vst [vmem:[#allocation43_spill] sm:$0xff] %v7186_v32  ;;  %v7188_v10 = vpop.permute.xlu0 %2064  ;;  %3339 = vmatprep.mubr.bf16.mxu0 %v5839_v35  ;;  %v5849_v35 = vld [vmem:[%s6527_s16 + $0x304] ss:$8 sps:$4 sm:$0xff]  }
 0x2d3   : > { %v7192_v25 = vpop.permute.xlu1 %2079 }
 0x2d4   : > { %9289 = vst [vmem:[#allocation44_spill] sm:$0xff] %v7192_v25  ;;  %v7195_v63 = vpop.permute.xlu0 %2074  ;;  %v5848_v25 = vld [vmem:[%s6527_s16 + $0x150] ss:$8 sps:$4 sm:$0xff]  }
 0x2d5   : > { %9290 = vst [vmem:[#allocation45_spill] sm:$0xff] %v7195_v63  ;;  %3600 = vmatmul.mubr.bf16.gmra.mrb[64].mxu1 %v5841_v9  ;;  %v5851_v63 = vld [vmem:[%s6527_s16 + $0x164] ss:$8 sps:$4 sm:$0xff]  }
 0x2d6   : > { %3609 = vmatprep.mubr.bf16.mxu1 %v5843_v53  ;;  %v5853_v53 = vld [vmem:[%s6527_s16 + $0x300] ss:$8 sps:$4 sm:$0xff]  }
 0x2d7   : > { %3340 = vmatmul.mubr.bf16.gmra.mrb[148].mxu0 %v5842_v12  ;;  %v7198_v51 = vpop.permute.xlu1 %2089 }
 0x2d8   : > { %9291 = vst [vmem:[#allocation46_spill] sm:$0xff] %v7198_v51  ;;  %v7200_v18 = vpop.permute.xlu0 %2084  ;;  %3349 = vmatprep.mubr.bf16.mxu0 %v5845_v20  ;;  %v5855_v20 = vld [vmem:[%s6527_s16 + $0x314] ss:$8 sps:$4 sm:$0xff]  }
 0x2d9   : > { %9292 = vst [vmem:[#allocation47_spill] sm:$0xff] %v7200_v18 }
 0x2db   : > { %v7204_v58 = vpop.permute.xlu1 %2099 }
 0x2dc   : > { %9293 = vst [vmem:[#allocation48_spill] sm:$0xff] %v7204_v58  ;;  %v7207_v16 = vpop.permute.xlu0 %2094  ;;  %v5854_v58 = vld [vmem:[%s6527_s16 + $0x160] ss:$8 sps:$4 sm:$0xff]  }
 0x2dd   : > { %9294 = vst [vmem:[#allocation49_spill] sm:$0xff] %v7207_v16  ;;  %3610 = vmatmul.mubr.bf16.gmra.mrb[68].mxu1 %v5847_v45  ;;  %v5857_v16 = vld [vmem:[%s6527_s16 + $0x174] ss:$8 sps:$4 sm:$0xff]  }
 0x2de   : > { %3619 = vmatprep.mubr.bf16.mxu1 %v5849_v35  ;;  %v5861_v35 = vld [vmem:[%s6527_s16 + $0x324] ss:$8 sps:$4 sm:$0xff]  }
 0x2df   : > { %3350 = vmatmul.mubr.bf16.gmra.mrb[152].mxu0 %v5848_v25  ;;  %v7210_v12 = vpop.permute.xlu1 %2109 }
 0x2e0   : > { %9295 = vst [vmem:[#allocation50_spill] sm:$0xff] %v7210_v12  ;;  %v7212_v9 = vpop.permute.xlu0 %2104  ;;  %3359 = vmatprep.mubr.bf16.mxu0 %v5851_v63  ;;  %v5859_v63 = vld [vmem:[%s6527_s16 + $0x310] ss:$8 sps:$4 sm:$0xff]  }
 0x2e1   : > { %9296 = vst [vmem:[#allocation51_spill] sm:$0xff] %v7212_v9  ;;  %v5860_v9 = vld [vmem:[%s6527_s16 + $0x170] ss:$8 sps:$4 sm:$0xff]  }
 0x2e3   : > { %v7216_v51 = vpop.permute.xlu1 %2119 }
 0x2e4   : > { %9297 = vst [vmem:[#allocation52_spill] sm:$0xff] %v7216_v51  ;;  %v7219_v18 = vpop.permute.xlu0 %2114 }
 0x2e5   : > { %9298 = vst [vmem:[#allocation53_spill] sm:$0xff] %v7219_v18  ;;  %3620 = vmatmul.mubr.bf16.gmra.mrb[72].mxu1 %v5853_v53  ;;  %v5863_v18 = vld [vmem:[%s6527_s16 + $0x184] ss:$8 sps:$4 sm:$0xff]  }
 0x2e6   : > { %3629 = vmatprep.mubr.bf16.mxu1 %v5855_v20 }
 0x2e7   : > { %3360 = vmatmul.mubr.bf16.gmra.mrb[156].mxu0 %v5854_v58  ;;  %v7222_v25 = vpop.permute.xlu1 %2129 }
 0x2e8   : > { %9299 = vst [vmem:[#allocation54_spill] sm:$0xff] %v7222_v25  ;;  %v7224_v45 = vpop.permute.xlu0 %2124  ;;  %3369 = vmatprep.mubr.bf16.mxu0 %v5857_v16 }
 0x2e9   : > { %9300 = vst [vmem:[#allocation55_spill] sm:$0xff] %v7224_v45 }
 0x2eb   : > { %v7228_v12 = vpop.permute.xlu1 %2139 }
 0x2ec   : > { %9301 = vst [vmem:[#allocation56_spill] sm:$0xff] %v7228_v12  ;;  %v7231_v51 = vpop.permute.xlu0 %2134  ;;  %v5865_v12 = vld [vmem:[%s6527_s16 + $0x320] ss:$8 sps:$4 sm:$0xff]  }
 0x2ed   : > { %9302 = vst [vmem:[#allocation57_spill] sm:$0xff] %v7231_v51  ;;  %3630 = vmatmul.mubr.bf16.gmra.mrb[76].mxu1 %v5859_v63  ;;  %v5867_v51 = vld [vmem:[%s6527_s16 + $0x334] ss:$8 sps:$4 sm:$0xff]  }
 0x2ee   : > { %3639 = vmatprep.mubr.bf16.mxu1 %v5861_v35 }
 0x2ef   : > { %3370 = vmatmul.mubr.bf16.gmra.mrb[160].mxu0 %v5860_v9  ;;  %v7234_v58 = vpop.permute.xlu1 %2149  ;;  %v5866_v9 = vld [vmem:[%s6527_s16 + $0x180] ss:$8 sps:$4 sm:$0xff]  }
 0x2f0   : > { %9303 = vst [vmem:[#allocation58_spill] sm:$0xff] %v7234_v58  ;;  %v7236_v53 = vpop.permute.xlu0 %2144  ;;  %v1296_v16 = vpop.f32.mrb[0].mxu1  ;;  %3379 = vmatprep.mubr.bf16.mxu0 %v5863_v18  ;;  %v5869_v18 = vld [vmem:[%s6527_s16 + $0x194] ss:$8 sps:$4 sm:$0xff]  }
 0x2f1   : > { %9304 = vst [vmem:[#allocation59_spill] sm:$0xff] %v7236_v53  ;;  %v7239_v20 = vadd.f32 %v1296_v16, %v6851_v41  ;;  %v1298_v25 = vpop.f32.mrb[1].mxu1  ;;  %v5871_v16 = vld [vmem:[%s6527_s16 + $0x330] ss:$8 sps:$4 sm:$0xff]  }
 0x2f2   : > { %v7243_v45 = vadd.f32 %v1298_v25, %v6851_v41 }
 0x2f3   : > { %9305 = vst [vmem:[#allocation60_spill] sm:$0xff] %v7239_v20  ;;  %v7246_v63 = vpop.permute.xlu1 %2159  ;;  %1303 = vrot.lane.b32.xlu1 %v7239_v20, %s9308_s20 }
 0x2f4   : > { %9306 = vst [vmem:[#allocation61_spill] sm:$0xff] %v7243_v45  ;;  %9307 = vst [vmem:[#allocation62_spill] sm:$0xff] %v7246_v63  ;;  %v7251_v35 = vpop.permute.xlu0 %2154  ;;  %1305 = vrot.lane.b32.xlu0 %v7243_v45, %s9308_s20  ;;  %v5873_v63 = vld [vmem:[%s6527_s16 + $0x344] ss:$8 sps:$4 sm:$0xff]  }
 0x2f5   : > { %9309 = vst [vmem:[#allocation63_spill] sm:$0xff] %v7251_v35  ;;  %3640 = vmatmul.mubr.bf16.gmra.mrb[80].mxu1 %v5865_v12 }
 0x2f6   : > { %3649 = vmatprep.mubr.bf16.mxu1 %v5867_v51  ;;  %v5872_v51 = vld [vmem:[%s6527_s16 + $0x190] ss:$8 sps:$4 sm:$0xff]  }
 0x2f7   : > { %3380 = vmatmul.mubr.bf16.gmra.mrb[164].mxu0 %v5866_v9  ;;  %v7256_v41 = vpop.permute.xlu1 %2169  ;;  %1313 = vrot.lane.b32.xlu1 %v7239_v20, %s9311_s17  ;;  %v5875_v9 = vld [vmem:[%s6527_s16 + $0x1a4] ss:$8 sps:$4 sm:$0xff]  }
 0x2f8   : > { %9310 = vst [vmem:[#allocation64_spill] sm:$0xff] %v7256_v41  ;;  %v7260_v25 = vpop.permute.xlu0 %2164  ;;  %1315 = vrot.lane.b32.xlu0 %v7243_v45, %s9311_s17  ;;  %3389 = vmatprep.mubr.bf16.mxu0 %v5869_v18  ;;  %v5879_v41 = vld [vmem:[%s6527_s16 + $0x354] ss:$8 sps:$4 sm:$0xff]  }
 0x2f9   : > { %9312 = vst [vmem:[#allocation65_spill] sm:$0xff] %v7260_v25 }
 0x2fb   : > { %v7266_v35 = vpop.permute.xlu1 %2179  ;;  %1321 = vrot.lane.b32.xlu1 %v7239_v20, %s9314_s22 }
 0x2fc   : > { %9313 = vst [vmem:[#allocation66_spill] sm:$0xff] %v7266_v35  ;;  %v7271_v12 = vpop.permute.xlu0 %2174  ;;  %1323 = vrot.lane.b32.xlu0 %v7243_v45, %s9314_s22 }
 0x2fd   : > { %9315 = vst [vmem:[#allocation67_spill] sm:$0xff] %v7271_v12  ;;  %3650 = vmatmul.mubr.bf16.gmra.mrb[84].mxu1 %v5871_v16  ;;  %v5877_v12 = vld [vmem:[%s6527_s16 + $0x340] ss:$8 sps:$4 sm:$0xff]  }
 0x2fe   : > { %3659 = vmatprep.mubr.bf16.mxu1 %v5873_v63  ;;  %v5878_v63 = vld [vmem:[%s6527_s16 + $0x1a0] ss:$8 sps:$4 sm:$0xff]  }
 0x2ff   : > { %3390 = vmatmul.mubr.bf16.gmra.mrb[168].mxu0 %v5872_v51  ;;  %v7276_v18 = vpop.permute.xlu1 %2189  ;;  %1331 = vrot.lane.b32.xlu1 %v7239_v20, %s9317_s23  ;;  %v5881_v51 = vld [vmem:[%s6527_s16 + $0x1b4] ss:$8 sps:$4 sm:$0xff]  }
 0x300   : > { %9316 = vst [vmem:[#allocation68_spill] sm:$0xff] %v7276_v18  ;;  %v7280_v35 = vpop.permute.xlu0 %2184  ;;  %1333 = vrot.lane.b32.xlu0 %v7243_v45, %s9317_s23  ;;  %3399 = vmatprep.mubr.bf16.mxu0 %v5875_v9 }
 0x301   : > { %9318 = vst [vmem:[#allocation69_spill] sm:$0xff] %v7280_v35  ;;  %v5885_v35 = vld [vmem:[%s6527_s16 + $0x364] ss:$8 sps:$4 sm:$0xff]  }
 0x303   : > { %v7286_v25 = vpop.permute.xlu1 %2199  ;;  %1341 = vrot.lane.b32.xlu1 %v7239_v20, %s9320_s13 }
 0x304   : > { %9319 = vst [vmem:[#allocation70_spill] sm:$0xff] %v7286_v25  ;;  %v7291_v16 = vpop.permute.xlu0 %2194  ;;  %1343 = vrot.lane.b32.xlu0 %v7243_v45, %s9320_s13 }
 0x305   : > { %9321 = vst [vmem:[#allocation71_spill] sm:$0xff] %v7291_v16  ;;  %3660 = vmatmul.mubr.bf16.gmra.mrb[88].mxu1 %v5877_v12  ;;  %v5883_v16 = vld [vmem:[%s6527_s16 + $0x350] ss:$8 sps:$4 sm:$0xff]  }
 0x306   : > { %3669 = vmatprep.mubr.bf16.mxu1 %v5879_v41 }
 0x307   : > { %3400 = vmatmul.mubr.bf16.gmra.mrb[172].mxu0 %v5878_v63  ;;  %v7296_v9 = vpop.permute.xlu1 %2209  ;;  %1351 = vrot.lane.b32.xlu1 %v7239_v20, %s9323_s9  ;;  %v5884_v63 = vld [vmem:[%s6527_s16 + $0x1b0] ss:$8 sps:$4 sm:$0xff]  }
 0x308   : > { %9322 = vst [vmem:[#allocation72_spill] sm:$0xff] %v7296_v9  ;;  %v7300_v25 = vpop.permute.xlu0 %2204  ;;  %1353 = vrot.lane.b32.xlu0 %v7243_v45, %s9323_s9  ;;  %3409 = vmatprep.mubr.bf16.mxu0 %v5881_v51  ;;  %v5887_v51 = vld [vmem:[%s6527_s16 + $0x1c4] ss:$8 sps:$4 sm:$0xff]  }
 0x309   : > { %9324 = vst [vmem:[#allocation73_spill] sm:$0xff] %v7300_v25 }
 0x30a   : > { %v3141_v18 = vpop.f32.mrb[68].mxu0 }
 0x30b   : > { %v3142_v58 = vadd.f32 %v3141_v18, %v6849_v7  ;;  %v3143_v12 = vpop.f32.mrb[69].mxu0  ;;  %v7307_v41 = vpop.permute.xlu1 %2219  ;;  %1361 = vrot.lane.b32.xlu1 %v7239_v20, %s9326_s0 }
 0x30c   : > { %9325 = vst [vmem:[#allocation74_spill] sm:$0xff] %v7307_v41  ;;  %v3144_v9 = vadd.f32 %v3143_v12, %v6849_v7  ;;  %v7313_v53 = vpop.permute.xlu0 %2214  ;;  %v3145_v25 = vpop.f32.mrb[70].mxu0  ;;  %1363 = vrot.lane.b32.xlu0 %v7243_v45, %s9326_s0 }
 0x30d   : > { %3860 = vst [vmem:[#allocation2] sm:$0xff] %v3142_v58  ;;  %v3146_v18 = vadd.f32 %v3145_v25, %v6865_v15  ;;  %v3147_v41 = vpop.f32.mrb[71].mxu0  ;;  %3670 = vmatmul.mubr.bf16.gmra.mrb[92].mxu1 %v5883_v16  ;;  %v1665_v25 = vld [vmem:[%s6652_s1 + $0x470] sm:$0xff]  ;;  %v1666_v16 = vld [vmem:[%s6652_s1 + $0x478] sm:$0xff]  ;;  %s7781_s1 = smov 0  }
 0x30e   : > { %3861 = vst [vmem:[#allocation2 + $0x8] sm:$0xff] %v3144_v9  ;;  %v3148_v32 = vadd.f32 %v3147_v41, %v6865_v15  ;;  %3679 = vmatprep.mubr.bf16.mxu1 %v5885_v35  ;;  %v5889_v15 = vld [vmem:[%s6527_s16 + $0x360] ss:$8 sps:$4 sm:$0xff]   ;;  %v5891_v9 = vld [vmem:[%s6527_s16 + $0x374] ss:$8 sps:$4 sm:$0xff]  }
 0x30f   : > { %3862 = vst [vmem:[#allocation2 + $0x10] sm:$0xff] %v3146_v18  ;;  %3410 = vmatmul.mubr.bf16.gmra.mrb[176].mxu0 %v5884_v63  ;;  %v7320_v7 = vpop.permute.xlu1 %2229  ;;  %1369 = vrot.lane.b32.xlu1 %v7239_v20, %s9328_s5  ;;  %v5890_v18 = vld [vmem:[%s6527_s16 + $0x1c0] ss:$8 sps:$4 sm:$0xff]  }
 0x310   : > { %9327 = vst [vmem:[#allocation75_spill] sm:$0xff] %v7320_v7  ;;  %3863 = vst [vmem:[#allocation2 + $0x18] sm:$0xff] %v3148_v32  ;;  %v7324_v58 = vpop.permute.xlu0 %2224  ;;  %1371 = vrot.lane.b32.xlu0 %v7243_v45, %s9328_s5  ;;  %3419 = vmatprep.mubr.bf16.mxu0 %v5887_v51  ;;  %v5893_v45 = vld [vmem:[%s6527_s16 + $0x1d4] ss:$8 sps:$4 sm:$0xff]  }
 0x311   : > { %9329 = vst [vmem:[#allocation76_spill] sm:$0xff] %v7324_v58 }
 0x312   : > { %v3151_v35 = vpop.f32.mrb[72].mxu0 }
 0x313   : > { %v3152_v12 = vadd.f32 %v3151_v35, %v6863_v60  ;;  %v3153_v41 = vpop.f32.mrb[73].mxu0  ;;  %v7333_v63 = vpop.permute.xlu1 %2239  ;;  %2379 = vperm.xlu1 %5671, %v1665_v25  }
 0x314   : > { %9330 = vst [vmem:[#allocation77_spill] sm:$0xff] %v7333_v63  ;;  %v3154_v32 = vadd.f32 %v3153_v41, %v6863_v60  ;;  %v7337_v20 = vpop.permute.xlu0 %2234  ;;  %v3155_v7 = vpop.f32.mrb[74].mxu0  ;;  %2384 = vperm.xlu0 %5670, %v1666_v16   ;;  %v5895_v16 = vld [vmem:[%s6527_s16 + $0x370] ss:$8 sps:$4 sm:$0xff]   ;;  %v5897_v41 = vld [vmem:[%s6527_s16 + $0x384] ss:$8 sps:$4 sm:$0xff]  }
 0x315   : > { %3864 = vst [vmem:[#allocation2 + $0x20] sm:$0xff] %v3152_v12  ;;  %v3156_v51 = vadd.f32 %v3155_v7, %v6876_v56  ;;  %v3157_v58 = vpop.f32.mrb[75].mxu0  ;;  %3680 = vmatmul.mubr.bf16.gmra.mrb[96].mxu1 %v5889_v15 }
 0x316   : > { %3865 = vst [vmem:[#allocation2 + $0x28] sm:$0xff] %v3154_v32  ;;  %v3158_v35 = vadd.f32 %v3157_v58, %v6876_v56  ;;  %3689 = vmatprep.mubr.bf16.mxu1 %v5891_v9  ;;  %v5896_v32 = vld [vmem:[%s6527_s16 + $0x1d0] ss:$8 sps:$4 sm:$0xff]  }
 0x317   : > { %3866 = vst [vmem:[#allocation2 + $0x30] sm:$0xff] %v3156_v51  ;;  %3420 = vmatmul.mubr.bf16.gmra.mrb[180].mxu0 %v5890_v18  ;;  %v7342_v60 = vpop.permute.xlu1 %2249  ;;  %v5899_v18 = vld [vmem:[%s6527_s16 + $0x1e4] ss:$8 sps:$4 sm:$0xff]  }
 0x318   : > { %3867 = vst [vmem:[#allocation2 + $0x38] sm:$0xff] %v3158_v35  ;;  %v7344_v25 = vpop.permute.xlu0 %2244  ;;  %3429 = vmatprep.mubr.bf16.mxu0 %v5893_v45 }
 0x31a   : > { %v3161_v12 = vpop.f32.mrb[76].mxu0 }
 0x31b   : > { %v3162_v7 = vadd.f32 %v3161_v12, %v6874_v24  ;;  %v3163_v15 = vpop.f32.mrb[77].mxu0  ;;  %v7349_v63 = vpop.permute.xlu1 %2259 }
 0x31c   : > { %9331 = vst [vmem:[#allocation78_spill] sm:$0xff] %v7349_v63  ;;  %v3164_v56 = vadd.f32 %v3163_v15, %v6874_v24  ;;  %v7353_v58 = vpop.permute.xlu0 %2254  ;;  %v3165_v9 = vpop.f32.mrb[78].mxu0  ;;  %v5901_v15 = vld [vmem:[%s6527_s16 + $0x380] ss:$8 sps:$4 sm:$0xff]  }
 0x31d   : > { %9332 = vst [vmem:[#allocation79_spill] sm:$0xff] %v7353_v58  ;;  %3868 = vst [vmem:[#allocation2 + $0x40] sm:$0xff] %v3162_v7  ;;  %v3166_v45 = vadd.f32 %v3165_v9, %v6884_v26  ;;  %v3167_v51 = vpop.f32.mrb[79].mxu0  ;;  %3690 = vmatmul.mubr.bf16.gmra.mrb[100].mxu1 %v5895_v16  ;;  %v5903_v7 = vld [vmem:[%s6527_s16 + $0x394] ss:$8 sps:$4 sm:$0xff]  }
 0x31e   : > { %3869 = vst [vmem:[#allocation2 + $0x48] sm:$0xff] %v3164_v56  ;;  %v3168_v35 = vadd.f32 %v3167_v51, %v6884_v26  ;;  %3699 = vmatprep.mubr.bf16.mxu1 %v5897_v41  ;;  %v5902_v56 = vld [vmem:[%s6527_s16 + $0x1e0] ss:$8 sps:$4 sm:$0xff]  }
 0x31f   : > { %3870 = vst [vmem:[#allocation2 + $0x50] sm:$0xff] %v3166_v45  ;;  %3430 = vmatmul.mubr.bf16.gmra.mrb[184].mxu0 %v5896_v32  ;;  %v7358_v12 = vpop.permute.xlu1 %2269 }
 0x320   : > { %3871 = vst [vmem:[#allocation2 + $0x58] sm:$0xff] %v3168_v35  ;;  %v7360_v24 = vpop.permute.xlu0 %2264  ;;  %3439 = vmatprep.mubr.bf16.mxu0 %v5899_v18 }
 0x322   : > { %v3171_v63 = vpop.f32.mrb[80].mxu0 }
 0x323   : > { %v3172_v9 = vadd.f32 %v3171_v63, %v6882_v3  ;;  %v3173_v58 = vpop.f32.mrb[81].mxu0  ;;  %v7365_v16 = vpop.permute.xlu1 %2279 }
 0x324   : > { %9333 = vst [vmem:[#allocation80_spill] sm:$0xff] %v7365_v16  ;;  %v3174_v26 = vadd.f32 %v3173_v58, %v6882_v3  ;;  %v7369_v41 = vpop.permute.xlu0 %2274  ;;  %v3175_v32 = vpop.f32.mrb[82].mxu0  ;;  %v5905_v3 = vld [vmem:[%s6527_s16 + $0x390] ss:$8 sps:$4 sm:$0xff]   ;;  %v5906_v16 = vld [vmem:[%s6527_s16 + $0x3a4] ss:$8 sps:$4 sm:$0xff]  }
 0x325   : > { %9334 = vst [vmem:[#allocation81_spill] sm:$0xff] %v7369_v41  ;;  %3872 = vst [vmem:[#allocation2 + $0x60] sm:$0xff] %v3172_v9  ;;  %v3176_v45 = vadd.f32 %v3175_v32, %v6894_v54  ;;  %v3177_v18 = vpop.f32.mrb[83].mxu0  ;;  %3700 = vmatmul.mubr.bf16.gmra.mrb[104].mxu1 %v5901_v15 }
 0x326   : > { %3873 = vst [vmem:[#allocation2 + $0x68] sm:$0xff] %v3174_v26  ;;  %v3178_v51 = vadd.f32 %v3177_v18, %v6894_v54  ;;  %3709 = vmatprep.mubr.bf16.mxu1 %v5903_v7 }
 0x327   : > { %3874 = vst [vmem:[#allocation2 + $0x70] sm:$0xff] %v3176_v45  ;;  %3440 = vmatmul.mubr.bf16.gmra.mrb[188].mxu0 %v5902_v56  ;;  %v7373_v63 = vpop.permute.xlu1 %2289 }
 0x328   : > { %3875 = vst [vmem:[#allocation2 + $0x78] sm:$0xff] %v3178_v51  ;;  %v7375_v35 = vpop.permute.xlu0 %2284 }
 0x32a   : > { %v3181_v58 = vpop.f32.mrb[84].mxu0 }
 0x32b   : > { %v3182_v9 = vadd.f32 %v3181_v58, %v6892_v17  ;;  %v3183_v41 = vpop.f32.mrb[85].mxu0  ;;  %v7384_v26 = vpop.permute.xlu1 %2299  ;;  %v5908_v58 = vld [vmem:[%s6527_s16 + $0x3a0] ss:$8 sps:$4 sm:$0xff]  }
 0x32c   : > { %v3184_v32 = vadd.f32 %v3183_v41, %v6892_v17  ;;  %v7381_v15 = vpop.permute.xlu0 %2294  ;;  %v3185_v54 = vpop.f32.mrb[86].mxu0  ;;  %9336 = vst [vmem:[#allocation83_spill] sm:$0xff] %v7384_v26 }
 0x32d   : > { %9335 = vst [vmem:[#allocation82_spill] sm:$0xff] %v7381_v15  ;;  %3876 = vst [vmem:[#allocation2 + $0x80] sm:$0xff] %v3182_v9  ;;  %v3186_v7 = vadd.f32 %v3185_v54, %v6902_v57  ;;  %v3187_v56 = vpop.f32.mrb[87].mxu0  ;;  %3710 = vmatmul.mubr.bf16.gmra.mrb[108].mxu1 %v5905_v3  ;;  %v5909_v3 = vld [vmem:[%s6527_s16 + $0x3b4] ss:$8 sps:$4 sm:$0xff]  }
 0x32e   : > { %3877 = vst [vmem:[#allocation2 + $0x88] sm:$0xff] %v3184_v32  ;;  %v3188_v45 = vadd.f32 %v3187_v56, %v6902_v57  ;;  %3719 = vmatprep.mubr.bf16.mxu1 %v5906_v16 }
 0x32f   : > { %3878 = vst [vmem:[#allocation2 + $0x90] sm:$0xff] %v3186_v7  ;;  %v7395_v16 = vpop.permute.xlu1 %2309 }
 0x330   : > { %3879 = vst [vmem:[#allocation2 + $0x98] sm:$0xff] %v3188_v45  ;;  %v7387_v18 = vpop.permute.xlu0 %2304  ;;  %v3451_v17 = vpop.f32.mrb[4].mxu1 }
 0x331   : > { %v3452_v41 = vadd.f32 %v3451_v17, %v7117_v50  ;;  %v3453_v51 = vpop.f32.mrb[5].mxu1 }
 0x332   : > { %v3191_v9 = vpop.f32.mrb[88].mxu0  ;;  %v3454_v54 = vadd.f32 %v3453_v51, %v7117_v50  ;;  %v3455_v15 = vpop.f32.mrb[6].mxu1 }
 0x333   : > { %3984 = vst [vmem:[#allocation2 + $0x3e0] sm:$0xff] %v3452_v41  ;;  %v3192_v32 = vadd.f32 %v3191_v9, %v6900_v30  ;;  %v3193_v26 = vpop.f32.mrb[89].mxu0  ;;  %v3456_v57 = vadd.f32 %v3455_v15, %v7127_v27  ;;  %v3457_v50 = vpop.f32.mrb[7].mxu1 }
 0x334   : > { %3985 = vst [vmem:[#allocation2 + $0x3e8] sm:$0xff] %v3454_v54  ;;  %v3194_v7 = vadd.f32 %v3193_v26, %v6900_v30  ;;  %v3195_v56 = vpop.f32.mrb[90].mxu0  ;;  %v7399_v41 = vpop.permute.xlu0 %2314  ;;  %v3458_v15 = vadd.f32 %v3457_v50, %v7127_v27  ;;  %v5911_v54 = vld [vmem:[%s6527_s16 + $0x3b0] ss:$8 sps:$4 sm:$0xff]  }
 0x335   : > { %3880 = vst [vmem:[#allocation2 + $0xa0] sm:$0xff] %v3192_v32  ;;  %3986 = vst [vmem:[#allocation2 + $0x3f0] sm:$0xff] %v3456_v57  ;;  %v3196_v45 = vadd.f32 %v3195_v56, %v6912_v33  ;;  %v3197_v17 = vpop.f32.mrb[91].mxu0  ;;  %3720 = vmatmul.mubr.bf16.gmra.mrb[112].mxu1 %v5908_v58  ;;  %v7407_v56 = vpop.permute.xlu1 %2319 }
 0x336   : > { %3881 = vst [vmem:[#allocation2 + $0xa8] sm:$0xff] %v3194_v7  ;;  %v3198_v51 = vadd.f32 %v3197_v17, %v6912_v33  ;;  %3729 = vmatprep.mubr.bf16.mxu1 %v5909_v3  ;;  %3987 = vst [vmem:[#allocation2 + $0x3f8] sm:$0xff] %v3458_v15  ;;  %v5912_v7 = vld [vmem:[%s6527_s16 + $0x3c4] ss:$8 sps:$4 sm:$0xff]  }
 0x337   : > { %3882 = vst [vmem:[#allocation2 + $0xb0] sm:$0xff] %v3196_v45 }
 0x338   : > { %3883 = vst [vmem:[#allocation2 + $0xb8] sm:$0xff] %v3198_v51  ;;  %v3461_v30 = vpop.f32.mrb[8].mxu1  ;;  %v7411_v45 = vpop.permute.xlu0 %2324 }
 0x339   : > { %v3462_v26 = vadd.f32 %v3461_v30, %v7125_v38  ;;  %v3463_v9 = vpop.f32.mrb[9].mxu1 }
 0x33a   : > { %v3201_v32 = vpop.f32.mrb[92].mxu0  ;;  %v3464_v58 = vadd.f32 %v3463_v9, %v7125_v38  ;;  %v3465_v57 = vpop.f32.mrb[10].mxu1 }
 0x33b   : > { %3988 = vst [vmem:[#allocation2 + $0x400] sm:$0xff] %v3462_v26  ;;  %v3202_v27 = vadd.f32 %v3201_v32, %v6910_v37  ;;  %v3203_v33 = vpop.f32.mrb[93].mxu0  ;;  %v3466_v3 = vadd.f32 %v3465_v57, %v7136_v28  ;;  %v3467_v15 = vpop.f32.mrb[11].mxu1  ;;  %v5914_v57 = vld [vmem:[%s6527_s16 + $0x3c0] ss:$8 sps:$4 sm:$0xff]  }
 0x33c   : > { %3989 = vst [vmem:[#allocation2 + $0x408] sm:$0xff] %v3464_v58  ;;  %v3204_v50 = vadd.f32 %v3203_v33, %v6910_v37  ;;  %v3205_v17 = vpop.f32.mrb[94].mxu0  ;;  %v3468_v30 = vadd.f32 %v3467_v15, %v7136_v28  ;;  %v7417_v9 = vpop.permute.xlu1 %2329 }
 0x33d   : > { %3884 = vst [vmem:[#allocation2 + $0xc0] sm:$0xff] %v3202_v27  ;;  %3990 = vst [vmem:[#allocation2 + $0x410] sm:$0xff] %v3466_v3  ;;  %v3206_v38 = vadd.f32 %v3205_v17, %v6920_v47  ;;  %v3207_v51 = vpop.f32.mrb[95].mxu0  ;;  %3730 = vmatmul.mubr.bf16.gmra.mrb[116].mxu1 %v5911_v54  ;;  %v5915_v3 = vld [vmem:[%s6527_s16 + $0x3d4] ss:$8 sps:$4 sm:$0xff]  }
 0x33e   : > { %3885 = vst [vmem:[#allocation2 + $0xc8] sm:$0xff] %v3204_v50  ;;  %v3208_v26 = vadd.f32 %v3207_v51, %v6920_v47  ;;  %3739 = vmatprep.mubr.bf16.mxu1 %v5912_v7  ;;  %3991 = vst [vmem:[#allocation2 + $0x418] sm:$0xff] %v3468_v30  ;;  %v7423_v50 = vpop.permute.xlu0 %2334 }
 0x33f   : > { %3886 = vst [vmem:[#allocation2 + $0xd0] sm:$0xff] %v3206_v38 }
 0x340   : > { %3887 = vst [vmem:[#allocation2 + $0xd8] sm:$0xff] %v3208_v26  ;;  %v3471_v37 = vpop.f32.mrb[12].mxu1 }
 0x341   : > { %v3472_v32 = vadd.f32 %v3471_v37, %v7133_v61  ;;  %v3473_v58 = vpop.f32.mrb[13].mxu1  ;;  %v7431_v37 = vpop.permute.xlu1 %2339 }
 0x342   : > { %v3211_v27 = vpop.f32.mrb[96].mxu0  ;;  %v3474_v54 = vadd.f32 %v3473_v58, %v7133_v61  ;;  %v3475_v33 = vpop.f32.mrb[14].mxu1 }
 0x343   : > { %3992 = vst [vmem:[#allocation2 + $0x420] sm:$0xff] %v3472_v32  ;;  %v3212_v47 = vadd.f32 %v3211_v27, %v6918_v11  ;;  %v3213_v28 = vpop.f32.mrb[97].mxu0  ;;  %v3476_v7 = vadd.f32 %v3475_v33, %v7143_v0  ;;  %v3477_v61 = vpop.f32.mrb[15].mxu1 }
 0x344   : > { %3993 = vst [vmem:[#allocation2 + $0x428] sm:$0xff] %v3474_v54  ;;  %v3214_v17 = vadd.f32 %v3213_v28, %v6918_v11  ;;  %v3215_v38 = vpop.f32.mrb[98].mxu0  ;;  %v3478_v30 = vadd.f32 %v3477_v61, %v7143_v0  ;;  %v7433_v32 = vpop.permute.xlu0 %2344  ;;  %v5917_v54 = vld [vmem:[%s6527_s16 + $0x3d0] ss:$8 sps:$4 sm:$0xff]   ;;  %v5918_v0 = vld [vmem:[%s6527_s16 + $0x3e4] ss:$8 sps:$4 sm:$0xff]  }
 0x345   : > { %3888 = vst [vmem:[#allocation2 + $0xe0] sm:$0xff] %v3212_v47  ;;  %3994 = vst [vmem:[#allocation2 + $0x430] sm:$0xff] %v3476_v7  ;;  %v3216_v15 = vadd.f32 %v3215_v38, %v6930_v44  ;;  %v3217_v51 = vpop.f32.mrb[99].mxu0  ;;  %3740 = vmatmul.mubr.bf16.gmra.mrb[120].mxu1 %v5914_v57 }
 0x346   : > { %3889 = vst [vmem:[#allocation2 + $0xe8] sm:$0xff] %v3214_v17  ;;  %v3218_v26 = vadd.f32 %v3217_v51, %v6930_v44  ;;  %3749 = vmatprep.mubr.bf16.mxu1 %v5915_v3  ;;  %3995 = vst [vmem:[#allocation2 + $0x438] sm:$0xff] %v3478_v30  ;;  %v7445_v30 = vpop.permute.xlu1 %2349 }
 0x347   : > { %3890 = vst [vmem:[#allocation2 + $0xf0] sm:$0xff] %v3216_v15 }
 0x348   : > { %3891 = vst [vmem:[#allocation2 + $0xf8] sm:$0xff] %v3218_v26  ;;  %v3481_v11 = vpop.f32.mrb[16].mxu1  ;;  %v7447_v26 = vpop.permute.xlu0 %2354 }
 0x349   : > { %v3482_v58 = vadd.f32 %v3481_v11, %v7141_v48  ;;  %v3483_v27 = vpop.f32.mrb[17].mxu1 }
 0x34a   : > { %v3221_v57 = vpop.f32.mrb[100].mxu0  ;;  %v3484_v33 = vadd.f32 %v3483_v27, %v7141_v48  ;;  %v3485_v47 = vpop.f32.mrb[18].mxu1 }
 0x34b   : > { %3996 = vst [vmem:[#allocation2 + $0x440] sm:$0xff] %v3482_v58  ;;  %v3222_v44 = vadd.f32 %v3221_v57, %v6928_v39  ;;  %v3223_v3 = vpop.f32.mrb[101].mxu0  ;;  %v3486_v28 = vadd.f32 %v3485_v47, %v7152_v14  ;;  %v3487_v7 = vpop.f32.mrb[19].mxu1  ;;  %v5920_v58 = vld [vmem:[%s6527_s16 + $0x3e0] ss:$8 sps:$4 sm:$0xff]  }
 0x34c   : > { %3997 = vst [vmem:[#allocation2 + $0x448] sm:$0xff] %v3484_v33  ;;  %v3224_v17 = vadd.f32 %v3223_v3, %v6928_v39  ;;  %v3225_v38 = vpop.f32.mrb[102].mxu0  ;;  %v3488_v15 = vadd.f32 %v3487_v7, %v7152_v14  ;;  %v5921_v33 = vld [vmem:[%s6527_s16 + $0x3f4] ss:$8 sps:$4 sm:$0xff]  }
 0x34d   : > { %3892 = vst [vmem:[#allocation2 + $0x100] sm:$0xff] %v3222_v44  ;;  %3998 = vst [vmem:[#allocation2 + $0x450] sm:$0xff] %v3486_v28  ;;  %v3226_v48 = vadd.f32 %v3225_v38, %v6938_v13  ;;  %v3227_v61 = vpop.f32.mrb[103].mxu0  ;;  %3750 = vmatmul.mubr.bf16.gmra.mrb[124].mxu1 %v5917_v54 }
 0x34e   : > { %3893 = vst [vmem:[#allocation2 + $0x108] sm:$0xff] %v3224_v17  ;;  %3999 = vst [vmem:[#allocation2 + $0x458] sm:$0xff] %v3488_v15  ;;  %v3228_v51 = vadd.f32 %v3227_v61, %v6938_v13  ;;  %3759 = vmatprep.mubr.bf16.mxu1 %v5918_v0  ;;  %v7459_v15 = vpop.permute.xlu1 %2359 }
 0x34f   : > { %3894 = vst [vmem:[#allocation2 + $0x110] sm:$0xff] %v3226_v48  ;;  %v7461_v48 = vpop.permute.xlu0 %2364 }
 0x350   : > { %3895 = vst [vmem:[#allocation2 + $0x118] sm:$0xff] %v3228_v51  ;;  %v3491_v39 = vpop.f32.mrb[20].mxu1  ;;  %v5923_v51 = vld [vmem:[%s6527_s16 + $0x3f0] ss:$8 sps:$4 sm:$0xff]  }
 0x351   : > { %v3492_v14 = vadd.f32 %v3491_v39, %v7149_v4  ;;  %v3493_v11 = vpop.f32.mrb[21].mxu1 }
 0x352   : > { %v3231_v27 = vpop.f32.mrb[104].mxu0  ;;  %v3494_v54 = vadd.f32 %v3493_v11, %v7149_v4  ;;  %v3495_v57 = vpop.f32.mrb[22].mxu1 }
 0x353   : > { %4000 = vst [vmem:[#allocation2 + $0x460] sm:$0xff] %v3492_v14  ;;  %v3232_v13 = vadd.f32 %v3231_v27, %v6936_v49  ;;  %v3233_v47 = vpop.f32.mrb[105].mxu0  ;;  %v3496_v0 = vadd.f32 %v3495_v57, %v7159_v40  ;;  %v3497_v44 = vpop.f32.mrb[23].mxu1 }
 0x354   : > { %4001 = vst [vmem:[#allocation2 + $0x468] sm:$0xff] %v3494_v54  ;;  %v3234_v3 = vadd.f32 %v3233_v47, %v6936_v49  ;;  %v3235_v28 = vpop.f32.mrb[106].mxu0  ;;  %v3498_v7 = vadd.f32 %v3497_v44, %v7159_v40 }
 0x355   : > { %3896 = vst [vmem:[#allocation2 + $0x120] sm:$0xff] %v3232_v13  ;;  %4002 = vst [vmem:[#allocation2 + $0x470] sm:$0xff] %v3496_v0  ;;  %v3236_v4 = vadd.f32 %v3235_v28, %v6948_v2  ;;  %v3237_v17 = vpop.f32.mrb[107].mxu0  ;;  %3760 = vmatmul.mubr.bf16.gmra.mrb[128].mxu1 %v5920_v58  ;;  %v5924_v58 = vld [vmem:[%s6527_s16 + $0x404] ss:$8 sps:$4 sm:$0xff]   ;;  %v7475_v28 = vpop.permute.xlu0 %2374 }
 0x356   : > { %3897 = vst [vmem:[#allocation2 + $0x128] sm:$0xff] %v3234_v3  ;;  %4003 = vst [vmem:[#allocation2 + $0x478] sm:$0xff] %v3498_v7  ;;  %v3238_v38 = vadd.f32 %v3237_v17, %v6948_v2  ;;  %3769 = vmatprep.mubr.bf16.mxu1 %v5921_v33  ;;  %v7473_v3 = vpop.permute.xlu1 %2369 }
 0x357   : > { %3898 = vst [vmem:[#allocation2 + $0x130] sm:$0xff] %v3236_v4  ;;  %v5926_v4 = vld [vmem:[%s6527_s16 + $0x400] ss:$8 sps:$4 sm:$0xff]  }
 0x358   : > { %3899 = vst [vmem:[#allocation2 + $0x138] sm:$0xff] %v3238_v38  ;;  %v3501_v49 = vpop.f32.mrb[24].mxu1 }
 0x359   : > { %v3502_v40 = vadd.f32 %v3501_v49, %v7157_v23  ;;  %v3503_v61 = vpop.f32.mrb[25].mxu1 }
 0x35a   : > { %v3241_v39 = vpop.f32.mrb[108].mxu0  ;;  %v3504_v14 = vadd.f32 %v3503_v61, %v7157_v23  ;;  %v3505_v11 = vpop.f32.mrb[26].mxu1 }
 0x35b   : > { %4004 = vst [vmem:[#allocation2 + $0x480] sm:$0xff] %v3502_v40  ;;  %v3242_v2 = vadd.f32 %v3241_v39, %v6946_v36  ;;  %v3243_v27 = vpop.f32.mrb[109].mxu0  ;;  %v3506_v54 = vadd.f32 %v3505_v11, %v7168_v22  ;;  %v3507_v57 = vpop.f32.mrb[27].mxu1  ;;  %v5927_v40 = vld [vmem:[%s6527_s16 + $0x414] ss:$8 sps:$4 sm:$0xff]  }
 0x35c   : > { %4005 = vst [vmem:[#allocation2 + $0x488] sm:$0xff] %v3504_v14  ;;  %v3244_v33 = vadd.f32 %v3243_v27, %v6946_v36  ;;  %v3245_v13 = vpop.f32.mrb[110].mxu0  ;;  %v3508_v47 = vadd.f32 %v3507_v57, %v7168_v22 }
 0x35d   : > { %3900 = vst [vmem:[#allocation2 + $0x140] sm:$0xff] %v3242_v2  ;;  %4006 = vst [vmem:[#allocation2 + $0x490] sm:$0xff] %v3506_v54  ;;  %v3246_v23 = vadd.f32 %v3245_v13, %v6957_v21  ;;  %v3247_v0 = vpop.f32.mrb[111].mxu0  ;;  %3770 = vmatmul.mubr.bf16.gmra.mrb[132].mxu1 %v5923_v51 }
 0x35e   : > { %3901 = vst [vmem:[#allocation2 + $0x148] sm:$0xff] %v3244_v33  ;;  %4007 = vst [vmem:[#allocation2 + $0x498] sm:$0xff] %v3508_v47  ;;  %v3248_v44 = vadd.f32 %v3247_v0, %v6957_v21  ;;  %3779 = vmatprep.mubr.bf16.mxu1 %v5924_v58 }
 0x35f   : > { %3902 = vst [vmem:[#allocation2 + $0x150] sm:$0xff] %v3246_v23 }
 0x360   : > { %3903 = vst [vmem:[#allocation2 + $0x158] sm:$0xff] %v3248_v44  ;;  %v3511_v36 = vpop.f32.mrb[28].mxu1  ;;  %v5929_v44 = vld [vmem:[%s6527_s16 + $0x410] ss:$8 sps:$4 sm:$0xff]  }
 0x361   : > { %v3512_v22 = vadd.f32 %v3511_v36, %v7165_v62  ;;  %v3513_v7 = vpop.f32.mrb[29].mxu1 }
 0x362   : > { %v3251_v17 = vpop.f32.mrb[112].mxu0  ;;  %v3514_v38 = vadd.f32 %v3513_v7, %v7165_v62  ;;  %v3515_v49 = vpop.f32.mrb[30].mxu1 }
 0x363   : > { %4008 = vst [vmem:[#allocation2 + $0x4a0] sm:$0xff] %v3512_v22  ;;  %v3252_v21 = vadd.f32 %v3251_v17, %v6955_v34  ;;  %v3253_v61 = vpop.f32.mrb[113].mxu0  ;;  %v3516_v51 = vadd.f32 %v3515_v49, %v7175_v19  ;;  %v3517_v39 = vpop.f32.mrb[31].mxu1  ;;  %v5930_v17 = vld [vmem:[%s6527_s16 + $0x424] ss:$8 sps:$4 sm:$0xff]  }
 0x364   : > { %4009 = vst [vmem:[#allocation2 + $0x4a8] sm:$0xff] %v3514_v38  ;;  %v3254_v14 = vadd.f32 %v3253_v61, %v6955_v34  ;;  %v3255_v11 = vpop.f32.mrb[114].mxu0  ;;  %v3518_v58 = vadd.f32 %v3517_v39, %v7175_v19 }
 0x365   : > { %3904 = vst [vmem:[#allocation2 + $0x160] sm:$0xff] %v3252_v21  ;;  %4010 = vst [vmem:[#allocation2 + $0x4b0] sm:$0xff] %v3516_v51  ;;  %v3256_v2 = vadd.f32 %v3255_v11, %v6966_v46  ;;  %v3257_v62 = vpop.f32.mrb[115].mxu0  ;;  %v1304_v27 = vpop.permute.xlu1 %1303  ;;  %3780 = vmatmul.mubr.bf16.gmra.mrb[136].mxu1 %v5926_v4 }
 0x366   : > { %3905 = vst [vmem:[#allocation2 + $0x168] sm:$0xff] %v3254_v14  ;;  %4011 = vst [vmem:[#allocation2 + $0x4b8] sm:$0xff] %v3518_v58  ;;  %v3258_v54 = vadd.f32 %v3257_v62, %v6966_v46  ;;  %v1310_v57 = vsel %vm1079_vm11, 0.0, %v1304_v27  ;;  %v1306_v33 = vpop.permute.xlu0 %1305  ;;  %3789 = vmatprep.mubr.bf16.mxu1 %v5927_v40 }
 0x367   : > { %3906 = vst [vmem:[#allocation2 + $0x170] sm:$0xff] %v3256_v2  ;;  %v7490_v34 = vsel %vm6714_vm6, %v1310_v57, 0.0  ;;  %v1307_v19 = vsel %vm1079_vm11, %v1304_v27, %v1306_v33 }
 0x368   : > { %9337 = vst [vmem:[#allocation84_spill] sm:$0xff] %v7490_v34  ;;  %3907 = vst [vmem:[#allocation2 + $0x178] sm:$0xff] %v3258_v54  ;;  %v7495_v13 = vsel %vm6718_vm7, %v1307_v19, 0.0  ;;  %v3521_v47 = vpop.f32.mrb[32].mxu1 }
 0x369   : > { %9338 = vst [vmem:[#allocation85_spill] sm:$0xff] %v7495_v13  ;;  %v3522_v46 = vadd.f32 %v3521_v47, %v7173_v6  ;;  %v1314_v23 = vpop.permute.xlu1 %1313  ;;  %v3523_v0 = vpop.f32.mrb[33].mxu1 }
 0x36a   : > { %v7500_v36 = vsel %vm1094_vm2, 0.0, %v1314_v23  ;;  %v3261_v22 = vpop.f32.mrb[116].mxu0  ;;  %v3524_v7 = vadd.f32 %v3523_v0, %v7173_v6  ;;  %v1316_v4 = vpop.permute.xlu0 %1315 }
 0x36b   : > { %9339 = vst [vmem:[#allocation86_spill] sm:$0xff] %v7500_v36  ;;  %4012 = vst [vmem:[#allocation2 + $0x4c0] sm:$0xff] %v3522_v46  ;;  %v3262_v38 = vadd.f32 %v3261_v22, %v6964_v1  ;;  %v7506_v49 = vsel %vm1094_vm2, %v1314_v23, %v1316_v4  ;;  %v3263_v40 = vpop.f32.mrb[117].mxu0  ;;  %v3525_v21 = vpop.f32.mrb[34].mxu1  ;;  %v5932_v46 = vld [vmem:[%s6527_s16 + $0x420] ss:$8 sps:$4 sm:$0xff]  }
 0x36c   : > { %9340 = vst [vmem:[#allocation87_spill] sm:$0xff] %v7506_v49  ;;  %4013 = vst [vmem:[#allocation2 + $0x4c8] sm:$0xff] %v3524_v7  ;;  %v3264_v61 = vadd.f32 %v3263_v40, %v6964_v1  ;;  %v3526_v51 = vadd.f32 %v3525_v21, %v7183_v43  ;;  %v3265_v39 = vpop.f32.mrb[118].mxu0  ;;  %v3527_v14 = vpop.f32.mrb[35].mxu1  ;;  %v5933_v7 = vld [vmem:[%s6527_s16 + $0x434] ss:$8 sps:$4 sm:$0xff]  }
 0x36d   : > { %3908 = vst [vmem:[#allocation2 + $0x180] sm:$0xff] %v3262_v38  ;;  %v3266_v6 = vadd.f32 %v3265_v39, %v6973_v29  ;;  %v3528_v11 = vadd.f32 %v3527_v14, %v7183_v43  ;;  %v3267_v58 = vpop.f32.mrb[119].mxu0  ;;  %v1322_v2 = vpop.permute.xlu1 %1321  ;;  %3790 = vmatmul.mubr.bf16.gmra.mrb[140].mxu1 %v5929_v44 }
 0x36e   : > { %3909 = vst [vmem:[#allocation2 + $0x188] sm:$0xff] %v3264_v61  ;;  %4014 = vst [vmem:[#allocation2 + $0x4d0] sm:$0xff] %v3526_v51  ;;  %v3268_v62 = vadd.f32 %v3267_v58, %v6973_v29  ;;  %v1328_v27 = vsel %vm1102_vm9, 0.0, %v1322_v2  ;;  %v1324_v1 = vpop.permute.xlu0 %1323  ;;  %3799 = vmatprep.mubr.bf16.mxu1 %v5930_v17 }
 0x36f   : > { %3910 = vst [vmem:[#allocation2 + $0x190] sm:$0xff] %v3266_v6  ;;  %4015 = vst [vmem:[#allocation2 + $0x4d8] sm:$0xff] %v3528_v11  ;;  %v7516_v54 = vsel %vm6704_vm4, %v1328_v27, 0.0  ;;  %v1325_v43 = vsel %vm1102_vm9, %v1322_v2, %v1324_v1 }
 0x370   : > { %9341 = vst [vmem:[#allocation88_spill] sm:$0xff] %v7516_v54  ;;  %3911 = vst [vmem:[#allocation2 + $0x198] sm:$0xff] %v3268_v62  ;;  %v7521_v57 = vsel %vm6708_vm5, %v1325_v43, 0.0  ;;  %v3531_v33 = vpop.f32.mrb[36].mxu1 }
 0x371   : > { %9342 = vst [vmem:[#allocation89_spill] sm:$0xff] %v7521_v57  ;;  %v3532_v29 = vadd.f32 %v3531_v33, %v7180_v55  ;;  %v1332_v19 = vpop.permute.xlu1 %1331  ;;  %v3533_v47 = vpop.f32.mrb[37].mxu1 }
 0x372   : > { %v1338_v23 = vsel %vm1117_vm10, 0.0, %v1332_v19  ;;  %v3271_v0 = vpop.f32.mrb[120].mxu0  ;;  %v3534_v44 = vadd.f32 %v3533_v47, %v7180_v55  ;;  %v1334_v22 = vpop.permute.xlu0 %1333 }
 0x373   : > { %4016 = vst [vmem:[#allocation2 + $0x4e0] sm:$0xff] %v3532_v29  ;;  %v7530_v4 = vsel %vm6714_vm6, %v1338_v23, 0.0  ;;  %v3272_v17 = vadd.f32 %v3271_v0, %v6971_v31  ;;  %v1335_v38 = vsel %vm1117_vm10, %v1332_v19, %v1334_v22  ;;  %v3273_v40 = vpop.f32.mrb[121].mxu0  ;;  %v3535_v21 = vpop.f32.mrb[38].mxu1  ;;  %v5936_v22 = vld [vmem:[%s6527_s16 + $0x444] ss:$8 sps:$4 sm:$0xff]  }
 0x374   : > { %9343 = vst [vmem:[#allocation90_spill] sm:$0xff] %v7530_v4  ;;  %4017 = vst [vmem:[#allocation2 + $0x4e8] sm:$0xff] %v3534_v44  ;;  %v7536_v61 = vsel %vm6718_vm7, %v1335_v38, 0.0  ;;  %v3274_v55 = vadd.f32 %v3273_v40, %v6971_v31  ;;  %v3536_v51 = vadd.f32 %v3535_v21, %v7188_v10  ;;  %v3275_v39 = vpop.f32.mrb[122].mxu0  ;;  %v3537_v14 = vpop.f32.mrb[39].mxu1 }
 0x375   : > { %9344 = vst [vmem:[#allocation91_spill] sm:$0xff] %v7536_v61  ;;  %3912 = vst [vmem:[#allocation2 + $0x1a0] sm:$0xff] %v3272_v17  ;;  %v3276_v6 = vadd.f32 %v3275_v39, %v6982_v42  ;;  %v3538_v11 = vadd.f32 %v3537_v14, %v7188_v10  ;;  %v3277_v58 = vpop.f32.mrb[123].mxu0  ;;  %v1342_v2 = vpop.permute.xlu1 %1341  ;;  %3800 = vmatmul.mubr.bf16.gmra.mrb[144].mxu1 %v5932_v46  ;;  %v5935_v46 = vld [vmem:[%s6527_s16 + $0x430] ss:$8 sps:$4 sm:$0xff]  }
 0x376   : > { %3913 = vst [vmem:[#allocation2 + $0x1a8] sm:$0xff] %v3274_v55  ;;  %4018 = vst [vmem:[#allocation2 + $0x4f0] sm:$0xff] %v3536_v51  ;;  %v3278_v62 = vadd.f32 %v3277_v58, %v6982_v42  ;;  %v1344_v27 = vpop.permute.xlu0 %1343  ;;  %3809 = vmatprep.mubr.bf16.mxu1 %v5933_v7  ;;  %v9347_v42 = vld [vmem:[#allocation43_spill] sm:$0xff]  ;;  %v9348_v7 = vld [vmem:[#allocation9_spill] sm:$0xff] }
 0x377   : > { %3914 = vst [vmem:[#allocation2 + $0x1b0] sm:$0xff] %v3276_v6  ;;  %4019 = vst [vmem:[#allocation2 + $0x4f8] sm:$0xff] %v3538_v11  ;;  %v1345_v31 = vsel %vm1128_vm3, %v1342_v2, %v1344_v27  ;;  %v1348_v1 = vsel %vm1128_vm3, %v1344_v27, 0.0  ;;  %v9351_v6 = vld [vmem:[#allocation45_spill] sm:$0xff] }
 0x378   : > { %3915 = vst [vmem:[#allocation2 + $0x1b8] sm:$0xff] %v3278_v62  ;;  %v7547_v10 = vsel %vm6704_vm4, %v1345_v31, 0.0  ;;  %v7551_v43 = vsel %vm6708_vm5, %v1348_v1, 0.0  ;;  %v3541_v33 = vpop.f32.mrb[40].mxu1  ;;  %v9352_v62 = vld [vmem:[#allocation10_spill] sm:$0xff] }
 0x379   : > { %9345 = vst [vmem:[#allocation92_spill] sm:$0xff] %v7547_v10  ;;  %9346 = vst [vmem:[#allocation93_spill] sm:$0xff] %v7551_v43  ;;  %v3542_v29 = vadd.f32 %v3541_v33, %v9347_v42  ;;  %v1352_v19 = vpop.permute.xlu1 %1351  ;;  %v3543_v47 = vpop.f32.mrb[41].mxu1 }
 0x37a   : > { %v3281_v23 = vpop.f32.mrb[124].mxu0  ;;  %v3544_v0 = vadd.f32 %v3543_v47, %v9347_v42  ;;  %v1354_v44 = vpop.permute.xlu0 %1353  ;;  %v9355_v47 = vld [vmem:[#allocation44_spill] sm:$0xff] }
 0x37b   : > { %4020 = vst [vmem:[#allocation2 + $0x500] sm:$0xff] %v3542_v29  ;;  %v3282_v17 = vadd.f32 %v3281_v23, %v9348_v7  ;;  %v1355_v38 = vsel %vm1139_vm8, %v1352_v19, %v1354_v44  ;;  %v1358_v40 = vsel %vm1139_vm8, %v1354_v44, 0.0  ;;  %v3283_v21 = vpop.f32.mrb[125].mxu0  ;;  %v3545_v55 = vpop.f32.mrb[42].mxu1  ;;  %v5938_v44 = vld [vmem:[%s6527_s16 + $0x440] ss:$8 sps:$4 sm:$0xff]  }
 0x37c   : > { %4021 = vst [vmem:[#allocation2 + $0x508] sm:$0xff] %v3544_v0  ;;  %v7562_v51 = vsel %vm6714_vm6, %v1355_v38, 0.0  ;;  %v7566_v39 = vsel %vm6718_vm7, %v1358_v40, 0.0  ;;  %v3284_v14 = vadd.f32 %v3283_v21, %v9348_v7  ;;  %v3546_v11 = vadd.f32 %v3545_v55, %v9351_v6  ;;  %v3285_v58 = vpop.f32.mrb[126].mxu0  ;;  %v3547_v2 = vpop.f32.mrb[43].mxu1  ;;  %v9356_v40 = vld [vmem:[#allocation11_spill] sm:$0xff] }
 0x37d   : > { %9349 = vst [vmem:[#allocation43_spill] sm:$0xff] %v7562_v51  ;;  %9350 = vst [vmem:[#allocation9_spill] sm:$0xff] %v7566_v39  ;;  %v3286_v27 = vadd.f32 %v3285_v58, %v9352_v62  ;;  %v3548_v31 = vadd.f32 %v3547_v2, %v9351_v6  ;;  %v3287_v1 = vpop.f32.mrb[127].mxu0  ;;  %v1362_v33 = vpop.permute.xlu1 %1361  ;;  %3810 = vmatmul.mubr.bf16.gmra.mrb[148].mxu1 %v5935_v46 }
 0x37e   : > { %3916 = vst [vmem:[#allocation2 + $0x1c0] sm:$0xff] %v3282_v17  ;;  %3917 = vst [vmem:[#allocation2 + $0x1c8] sm:$0xff] %v3284_v14  ;;  %v3288_v5 = vadd.f32 %v3287_v1, %v9352_v62  ;;  %v1364_v8 = vpop.permute.xlu0 %1363  ;;  %3819 = vmatprep.mubr.bf16.mxu1 %v5936_v22  ;;  %v5939_v22 = vld [vmem:[%s6527_s16 + $0x454] ss:$8 sps:$4 sm:$0xff]  }
 0x37f   : > { %4022 = vst [vmem:[#allocation2 + $0x510] sm:$0xff] %v3546_v11  ;;  %3918 = vst [vmem:[#allocation2 + $0x1d0] sm:$0xff] %v3286_v27  ;;  %v7574_v42 = vsel %vm1150_vm12, %v1362_v33, %v1364_v8  ;;  %v7577_v29 = vsel %vm1150_vm12, %v1364_v8, 0.0  ;;  %v9359_v27 = vld [vmem:[#allocation47_spill] sm:$0xff] }
 0x380   : > { %4023 = vst [vmem:[#allocation2 + $0x518] sm:$0xff] %v3548_v31  ;;  %9353 = vst [vmem:[#allocation45_spill] sm:$0xff] %v7574_v42  ;;  %v3551_v19 = vpop.f32.mrb[44].mxu1 }
 0x381   : > { %9354 = vst [vmem:[#allocation10_spill] sm:$0xff] %v7577_v29  ;;  %3919 = vst [vmem:[#allocation2 + $0x1d8] sm:$0xff] %v3288_v5  ;;  %v3552_v23 = vadd.f32 %v3551_v19, %v9355_v47  ;;  %v1370_v46 = vpop.permute.xlu1 %1369  ;;  %v3553_v0 = vpop.f32.mrb[45].mxu1  ;;  %v9360_v5 = vld [vmem:[#allocation12_spill] sm:$0xff] }
 0x382   : > { %v3291_v7 = vpop.f32.mrb[128].mxu0  ;;  %v3554_v17 = vadd.f32 %v3553_v0, %v9355_v47  ;;  %v1372_v38 = vpop.permute.xlu0 %1371 }
 0x383   : > { %4024 = vst [vmem:[#allocation2 + $0x520] sm:$0xff] %v3552_v23  ;;  %v3292_v21 = vadd.f32 %v3291_v7, %v9356_v40  ;;  %v1373_v55 = vsel %vm1158_vm15, %v1370_v46, %v1372_v38  ;;  %v1376_v14 = vsel %vm1158_vm15, %v1372_v38, 0.0  ;;  %v3293_v6 = vpop.f32.mrb[129].mxu0  ;;  %v3555_v11 = vpop.f32.mrb[46].mxu1  ;;  %v9361_v23 = vld [vmem:[#allocation46_spill] sm:$0xff] }
 0x384   : > { %4025 = vst [vmem:[#allocation2 + $0x528] sm:$0xff] %v3554_v17  ;;  %v7588_v58 = vsel %vm6704_vm4, %v1373_v55, 0.0  ;;  %v7592_v2 = vsel %vm6708_vm5, %v1376_v14, 0.0  ;;  %v3294_v62 = vadd.f32 %v3293_v6, %v9356_v40  ;;  %v3556_v31 = vadd.f32 %v3555_v11, %v9359_v27  ;;  %v3295_v1 = vpop.f32.mrb[130].mxu0  ;;  %v3557_v33 = vpop.f32.mrb[47].mxu1  ;;  %v9363_v6 = vld [vmem:[#allocation49_spill] sm:$0xff] }
 0x385   : > { %9357 = vst [vmem:[#allocation44_spill] sm:$0xff] %v7588_v58  ;;  %9358 = vst [vmem:[#allocation11_spill] sm:$0xff] %v7592_v2  ;;  %v3296_v8 = vadd.f32 %v3295_v1, %v9360_v5  ;;  %v3558_v19 = vadd.f32 %v3557_v33, %v9359_v27  ;;  %v3297_v47 = vpop.f32.mrb[131].mxu0  ;;  %3820 = vmatmul.mubr.bf16.gmra.mrb[152].mxu1 %v5938_v44  ;;  %v5941_v7 = vld [vmem:[%s6527_s16 + $0x450] ss:$8 sps:$4 sm:$0xff]   ;;  %v9362_v44 = vld [vmem:[#allocation13_spill] sm:$0xff] }
 0x386   : > { %3920 = vst [vmem:[#allocation2 + $0x1e0] sm:$0xff] %v3292_v21  ;;  %3921 = vst [vmem:[#allocation2 + $0x1e8] sm:$0xff] %v3294_v62  ;;  %v3298_v59 = vadd.f32 %v3297_v47, %v9360_v5  ;;  %3829 = vmatprep.mubr.bf16.mxu1 %v5939_v22  ;;  %v5942_v21 = vld [vmem:[%s6527_s16 + $0x464] ss:$8 sps:$4 sm:$0xff]   ;;  %v9365_v47 = vld [vmem:[#allocation48_spill] sm:$0xff] }
 0x387   : > { %4026 = vst [vmem:[#allocation2 + $0x530] sm:$0xff] %v3556_v31  ;;  %3922 = vst [vmem:[#allocation2 + $0x1f0] sm:$0xff] %v3296_v8  ;;  %v9364_v1 = vld [vmem:[#allocation14_spill] sm:$0xff] }
 0x388   : > { %4027 = vst [vmem:[#allocation2 + $0x538] sm:$0xff] %v3558_v19  ;;  %3923 = vst [vmem:[#allocation2 + $0x1f8] sm:$0xff] %v3298_v59  ;;  %v3561_v52 = vpop.f32.mrb[48].mxu1 }
 0x389   : > { %v3562_v46 = vadd.f32 %v3561_v52, %v9361_v23  ;;  %v3563_v0 = vpop.f32.mrb[49].mxu1 }
 0x38a   : > { %v3301_v17 = vpop.f32.mrb[132].mxu0  ;;  %v3564_v38 = vadd.f32 %v3563_v0, %v9361_v23  ;;  %v3565_v40 = vpop.f32.mrb[50].mxu1  ;;  %v5944_v23 = vld [vmem:[%s6527_s16 + $0x460] ss:$8 sps:$4 sm:$0xff]  }
 0x38b   : > { %4028 = vst [vmem:[#allocation2 + $0x540] sm:$0xff] %v3562_v46  ;;  %v3302_v55 = vadd.f32 %v3301_v17, %v9362_v44  ;;  %v3303_v14 = vpop.f32.mrb[133].mxu0  ;;  %v3566_v11 = vadd.f32 %v3565_v40, %v9363_v6  ;;  %v3567_v22 = vpop.f32.mrb[51].mxu1  ;;  %v5945_v17 = vld [vmem:[%s6527_s16 + $0x474] ss:$8 sps:$4 sm:$0xff]  }
 0x38c   : > { %4029 = vst [vmem:[#allocation2 + $0x548] sm:$0xff] %v3564_v38  ;;  %v3304_v62 = vadd.f32 %v3303_v14, %v9362_v44  ;;  %v3305_v27 = vpop.f32.mrb[134].mxu0  ;;  %v3568_v31 = vadd.f32 %v3567_v22, %v9363_v6  ;;  %v9366_v38 = vld [vmem:[#allocation15_spill] sm:$0xff] }
 0x38d   : > { %3924 = vst [vmem:[#allocation2 + $0x200] sm:$0xff] %v3302_v55  ;;  %4030 = vst [vmem:[#allocation2 + $0x550] sm:$0xff] %v3566_v11  ;;  %v3306_v33 = vadd.f32 %v3305_v27, %v9364_v1  ;;  %v3307_v5 = vpop.f32.mrb[135].mxu0  ;;  %3830 = vmatmul.mubr.bf16.gmra.mrb[156].mxu1 %v5941_v7  ;;  %v9368_v11 = vld [vmem:[#allocation16_spill] sm:$0xff] }
 0x38e   : > { %3925 = vst [vmem:[#allocation2 + $0x208] sm:$0xff] %v3304_v62  ;;  %4031 = vst [vmem:[#allocation2 + $0x558] sm:$0xff] %v3568_v31  ;;  %v3308_v8 = vadd.f32 %v3307_v5, %v9364_v1  ;;  %3839 = vmatprep.mubr.bf16.mxu1 %v5942_v21  ;;  %v9367_v21 = vld [vmem:[#allocation51_spill] sm:$0xff]  ;;  %v9369_v5 = vld [vmem:[#allocation50_spill] sm:$0xff] }
 0x38f   : > { %3926 = vst [vmem:[#allocation2 + $0x210] sm:$0xff] %v3306_v33 }
 0x390   : > { %3927 = vst [vmem:[#allocation2 + $0x218] sm:$0xff] %v3308_v8  ;;  %v3571_v19 = vpop.f32.mrb[52].mxu1 }
 0x391   : > { %v3572_v59 = vadd.f32 %v3571_v19, %v9365_v47  ;;  %v3573_v52 = vpop.f32.mrb[53].mxu1 }
 0x392   : > { %v3311_v46 = vpop.f32.mrb[136].mxu0  ;;  %v3574_v0 = vadd.f32 %v3573_v52, %v9365_v47  ;;  %v3575_v44 = vpop.f32.mrb[54].mxu1  ;;  %v5947_v47 = vld [vmem:[%s6527_s16 + $0x470] ss:$8 sps:$4 sm:$0xff]  }
 0x393   : > { %4032 = vst [vmem:[#allocation2 + $0x560] sm:$0xff] %v3572_v59  ;;  %v3312_v40 = vadd.f32 %v3311_v46, %v9366_v38  ;;  %v3313_v7 = vpop.f32.mrb[137].mxu0  ;;  %v3576_v14 = vadd.f32 %v3575_v44, %v9367_v21  ;;  %v3577_v62 = vpop.f32.mrb[55].mxu1 }
 0x394   : > { %4033 = vst [vmem:[#allocation2 + $0x568] sm:$0xff] %v3574_v0  ;;  %v3314_v55 = vadd.f32 %v3313_v7, %v9366_v38  ;;  %v3315_v6 = vpop.f32.mrb[138].mxu0  ;;  %v3578_v31 = vadd.f32 %v3577_v62, %v9367_v21 }
 0x395   : > { %3928 = vst [vmem:[#allocation2 + $0x220] sm:$0xff] %v3312_v40  ;;  %v3316_v22 = vadd.f32 %v3315_v6, %v9368_v11  ;;  %v3317_v27 = vpop.f32.mrb[139].mxu0  ;;  %3840 = vmatmul.mubr.bf16.gmra.mrb[160].mxu1 %v5944_v23  ;;  %4034 = vst [vmem:[#allocation2 + $0x570] sm:$0xff] %v3576_v14  ;;  %v9370_v23 = vld [vmem:[#allocation17_spill] sm:$0xff]  ;;  %v9372_v14 = vld [vmem:[#allocation18_spill] sm:$0xff] }
 0x396   : > { %3929 = vst [vmem:[#allocation2 + $0x228] sm:$0xff] %v3314_v55  ;;  %v3318_v1 = vadd.f32 %v3317_v27, %v9368_v11  ;;  %3849 = vmatprep.mubr.bf16.mxu1 %v5945_v17  ;;  %4035 = vst [vmem:[#allocation2 + $0x578] sm:$0xff] %v3578_v31  ;;  %v9371_v40 = vld [vmem:[#allocation53_spill] sm:$0xff]  ;;  %v9373_v27 = vld [vmem:[#allocation52_spill] sm:$0xff] }
 0x397   : > { %3930 = vst [vmem:[#allocation2 + $0x230] sm:$0xff] %v3316_v22 }
 0x398   : > { %3931 = vst [vmem:[#allocation2 + $0x238] sm:$0xff] %v3318_v1  ;;  %v3581_v33 = vpop.f32.mrb[56].mxu1 }
 0x399   : > { %v3582_v8 = vadd.f32 %v3581_v33, %v9369_v5  ;;  %v3583_v19 = vpop.f32.mrb[57].mxu1 }
 0x39a   : > { %v3321_v59 = vpop.f32.mrb[140].mxu0  ;;  %v3584_v52 = vadd.f32 %v3583_v19, %v9369_v5  ;;  %v3585_v46 = vpop.f32.mrb[58].mxu1  ;;  %v9374_v19 = vld [vmem:[#allocation19_spill] sm:$0xff] }
 0x39b   : > { %4036 = vst [vmem:[#allocation2 + $0x580] sm:$0xff] %v3582_v8  ;;  %v3322_v0 = vadd.f32 %v3321_v59, %v9370_v23  ;;  %v3323_v38 = vpop.f32.mrb[141].mxu0  ;;  %v3586_v7 = vadd.f32 %v3585_v46, %v9371_v40  ;;  %v3587_v44 = vpop.f32.mrb[59].mxu1  ;;  %v9375_v46 = vld [vmem:[#allocation55_spill] sm:$0xff] }
 0x39c   : > { %4037 = vst [vmem:[#allocation2 + $0x588] sm:$0xff] %v3584_v52  ;;  %v3324_v17 = vadd.f32 %v3323_v38, %v9370_v23  ;;  %v3325_v55 = vpop.f32.mrb[142].mxu0  ;;  %v3588_v21 = vadd.f32 %v3587_v44, %v9371_v40 }
 0x39d   : > { %3932 = vst [vmem:[#allocation2 + $0x240] sm:$0xff] %v3322_v0  ;;  %4038 = vst [vmem:[#allocation2 + $0x590] sm:$0xff] %v3586_v7  ;;  %v3326_v6 = vadd.f32 %v3325_v55, %v9372_v14  ;;  %v3327_v11 = vpop.f32.mrb[143].mxu0  ;;  %3850 = vmatmul.mubr.bf16.gmra.mrb[164].mxu1 %v5947_v47  ;;  %v9376_v7 = vld [vmem:[#allocation21_spill] sm:$0xff] }
 0x39e   : > { %3933 = vst [vmem:[#allocation2 + $0x248] sm:$0xff] %v3324_v17  ;;  %4039 = vst [vmem:[#allocation2 + $0x598] sm:$0xff] %v3588_v21  ;;  %v3328_v22 = vadd.f32 %v3327_v11, %v9372_v14  ;;  %v9377_v14 = vld [vmem:[#allocation54_spill] sm:$0xff] }
 0x39f   : > { %3934 = vst [vmem:[#allocation2 + $0x250] sm:$0xff] %v3326_v6 }
 0x3a0   : > { %3935 = vst [vmem:[#allocation2 + $0x258] sm:$0xff] %v3328_v22  ;;  %v3591_v62 = vpop.f32.mrb[60].mxu1 }
 0x3a1   : > { %v3592_v31 = vadd.f32 %v3591_v62, %v9373_v27  ;;  %v3593_v1 = vpop.f32.mrb[61].mxu1 }
 0x3a2   : > { %v3331_v33 = vpop.f32.mrb[144].mxu0  ;;  %v3594_v5 = vadd.f32 %v3593_v1, %v9373_v27  ;;  %v3595_v8 = vpop.f32.mrb[62].mxu1 }
 0x3a3   : > { %4040 = vst [vmem:[#allocation2 + $0x5a0] sm:$0xff] %v3592_v31  ;;  %v3332_v59 = vadd.f32 %v3331_v33, %v9374_v19  ;;  %v3333_v52 = vpop.f32.mrb[145].mxu0  ;;  %v3596_v47 = vadd.f32 %v3595_v8, %v9375_v46  ;;  %v3597_v23 = vpop.f32.mrb[63].mxu1  ;;  %v9378_v31 = vld [vmem:[#allocation20_spill] sm:$0xff] }
 0x3a4   : > { %4041 = vst [vmem:[#allocation2 + $0x5a8] sm:$0xff] %v3594_v5  ;;  %v3334_v0 = vadd.f32 %v3333_v52, %v9374_v19  ;;  %v3335_v38 = vpop.f32.mrb[146].mxu0  ;;  %v3598_v40 = vadd.f32 %v3597_v23, %v9375_v46  ;;  %v9379_v5 = vld [vmem:[#allocation57_spill] sm:$0xff] }
 0x3a5   : > { %3936 = vst [vmem:[#allocation2 + $0x260] sm:$0xff] %v3332_v59  ;;  %4042 = vst [vmem:[#allocation2 + $0x5b0] sm:$0xff] %v3596_v47  ;;  %v3336_v44 = vadd.f32 %v3335_v38, %v9376_v7  ;;  %v3337_v17 = vpop.f32.mrb[147].mxu0  ;;  %v9380_v47 = vld [vmem:[#allocation23_spill] sm:$0xff] }
 0x3a6   : > { %3937 = vst [vmem:[#allocation2 + $0x268] sm:$0xff] %v3334_v0  ;;  %4043 = vst [vmem:[#allocation2 + $0x5b8] sm:$0xff] %v3598_v40  ;;  %v3338_v55 = vadd.f32 %v3337_v17, %v9376_v7  ;;  %v9381_v7 = vld [vmem:[#allocation56_spill] sm:$0xff] }
 0x3a7   : > { %3938 = vst [vmem:[#allocation2 + $0x270] sm:$0xff] %v3336_v44 }
 0x3a8   : > { %3939 = vst [vmem:[#allocation2 + $0x278] sm:$0xff] %v3338_v55  ;;  %v3601_v21 = vpop.f32.mrb[64].mxu1 }
 0x3a9   : > { %v3602_v6 = vadd.f32 %v3601_v21, %v9377_v14  ;;  %v3603_v11 = vpop.f32.mrb[65].mxu1 }
 0x3aa   : > { %v3341_v22 = vpop.f32.mrb[148].mxu0  ;;  %v3604_v62 = vadd.f32 %v3603_v11, %v9377_v14  ;;  %v3605_v27 = vpop.f32.mrb[66].mxu1 }
 0x3ab   : > { %4044 = vst [vmem:[#allocation2 + $0x5c0] sm:$0xff] %v3602_v6  ;;  %v3342_v1 = vadd.f32 %v3341_v22, %v9378_v31  ;;  %v3343_v33 = vpop.f32.mrb[149].mxu0  ;;  %v3606_v8 = vadd.f32 %v3605_v27, %v9379_v5  ;;  %v3607_v19 = vpop.f32.mrb[67].mxu1  ;;  %v9382_v6 = vld [vmem:[#allocation22_spill] sm:$0xff] }
 0x3ac   : > { %4045 = vst [vmem:[#allocation2 + $0x5c8] sm:$0xff] %v3604_v62  ;;  %v3344_v59 = vadd.f32 %v3343_v33, %v9378_v31  ;;  %v3345_v52 = vpop.f32.mrb[150].mxu0  ;;  %v3608_v46 = vadd.f32 %v3607_v19, %v9379_v5  ;;  %v9383_v62 = vld [vmem:[#allocation59_spill] sm:$0xff] }
 0x3ad   : > { %3940 = vst [vmem:[#allocation2 + $0x280] sm:$0xff] %v3342_v1  ;;  %4046 = vst [vmem:[#allocation2 + $0x5d0] sm:$0xff] %v3606_v8  ;;  %v3346_v23 = vadd.f32 %v3345_v52, %v9380_v47  ;;  %v3347_v0 = vpop.f32.mrb[151].mxu0  ;;  %v9384_v8 = vld [vmem:[#allocation25_spill] sm:$0xff] }
 0x3ae   : > { %3941 = vst [vmem:[#allocation2 + $0x288] sm:$0xff] %v3344_v59  ;;  %4047 = vst [vmem:[#allocation2 + $0x5d8] sm:$0xff] %v3608_v46  ;;  %v3348_v38 = vadd.f32 %v3347_v0, %v9380_v47  ;;  %v9385_v47 = vld [vmem:[#allocation58_spill] sm:$0xff] }
 0x3af   : > { %3942 = vst [vmem:[#allocation2 + $0x290] sm:$0xff] %v3346_v23 }
 0x3b0   : > { %3943 = vst [vmem:[#allocation2 + $0x298] sm:$0xff] %v3348_v38  ;;  %v3611_v40 = vpop.f32.mrb[68].mxu1 }
 0x3b1   : > { %v3612_v44 = vadd.f32 %v3611_v40, %v9381_v7  ;;  %v3613_v17 = vpop.f32.mrb[69].mxu1 }
 0x3b2   : > { %v3351_v55 = vpop.f32.mrb[152].mxu0  ;;  %v3614_v21 = vadd.f32 %v3613_v17, %v9381_v7  ;;  %v3615_v14 = vpop.f32.mrb[70].mxu1 }
 0x3b3   : > { %4048 = vst [vmem:[#allocation2 + $0x5e0] sm:$0xff] %v3612_v44  ;;  %v3352_v11 = vadd.f32 %v3351_v55, %v9382_v6  ;;  %v3353_v22 = vpop.f32.mrb[153].mxu0  ;;  %v3616_v27 = vadd.f32 %v3615_v14, %v9383_v62  ;;  %v3617_v31 = vpop.f32.mrb[71].mxu1  ;;  %v9386_v44 = vld [vmem:[#allocation24_spill] sm:$0xff] }
 0x3b4   : > { %4049 = vst [vmem:[#allocation2 + $0x5e8] sm:$0xff] %v3614_v21  ;;  %v3354_v1 = vadd.f32 %v3353_v22, %v9382_v6  ;;  %v3355_v33 = vpop.f32.mrb[154].mxu0  ;;  %v3618_v5 = vadd.f32 %v3617_v31, %v9383_v62  ;;  %v9387_v21 = vld [vmem:[#allocation63_spill] sm:$0xff] }
 0x3b5   : > { %3944 = vst [vmem:[#allocation2 + $0x2a0] sm:$0xff] %v3352_v11  ;;  %4050 = vst [vmem:[#allocation2 + $0x5f0] sm:$0xff] %v3616_v27  ;;  %v3356_v19 = vadd.f32 %v3355_v33, %v9384_v8  ;;  %v3357_v59 = vpop.f32.mrb[155].mxu0  ;;  %v9388_v27 = vld [vmem:[#allocation27_spill] sm:$0xff] }
 0x3b6   : > { %3945 = vst [vmem:[#allocation2 + $0x2a8] sm:$0xff] %v3354_v1  ;;  %4051 = vst [vmem:[#allocation2 + $0x5f8] sm:$0xff] %v3618_v5  ;;  %v3358_v52 = vadd.f32 %v3357_v59, %v9384_v8  ;;  %v9389_v8 = vld [vmem:[#allocation62_spill] sm:$0xff] }
 0x3b7   : > { %3946 = vst [vmem:[#allocation2 + $0x2b0] sm:$0xff] %v3356_v19 }
 0x3b8   : > { %3947 = vst [vmem:[#allocation2 + $0x2b8] sm:$0xff] %v3358_v52  ;;  %v3621_v46 = vpop.f32.mrb[72].mxu1 }
 0x3b9   : > { %v3622_v23 = vadd.f32 %v3621_v46, %v9385_v47  ;;  %v3623_v0 = vpop.f32.mrb[73].mxu1 }
 0x3ba   : > { %v3361_v38 = vpop.f32.mrb[156].mxu0  ;;  %v3624_v40 = vadd.f32 %v3623_v0, %v9385_v47  ;;  %v3625_v7 = vpop.f32.mrb[74].mxu1 }
 0x3bb   : > { %4052 = vst [vmem:[#allocation2 + $0x600] sm:$0xff] %v3622_v23  ;;  %v3362_v17 = vadd.f32 %v3361_v38, %v9386_v44  ;;  %v3363_v55 = vpop.f32.mrb[157].mxu0  ;;  %v3626_v14 = vadd.f32 %v3625_v7, %v9387_v21  ;;  %v3627_v6 = vpop.f32.mrb[75].mxu1  ;;  %v9390_v23 = vld [vmem:[#allocation26_spill] sm:$0xff] }
 0x3bc   : > { %4053 = vst [vmem:[#allocation2 + $0x608] sm:$0xff] %v3624_v40  ;;  %v3364_v11 = vadd.f32 %v3363_v55, %v9386_v44  ;;  %v3365_v22 = vpop.f32.mrb[158].mxu0  ;;  %v3628_v62 = vadd.f32 %v3627_v6, %v9387_v21  ;;  %v9391_v40 = vld [vmem:[#allocation65_spill] sm:$0xff] }
 0x3bd   : > { %3948 = vst [vmem:[#allocation2 + $0x2c0] sm:$0xff] %v3362_v17  ;;  %4054 = vst [vmem:[#allocation2 + $0x610] sm:$0xff] %v3626_v14  ;;  %v3366_v31 = vadd.f32 %v3365_v22, %v9388_v27  ;;  %v3367_v1 = vpop.f32.mrb[159].mxu0  ;;  %v9392_v14 = vld [vmem:[#allocation29_spill] sm:$0xff] }
 0x3be   : > { %3949 = vst [vmem:[#allocation2 + $0x2c8] sm:$0xff] %v3364_v11  ;;  %4055 = vst [vmem:[#allocation2 + $0x618] sm:$0xff] %v3628_v62  ;;  %v3368_v33 = vadd.f32 %v3367_v1, %v9388_v27  ;;  %v9393_v27 = vld [vmem:[#allocation64_spill] sm:$0xff] }
 0x3bf   : > { %3950 = vst [vmem:[#allocation2 + $0x2d0] sm:$0xff] %v3366_v31 }
 0x3c0   : > { %3951 = vst [vmem:[#allocation2 + $0x2d8] sm:$0xff] %v3368_v33  ;;  %v3631_v5 = vpop.f32.mrb[76].mxu1 }
 0x3c1   : > { %v3632_v19 = vadd.f32 %v3631_v5, %v9389_v8  ;;  %v3633_v59 = vpop.f32.mrb[77].mxu1 }
 0x3c2   : > { %v3371_v52 = vpop.f32.mrb[160].mxu0  ;;  %v3634_v46 = vadd.f32 %v3633_v59, %v9389_v8  ;;  %v3635_v47 = vpop.f32.mrb[78].mxu1 }
 0x3c3   : > { %4056 = vst [vmem:[#allocation2 + $0x620] sm:$0xff] %v3632_v19  ;;  %v3372_v0 = vadd.f32 %v3371_v52, %v9390_v23  ;;  %v3373_v38 = vpop.f32.mrb[161].mxu0  ;;  %v3636_v7 = vadd.f32 %v3635_v47, %v9391_v40  ;;  %v3637_v44 = vpop.f32.mrb[79].mxu1  ;;  %v9394_v19 = vld [vmem:[#allocation28_spill] sm:$0xff] }
 0x3c4   : > { %4057 = vst [vmem:[#allocation2 + $0x628] sm:$0xff] %v3634_v46  ;;  %v3374_v17 = vadd.f32 %v3373_v38, %v9390_v23  ;;  %v3375_v55 = vpop.f32.mrb[162].mxu0  ;;  %v3638_v21 = vadd.f32 %v3637_v44, %v9391_v40  ;;  %v9395_v46 = vld [vmem:[#allocation67_spill] sm:$0xff] }
 0x3c5   : > { %3952 = vst [vmem:[#allocation2 + $0x2e0] sm:$0xff] %v3372_v0  ;;  %4058 = vst [vmem:[#allocation2 + $0x630] sm:$0xff] %v3636_v7  ;;  %v3376_v6 = vadd.f32 %v3375_v55, %v9392_v14  ;;  %v3377_v11 = vpop.f32.mrb[163].mxu0  ;;  %v9396_v7 = vld [vmem:[#allocation31_spill] sm:$0xff] }
 0x3c6   : > { %3953 = vst [vmem:[#allocation2 + $0x2e8] sm:$0xff] %v3374_v17  ;;  %4059 = vst [vmem:[#allocation2 + $0x638] sm:$0xff] %v3638_v21  ;;  %v3378_v22 = vadd.f32 %v3377_v11, %v9392_v14  ;;  %v9397_v14 = vld [vmem:[#allocation66_spill] sm:$0xff] }
 0x3c7   : > { %3954 = vst [vmem:[#allocation2 + $0x2f0] sm:$0xff] %v3376_v6 }
 0x3c8   : > { %3955 = vst [vmem:[#allocation2 + $0x2f8] sm:$0xff] %v3378_v22  ;;  %v3641_v62 = vpop.f32.mrb[80].mxu1 }
 0x3c9   : > { %v3642_v31 = vadd.f32 %v3641_v62, %v9393_v27  ;;  %v3643_v1 = vpop.f32.mrb[81].mxu1 }
 0x3ca   : > { %v3381_v33 = vpop.f32.mrb[164].mxu0  ;;  %v3644_v5 = vadd.f32 %v3643_v1, %v9393_v27  ;;  %v3645_v8 = vpop.f32.mrb[82].mxu1 }
 0x3cb   : > { %4060 = vst [vmem:[#allocation2 + $0x640] sm:$0xff] %v3642_v31  ;;  %v3382_v59 = vadd.f32 %v3381_v33, %v9394_v19  ;;  %v3383_v52 = vpop.f32.mrb[165].mxu0  ;;  %v3646_v47 = vadd.f32 %v3645_v8, %v9395_v46  ;;  %v3647_v23 = vpop.f32.mrb[83].mxu1  ;;  %v9398_v31 = vld [vmem:[#allocation30_spill] sm:$0xff] }
 0x3cc   : > { %4061 = vst [vmem:[#allocation2 + $0x648] sm:$0xff] %v3644_v5  ;;  %v3384_v0 = vadd.f32 %v3383_v52, %v9394_v19  ;;  %v3385_v38 = vpop.f32.mrb[166].mxu0  ;;  %v3648_v40 = vadd.f32 %v3647_v23, %v9395_v46  ;;  %v9399_v5 = vld [vmem:[#allocation69_spill] sm:$0xff] }
 0x3cd   : > { %3956 = vst [vmem:[#allocation2 + $0x300] sm:$0xff] %v3382_v59  ;;  %4062 = vst [vmem:[#allocation2 + $0x650] sm:$0xff] %v3646_v47  ;;  %v3386_v44 = vadd.f32 %v3385_v38, %v9396_v7  ;;  %v3387_v17 = vpop.f32.mrb[167].mxu0  ;;  %v9400_v47 = vld [vmem:[#allocation33_spill] sm:$0xff] }
 0x3ce   : > { %3957 = vst [vmem:[#allocation2 + $0x308] sm:$0xff] %v3384_v0  ;;  %4063 = vst [vmem:[#allocation2 + $0x658] sm:$0xff] %v3648_v40  ;;  %v3388_v55 = vadd.f32 %v3387_v17, %v9396_v7  ;;  %v9401_v7 = vld [vmem:[#allocation68_spill] sm:$0xff] }
 0x3cf   : > { %3958 = vst [vmem:[#allocation2 + $0x310] sm:$0xff] %v3386_v44 }
 0x3d0   : > { %3959 = vst [vmem:[#allocation2 + $0x318] sm:$0xff] %v3388_v55  ;;  %v3651_v21 = vpop.f32.mrb[84].mxu1 }
 0x3d1   : > { %v3652_v6 = vadd.f32 %v3651_v21, %v9397_v14  ;;  %v3653_v11 = vpop.f32.mrb[85].mxu1 }
 0x3d2   : > { %v3391_v22 = vpop.f32.mrb[168].mxu0  ;;  %v3654_v62 = vadd.f32 %v3653_v11, %v9397_v14  ;;  %v3655_v27 = vpop.f32.mrb[86].mxu1 }
 0x3d3   : > { %4064 = vst [vmem:[#allocation2 + $0x660] sm:$0xff] %v3652_v6  ;;  %v3392_v1 = vadd.f32 %v3391_v22, %v9398_v31  ;;  %v3393_v33 = vpop.f32.mrb[169].mxu0  ;;  %v3656_v8 = vadd.f32 %v3655_v27, %v9399_v5  ;;  %v3657_v19 = vpop.f32.mrb[87].mxu1  ;;  %v9402_v6 = vld [vmem:[#allocation32_spill] sm:$0xff] }
 0x3d4   : > { %4065 = vst [vmem:[#allocation2 + $0x668] sm:$0xff] %v3654_v62  ;;  %v3394_v59 = vadd.f32 %v3393_v33, %v9398_v31  ;;  %v3395_v52 = vpop.f32.mrb[170].mxu0  ;;  %v3658_v46 = vadd.f32 %v3657_v19, %v9399_v5  ;;  %v9403_v62 = vld [vmem:[#allocation71_spill] sm:$0xff] }
 0x3d5   : > { %3960 = vst [vmem:[#allocation2 + $0x320] sm:$0xff] %v3392_v1  ;;  %4066 = vst [vmem:[#allocation2 + $0x670] sm:$0xff] %v3656_v8  ;;  %v3396_v23 = vadd.f32 %v3395_v52, %v9400_v47  ;;  %v3397_v0 = vpop.f32.mrb[171].mxu0  ;;  %v9404_v8 = vld [vmem:[#allocation35_spill] sm:$0xff] }
 0x3d6   : > { %3961 = vst [vmem:[#allocation2 + $0x328] sm:$0xff] %v3394_v59  ;;  %4067 = vst [vmem:[#allocation2 + $0x678] sm:$0xff] %v3658_v46  ;;  %v3398_v38 = vadd.f32 %v3397_v0, %v9400_v47  ;;  %v9405_v47 = vld [vmem:[#allocation70_spill] sm:$0xff] }
 0x3d7   : > { %3962 = vst [vmem:[#allocation2 + $0x330] sm:$0xff] %v3396_v23 }
 0x3d8   : > { %3963 = vst [vmem:[#allocation2 + $0x338] sm:$0xff] %v3398_v38  ;;  %v3661_v40 = vpop.f32.mrb[88].mxu1 }
 0x3d9   : > { %v3662_v44 = vadd.f32 %v3661_v40, %v9401_v7  ;;  %v3663_v17 = vpop.f32.mrb[89].mxu1 }
 0x3da   : > { %v3401_v55 = vpop.f32.mrb[172].mxu0  ;;  %v3664_v21 = vadd.f32 %v3663_v17, %v9401_v7  ;;  %v3665_v14 = vpop.f32.mrb[90].mxu1 }
 0x3db   : > { %4068 = vst [vmem:[#allocation2 + $0x680] sm:$0xff] %v3662_v44  ;;  %v3402_v11 = vadd.f32 %v3401_v55, %v9402_v6  ;;  %v3403_v22 = vpop.f32.mrb[173].mxu0  ;;  %v3666_v27 = vadd.f32 %v3665_v14, %v9403_v62  ;;  %v3667_v31 = vpop.f32.mrb[91].mxu1  ;;  %v9406_v44 = vld [vmem:[#allocation34_spill] sm:$0xff] }
 0x3dc   : > { %4069 = vst [vmem:[#allocation2 + $0x688] sm:$0xff] %v3664_v21  ;;  %v3404_v1 = vadd.f32 %v3403_v22, %v9402_v6  ;;  %v3405_v33 = vpop.f32.mrb[174].mxu0  ;;  %v3668_v5 = vadd.f32 %v3667_v31, %v9403_v62  ;;  %v9407_v21 = vld [vmem:[#allocation73_spill] sm:$0xff] }
 0x3dd   : > { %3964 = vst [vmem:[#allocation2 + $0x340] sm:$0xff] %v3402_v11  ;;  %4070 = vst [vmem:[#allocation2 + $0x690] sm:$0xff] %v3666_v27  ;;  %v3406_v19 = vadd.f32 %v3405_v33, %v9404_v8  ;;  %v3407_v59 = vpop.f32.mrb[175].mxu0  ;;  %v9408_v27 = vld [vmem:[#allocation37_spill] sm:$0xff] }
 0x3de   : > { %3965 = vst [vmem:[#allocation2 + $0x348] sm:$0xff] %v3404_v1  ;;  %4071 = vst [vmem:[#allocation2 + $0x698] sm:$0xff] %v3668_v5  ;;  %v3408_v52 = vadd.f32 %v3407_v59, %v9404_v8  ;;  %v9409_v8 = vld [vmem:[#allocation72_spill] sm:$0xff] }
 0x3df   : > { %3966 = vst [vmem:[#allocation2 + $0x350] sm:$0xff] %v3406_v19 }
 0x3e0   : > { %3967 = vst [vmem:[#allocation2 + $0x358] sm:$0xff] %v3408_v52  ;;  %v3671_v46 = vpop.f32.mrb[92].mxu1 }
 0x3e1   : > { %v3672_v23 = vadd.f32 %v3671_v46, %v9405_v47  ;;  %v3673_v0 = vpop.f32.mrb[93].mxu1 }
 0x3e2   : > { %v3411_v38 = vpop.f32.mrb[176].mxu0  ;;  %v3674_v40 = vadd.f32 %v3673_v0, %v9405_v47  ;;  %v3675_v7 = vpop.f32.mrb[94].mxu1 }
 0x3e3   : > { %4072 = vst [vmem:[#allocation2 + $0x6a0] sm:$0xff] %v3672_v23  ;;  %v3412_v17 = vadd.f32 %v3411_v38, %v9406_v44  ;;  %v3413_v55 = vpop.f32.mrb[177].mxu0  ;;  %v3676_v14 = vadd.f32 %v3675_v7, %v9407_v21  ;;  %v3677_v6 = vpop.f32.mrb[95].mxu1  ;;  %v9410_v23 = vld [vmem:[#allocation36_spill] sm:$0xff] }
 0x3e4   : > { %4073 = vst [vmem:[#allocation2 + $0x6a8] sm:$0xff] %v3674_v40  ;;  %v3414_v11 = vadd.f32 %v3413_v55, %v9406_v44  ;;  %v3415_v22 = vpop.f32.mrb[178].mxu0  ;;  %v3678_v62 = vadd.f32 %v3677_v6, %v9407_v21  ;;  %v9411_v21 = vld [vmem:[#allocation39_spill] sm:$0xff] }
 0x3e5   : > { %3968 = vst [vmem:[#allocation2 + $0x360] sm:$0xff] %v3412_v17  ;;  %4074 = vst [vmem:[#allocation2 + $0x6b0] sm:$0xff] %v3676_v14  ;;  %v3416_v31 = vadd.f32 %v3415_v22, %v9408_v27  ;;  %v3417_v1 = vpop.f32.mrb[179].mxu0 }
 0x3e6   : > { %3969 = vst [vmem:[#allocation2 + $0x368] sm:$0xff] %v3414_v11  ;;  %4075 = vst [vmem:[#allocation2 + $0x6b8] sm:$0xff] %v3678_v62  ;;  %v3418_v33 = vadd.f32 %v3417_v1, %v9408_v27  ;;  %v9412_v62 = vld [vmem:[#allocation74_spill] sm:$0xff] }
 0x3e7   : > { %3970 = vst [vmem:[#allocation2 + $0x370] sm:$0xff] %v3416_v31 }
 0x3e8   : > { %3971 = vst [vmem:[#allocation2 + $0x378] sm:$0xff] %v3418_v33  ;;  %v3681_v5 = vpop.f32.mrb[96].mxu1 }
 0x3e9   : > { %v3682_v19 = vadd.f32 %v3681_v5, %v9409_v8  ;;  %v3683_v59 = vpop.f32.mrb[97].mxu1 }
 0x3ea   : > { %v3421_v52 = vpop.f32.mrb[180].mxu0  ;;  %v3684_v46 = vadd.f32 %v3683_v59, %v9409_v8  ;;  %v3685_v47 = vpop.f32.mrb[98].mxu1  ;;  %v9414_v59 = vld [vmem:[#allocation76_spill] sm:$0xff] }
 0x3eb   : > { %4076 = vst [vmem:[#allocation2 + $0x6c0] sm:$0xff] %v3682_v19  ;;  %v3422_v0 = vadd.f32 %v3421_v52, %v9410_v23  ;;  %v3423_v38 = vpop.f32.mrb[181].mxu0  ;;  %v3686_v40 = vadd.f32 %v3685_v47, %v7313_v53  ;;  %v3687_v7 = vpop.f32.mrb[99].mxu1 }
 0x3ec   : > { %4077 = vst [vmem:[#allocation2 + $0x6c8] sm:$0xff] %v3684_v46  ;;  %v3424_v44 = vadd.f32 %v3423_v38, %v9410_v23  ;;  %v3425_v17 = vpop.f32.mrb[182].mxu0  ;;  %v3688_v55 = vadd.f32 %v3687_v7, %v7313_v53  ;;  %v9413_v53 = vld [vmem:[#allocation38_spill] sm:$0xff]  ;;  %v9415_v38 = vld [vmem:[#allocation41_spill] sm:$0xff] }
 0x3ed   : > { %3972 = vst [vmem:[#allocation2 + $0x380] sm:$0xff] %v3422_v0  ;;  %4078 = vst [vmem:[#allocation2 + $0x6d0] sm:$0xff] %v3686_v40  ;;  %v3426_v14 = vadd.f32 %v3425_v17, %v9411_v21  ;;  %v3427_v6 = vpop.f32.mrb[183].mxu0 }
 0x3ee   : > { %3973 = vst [vmem:[#allocation2 + $0x388] sm:$0xff] %v3424_v44  ;;  %4079 = vst [vmem:[#allocation2 + $0x6d8] sm:$0xff] %v3688_v55  ;;  %v3428_v11 = vadd.f32 %v3427_v6, %v9411_v21  ;;  %v9416_v55 = vld [vmem:[#allocation75_spill] sm:$0xff] }
 0x3ef   : > { %3974 = vst [vmem:[#allocation2 + $0x390] sm:$0xff] %v3426_v14 }
 0x3f0   : > { %3975 = vst [vmem:[#allocation2 + $0x398] sm:$0xff] %v3428_v11  ;;  %v3691_v22 = vpop.f32.mrb[100].mxu1 }
 0x3f1   : > { %v3692_v27 = vadd.f32 %v3691_v22, %v9412_v62  ;;  %v3693_v31 = vpop.f32.mrb[101].mxu1 }
 0x3f2   : > { %v3431_v1 = vpop.f32.mrb[184].mxu0  ;;  %v3694_v33 = vadd.f32 %v3693_v31, %v9412_v62  ;;  %v3695_v5 = vpop.f32.mrb[102].mxu1  ;;  %v9417_v62 = vld [vmem:[#allocation40_spill] sm:$0xff] }
 0x3f3   : > { %4080 = vst [vmem:[#allocation2 + $0x6e0] sm:$0xff] %v3692_v27  ;;  %v3432_v8 = vadd.f32 %v3431_v1, %v9413_v53  ;;  %v3433_v19 = vpop.f32.mrb[185].mxu0  ;;  %v3696_v52 = vadd.f32 %v3695_v5, %v9414_v59  ;;  %v3697_v46 = vpop.f32.mrb[103].mxu1 }
 0x3f4   : > { %4081 = vst [vmem:[#allocation2 + $0x6e8] sm:$0xff] %v3694_v33  ;;  %v3434_v47 = vadd.f32 %v3433_v19, %v9413_v53  ;;  %v3435_v23 = vpop.f32.mrb[186].mxu0  ;;  %v3698_v0 = vadd.f32 %v3697_v46, %v9414_v59  ;;  %v9418_v19 = vld [vmem:[#allocation42_spill] sm:$0xff] }
 0x3f5   : > { %3976 = vst [vmem:[#allocation2 + $0x3a0] sm:$0xff] %v3432_v8  ;;  %4082 = vst [vmem:[#allocation2 + $0x6f0] sm:$0xff] %v3696_v52  ;;  %v3436_v40 = vadd.f32 %v3435_v23, %v9415_v38  ;;  %v3437_v7 = vpop.f32.mrb[187].mxu0  ;;  %v9419_v23 = vld [vmem:[#allocation77_spill] sm:$0xff] }
 0x3f6   : > { %3977 = vst [vmem:[#allocation2 + $0x3a8] sm:$0xff] %v3434_v47  ;;  %4083 = vst [vmem:[#allocation2 + $0x6f8] sm:$0xff] %v3698_v0  ;;  %v3438_v44 = vadd.f32 %v3437_v7, %v9415_v38 }
 0x3f7   : > { %3978 = vst [vmem:[#allocation2 + $0x3b0] sm:$0xff] %v3436_v40 }
 0x3f8   : > { %3979 = vst [vmem:[#allocation2 + $0x3b8] sm:$0xff] %v3438_v44  ;;  %v3701_v17 = vpop.f32.mrb[104].mxu1 }
 0x3f9   : > { %v3702_v21 = vadd.f32 %v3701_v17, %v9416_v55  ;;  %v3703_v14 = vpop.f32.mrb[105].mxu1 }
 0x3fa   : > { %v3441_v6 = vpop.f32.mrb[188].mxu0  ;;  %v3704_v11 = vadd.f32 %v3703_v14, %v9416_v55  ;;  %v3705_v22 = vpop.f32.mrb[106].mxu1 }
 0x3fb   : > { %4084 = vst [vmem:[#allocation2 + $0x700] sm:$0xff] %v3702_v21  ;;  %v3442_v27 = vadd.f32 %v3441_v6, %v9417_v62  ;;  %v3443_v31 = vpop.f32.mrb[189].mxu0  ;;  %v3706_v1 = vadd.f32 %v3705_v22, %v7337_v20  ;;  %v3707_v33 = vpop.f32.mrb[107].mxu1  ;;  %v9420_v22 = vld [vmem:[#allocation79_spill] sm:$0xff] }
 0x3fc   : > { %4085 = vst [vmem:[#allocation2 + $0x708] sm:$0xff] %v3704_v11  ;;  %v3444_v5 = vadd.f32 %v3443_v31, %v9417_v62  ;;  %v3445_v53 = vpop.f32.mrb[190].mxu0  ;;  %v3708_v8 = vadd.f32 %v3707_v33, %v7337_v20 }
 0x3fd   : > { %3980 = vst [vmem:[#allocation2 + $0x3c0] sm:$0xff] %v3442_v27  ;;  %4086 = vst [vmem:[#allocation2 + $0x710] sm:$0xff] %v3706_v1  ;;  %v3446_v59 = vadd.f32 %v3445_v53, %v9418_v19  ;;  %v3447_v52 = vpop.f32.mrb[191].mxu0 }
 0x3fe   : > { %3981 = vst [vmem:[#allocation2 + $0x3c8] sm:$0xff] %v3444_v5  ;;  %4087 = vst [vmem:[#allocation2 + $0x718] sm:$0xff] %v3708_v8  ;;  %v3448_v46 = vadd.f32 %v3447_v52, %v9418_v19 }
 0x3ff   : > { %3982 = vst [vmem:[#allocation2 + $0x3d0] sm:$0xff] %v3446_v59 }
 0x400   : > { %3983 = vst [vmem:[#allocation2 + $0x3d8] sm:$0xff] %v3448_v46  ;;  %v3711_v47 = vpop.f32.mrb[108].mxu1 }
 0x401   : > { %v3712_v0 = vadd.f32 %v3711_v47, %v9419_v23  ;;  %v3713_v38 = vpop.f32.mrb[109].mxu1 }
 0x402   : > { %v3714_v40 = vadd.f32 %v3713_v38, %v9419_v23  ;;  %v3715_v7 = vpop.f32.mrb[110].mxu1  ;;  %v9422_v38 = vld [vmem:[#allocation81_spill] sm:$0xff] }
 0x403   : > { %4088 = vst [vmem:[#allocation2 + $0x720] sm:$0xff] %v3712_v0  ;;  %v3716_v20 = vadd.f32 %v3715_v7, %v7344_v25  ;;  %v3717_v44 = vpop.f32.mrb[111].mxu1 }
 0x404   : > { %4089 = vst [vmem:[#allocation2 + $0x728] sm:$0xff] %v3714_v40  ;;  %v3718_v17 = vadd.f32 %v3717_v44, %v7344_v25  ;;  %v9421_v25 = vld [vmem:[#allocation78_spill] sm:$0xff] }
 0x405   : > { %4090 = vst [vmem:[#allocation2 + $0x730] sm:$0xff] %v3716_v20 }
 0x406   : > { %4091 = vst [vmem:[#allocation2 + $0x738] sm:$0xff] %v3718_v17 }
 0x408   : > { %v3721_v55 = vpop.f32.mrb[112].mxu1 }
 0x409   : > { %v3722_v21 = vadd.f32 %v3721_v55, %v7342_v60  ;;  %v3723_v14 = vpop.f32.mrb[113].mxu1 }
 0x40a   : > { %v3724_v6 = vadd.f32 %v3723_v14, %v7342_v60  ;;  %v3725_v11 = vpop.f32.mrb[114].mxu1 }
 0x40b   : > { %4092 = vst [vmem:[#allocation2 + $0x740] sm:$0xff] %v3722_v21  ;;  %v3726_v62 = vadd.f32 %v3725_v11, %v9420_v22  ;;  %v3727_v27 = vpop.f32.mrb[115].mxu1 }
 0x40c   : > { %4093 = vst [vmem:[#allocation2 + $0x748] sm:$0xff] %v3724_v6  ;;  %v3728_v31 = vadd.f32 %v3727_v27, %v9420_v22 }
 0x40d   : > { %4094 = vst [vmem:[#allocation2 + $0x750] sm:$0xff] %v3726_v62 }
 0x40e   : > { %4095 = vst [vmem:[#allocation2 + $0x758] sm:$0xff] %v3728_v31 }
 0x410   : > { %v3731_v1 = vpop.f32.mrb[116].mxu1 }
 0x411   : > { %v3732_v33 = vadd.f32 %v3731_v1, %v9421_v25  ;;  %v3733_v5 = vpop.f32.mrb[117].mxu1 }
 0x412   : > { %v3734_v53 = vadd.f32 %v3733_v5, %v9421_v25  ;;  %v3735_v8 = vpop.f32.mrb[118].mxu1  ;;  %v9424_v25 = vld [vmem:[#allocation82_spill] sm:$0xff] }
 0x413   : > { %4096 = vst [vmem:[#allocation2 + $0x760] sm:$0xff] %v3732_v33  ;;  %v3736_v60 = vadd.f32 %v3735_v8, %v7360_v24  ;;  %v3737_v19 = vpop.f32.mrb[119].mxu1 }
 0x414   : > { %4097 = vst [vmem:[#allocation2 + $0x768] sm:$0xff] %v3734_v53  ;;  %v3738_v59 = vadd.f32 %v3737_v19, %v7360_v24  ;;  %v9423_v24 = vld [vmem:[#allocation80_spill] sm:$0xff] }
 0x415   : > { %4098 = vst [vmem:[#allocation2 + $0x770] sm:$0xff] %v3736_v60 }
 0x416   : > { %4099 = vst [vmem:[#allocation2 + $0x778] sm:$0xff] %v3738_v59 }
 0x418   : > { %v3741_v52 = vpop.f32.mrb[120].mxu1 }
 0x419   : > { %v3742_v46 = vadd.f32 %v3741_v52, %v7358_v12  ;;  %v3743_v47 = vpop.f32.mrb[121].mxu1 }
 0x41a   : > { %v3744_v23 = vadd.f32 %v3743_v47, %v7358_v12  ;;  %v3745_v0 = vpop.f32.mrb[122].mxu1 }
 0x41b   : > { %4100 = vst [vmem:[#allocation2 + $0x780] sm:$0xff] %v3742_v46  ;;  %v3746_v40 = vadd.f32 %v3745_v0, %v9422_v38  ;;  %v3747_v7 = vpop.f32.mrb[123].mxu1 }
 0x41c   : > { %4101 = vst [vmem:[#allocation2 + $0x788] sm:$0xff] %v3744_v23  ;;  %v3748_v20 = vadd.f32 %v3747_v7, %v9422_v38 }
 0x41d   : > { %4102 = vst [vmem:[#allocation2 + $0x790] sm:$0xff] %v3746_v40 }
 0x41e   : > { %4103 = vst [vmem:[#allocation2 + $0x798] sm:$0xff] %v3748_v20 }
 0x420   : > { %v3751_v44 = vpop.f32.mrb[124].mxu1 }
 0x421   : > { %v3752_v17 = vadd.f32 %v3751_v44, %v9423_v24  ;;  %v3753_v55 = vpop.f32.mrb[125].mxu1 }
 0x422   : > { %v3754_v21 = vadd.f32 %v3753_v55, %v9423_v24  ;;  %v3755_v14 = vpop.f32.mrb[126].mxu1 }
 0x423   : > { %4104 = vst [vmem:[#allocation2 + $0x7a0] sm:$0xff] %v3752_v17  ;;  %v3756_v12 = vadd.f32 %v3755_v14, %v7375_v35  ;;  %v3757_v6 = vpop.f32.mrb[127].mxu1 }
 0x424   : > { %4105 = vst [vmem:[#allocation2 + $0x7a8] sm:$0xff] %v3754_v21  ;;  %v3758_v11 = vadd.f32 %v3757_v6, %v7375_v35  ;;  %v9425_v35 = vld [vmem:[#allocation83_spill] sm:$0xff] }
 0x425   : > { %4106 = vst [vmem:[#allocation2 + $0x7b0] sm:$0xff] %v3756_v12 }
 0x426   : > { %4107 = vst [vmem:[#allocation2 + $0x7b8] sm:$0xff] %v3758_v11 }
 0x428   : > { %v3761_v22 = vpop.f32.mrb[128].mxu1 }
 0x429   : > { %v3762_v62 = vadd.f32 %v3761_v22, %v7373_v63  ;;  %v3763_v27 = vpop.f32.mrb[129].mxu1 }
 0x42a   : > { %v3764_v31 = vadd.f32 %v3763_v27, %v7373_v63  ;;  %v3765_v1 = vpop.f32.mrb[130].mxu1 }
 0x42b   : > { %4108 = vst [vmem:[#allocation2 + $0x7c0] sm:$0xff] %v3762_v62  ;;  %v3766_v33 = vadd.f32 %v3765_v1, %v9424_v25  ;;  %v3767_v5 = vpop.f32.mrb[131].mxu1 }
 0x42c   : > { %4109 = vst [vmem:[#allocation2 + $0x7c8] sm:$0xff] %v3764_v31  ;;  %v3768_v53 = vadd.f32 %v3767_v5, %v9424_v25 }
 0x42d   : > { %4110 = vst [vmem:[#allocation2 + $0x7d0] sm:$0xff] %v3766_v33 }
 0x42e   : > { %4111 = vst [vmem:[#allocation2 + $0x7d8] sm:$0xff] %v3768_v53 }
 0x430   : > { %v3771_v8 = vpop.f32.mrb[132].mxu1 }
 0x431   : > { %v3772_v60 = vadd.f32 %v3771_v8, %v9425_v35  ;;  %v3773_v19 = vpop.f32.mrb[133].mxu1 }
 0x432   : > { %v3774_v59 = vadd.f32 %v3773_v19, %v9425_v35  ;;  %v3775_v52 = vpop.f32.mrb[134].mxu1 }
 0x433   : > { %4112 = vst [vmem:[#allocation2 + $0x7e0] sm:$0xff] %v3772_v60  ;;  %v3776_v63 = vadd.f32 %v3775_v52, %v7387_v18  ;;  %v3777_v46 = vpop.f32.mrb[135].mxu1 }
 0x434   : > { %4113 = vst [vmem:[#allocation2 + $0x7e8] sm:$0xff] %v3774_v59  ;;  %v3778_v47 = vadd.f32 %v3777_v46, %v7387_v18 }
 0x435   : > { %4114 = vst [vmem:[#allocation2 + $0x7f0] sm:$0xff] %v3776_v63 }
 0x436   : > { %4115 = vst [vmem:[#allocation2 + $0x7f8] sm:$0xff] %v3778_v47 }
 0x438   : > { %v3781_v23 = vpop.f32.mrb[136].mxu1 }
 0x439   : > { %v3782_v0 = vadd.f32 %v3781_v23, %v7395_v16  ;;  %v3783_v38 = vpop.f32.mrb[137].mxu1 }
 0x43a   : > { %v3784_v40 = vadd.f32 %v3783_v38, %v7395_v16  ;;  %v3785_v7 = vpop.f32.mrb[138].mxu1 }
 0x43b   : > { %4116 = vst [vmem:[#allocation2 + $0x800] sm:$0xff] %v3782_v0  ;;  %v3786_v20 = vadd.f32 %v3785_v7, %v7399_v41  ;;  %v3787_v44 = vpop.f32.mrb[139].mxu1 }
 0x43c   : > { %4117 = vst [vmem:[#allocation2 + $0x808] sm:$0xff] %v3784_v40  ;;  %v3788_v24 = vadd.f32 %v3787_v44, %v7399_v41 }
 0x43d   : > { %4118 = vst [vmem:[#allocation2 + $0x810] sm:$0xff] %v3786_v20 }
 0x43e   : > { %4119 = vst [vmem:[#allocation2 + $0x818] sm:$0xff] %v3788_v24 }
 0x440   : > { %v3791_v17 = vpop.f32.mrb[140].mxu1 }
 0x441   : > { %v3792_v18 = vadd.f32 %v3791_v17, %v7407_v56  ;;  %v3793_v55 = vpop.f32.mrb[141].mxu1 }
 0x442   : > { %v3794_v21 = vadd.f32 %v3793_v55, %v7407_v56  ;;  %v3795_v14 = vpop.f32.mrb[142].mxu1 }
 0x443   : > { %4120 = vst [vmem:[#allocation2 + $0x820] sm:$0xff] %v3792_v18  ;;  %v3796_v16 = vadd.f32 %v3795_v14, %v7411_v45  ;;  %v3797_v12 = vpop.f32.mrb[143].mxu1 }
 0x444   : > { %4121 = vst [vmem:[#allocation2 + $0x828] sm:$0xff] %v3794_v21  ;;  %v3798_v6 = vadd.f32 %v3797_v12, %v7411_v45  ;;  %v2385_v12 = vpop.permute.xlu0 %2384 }
 0x445   : > { %4122 = vst [vmem:[#allocation2 + $0x830] sm:$0xff] %v3796_v16 }
 0x446   : > { %4123 = vst [vmem:[#allocation2 + $0x838] sm:$0xff] %v3798_v6 }
 0x448   : > { %v3801_v11 = vpop.f32.mrb[144].mxu1 }
 0x449   : > { %v3802_v41 = vadd.f32 %v3801_v11, %v7417_v9  ;;  %v3803_v22 = vpop.f32.mrb[145].mxu1 }
 0x44a   : > { %v3804_v62 = vadd.f32 %v3803_v22, %v7417_v9  ;;  %v3805_v27 = vpop.f32.mrb[146].mxu1 }
 0x44b   : > { %4124 = vst [vmem:[#allocation2 + $0x840] sm:$0xff] %v3802_v41  ;;  %v3806_v56 = vadd.f32 %v3805_v27, %v7423_v50  ;;  %v3807_v31 = vpop.f32.mrb[147].mxu1 }
 0x44c   : > { %4125 = vst [vmem:[#allocation2 + $0x848] sm:$0xff] %v3804_v62  ;;  %v3808_v1 = vadd.f32 %v3807_v31, %v7423_v50 }
 0x44d   : > { %4126 = vst [vmem:[#allocation2 + $0x850] sm:$0xff] %v3806_v56 }
 0x44e   : > { %4127 = vst [vmem:[#allocation2 + $0x858] sm:$0xff] %v3808_v1 }
 0x450   : > { %v3811_v25 = vpop.f32.mrb[148].mxu1 }
 0x451   : > { %v3812_v45 = vadd.f32 %v3811_v25, %v7431_v37  ;;  %v3813_v33 = vpop.f32.mrb[149].mxu1 }
 0x452   : > { %v3814_v5 = vadd.f32 %v3813_v33, %v7431_v37  ;;  %v3815_v53 = vpop.f32.mrb[150].mxu1 }
 0x453   : > { %4128 = vst [vmem:[#allocation2 + $0x860] sm:$0xff] %v3812_v45  ;;  %v3816_v9 = vadd.f32 %v3815_v53, %v7433_v32  ;;  %v3817_v8 = vpop.f32.mrb[151].mxu1 }
 0x454   : > { %4129 = vst [vmem:[#allocation2 + $0x868] sm:$0xff] %v3814_v5  ;;  %v3818_v35 = vadd.f32 %v3817_v8, %v7433_v32 }
 0x455   : > { %4130 = vst [vmem:[#allocation2 + $0x870] sm:$0xff] %v3816_v9 }
 0x456   : > { %4131 = vst [vmem:[#allocation2 + $0x878] sm:$0xff] %v3818_v35 }
 0x458   : > { %v3821_v60 = vpop.f32.mrb[152].mxu1 }
 0x459   : > { %v3822_v50 = vadd.f32 %v3821_v60, %v7445_v30  ;;  %v3823_v19 = vpop.f32.mrb[153].mxu1 }
 0x45a   : > { %v3824_v59 = vadd.f32 %v3823_v19, %v7445_v30  ;;  %v3825_v52 = vpop.f32.mrb[154].mxu1 }
 0x45b   : > { %4132 = vst [vmem:[#allocation2 + $0x880] sm:$0xff] %v3822_v50  ;;  %v3826_v37 = vadd.f32 %v3825_v52, %v7447_v26  ;;  %v3827_v63 = vpop.f32.mrb[155].mxu1 }
 0x45c   : > { %4133 = vst [vmem:[#allocation2 + $0x888] sm:$0xff] %v3824_v59  ;;  %v3828_v46 = vadd.f32 %v3827_v63, %v7447_v26 }
 0x45d   : > { %4134 = vst [vmem:[#allocation2 + $0x890] sm:$0xff] %v3826_v37 }
 0x45e   : > { %4135 = vst [vmem:[#allocation2 + $0x898] sm:$0xff] %v3828_v46 }
 0x460   : > { %v3831_v47 = vpop.f32.mrb[156].mxu1 }
 0x461   : > { %v3832_v32 = vadd.f32 %v3831_v47, %v7459_v15  ;;  %v3833_v23 = vpop.f32.mrb[157].mxu1 }
 0x462   : > { %v3834_v0 = vadd.f32 %v3833_v23, %v7459_v15  ;;  %v3835_v38 = vpop.f32.mrb[158].mxu1 }
 0x463   : > { %4136 = vst [vmem:[#allocation2 + $0x8a0] sm:$0xff] %v3832_v32  ;;  %v3836_v30 = vadd.f32 %v3835_v38, %v7461_v48  ;;  %v3837_v40 = vpop.f32.mrb[159].mxu1 }
 0x464   : > { %4137 = vst [vmem:[#allocation2 + $0x8a8] sm:$0xff] %v3834_v0  ;;  %v3838_v7 = vadd.f32 %v3837_v40, %v7461_v48  ;;  %v2380_v48 = vpop.permute.xlu1 %2379 }
 0x465   : > { %4138 = vst [vmem:[#allocation2 + $0x8b0] sm:$0xff] %v3836_v30 }
 0x466   : > { %4139 = vst [vmem:[#allocation2 + $0x8b8] sm:$0xff] %v3838_v7 }
 0x468   : > { %v3841_v20 = vpop.f32.mrb[160].mxu1 }
 0x469   : > { %v3842_v26 = vadd.f32 %v3841_v20, %v7473_v3  ;;  %v3843_v44 = vpop.f32.mrb[161].mxu1 }
 0x46a   : > { %v3844_v24 = vadd.f32 %v3843_v44, %v7473_v3  ;;  %v3845_v17 = vpop.f32.mrb[162].mxu1 }
 0x46b   : > { %4140 = vst [vmem:[#allocation2 + $0x8c0] sm:$0xff] %v3842_v26  ;;  %v3846_v15 = vadd.f32 %v3845_v17, %v7475_v28  ;;  %v3847_v18 = vpop.f32.mrb[163].mxu1 }
 0x46c   : > { %4141 = vst [vmem:[#allocation2 + $0x8c8] sm:$0xff] %v3844_v24  ;;  %v3848_v55 = vadd.f32 %v3847_v18, %v7475_v28 }
 0x46d   : > { %4142 = vst [vmem:[#allocation2 + $0x8d0] sm:$0xff] %v3846_v15 }
 0x46e   : > { %4143 = vst [vmem:[#allocation2 + $0x8d8] sm:$0xff] %v3848_v55 }
 0x470   : > { %v3851_v21 = vpop.f32.mrb[164].mxu1 }
 0x471   : > { %v3852_v14 = vadd.f32 %v3851_v21, %v2380_v48  ;;  %v3853_v16 = vpop.f32.mrb[165].mxu1 }
 0x472   : > { %v3854_v6 = vadd.f32 %v3853_v16, %v2380_v48  ;;  %v3855_v11 = vpop.f32.mrb[166].mxu1 }
 0x473   : > { %4144 = vst [vmem:[#allocation2 + $0x8e0] sm:$0xff] %v3852_v14  ;;  %v3856_v3 = vadd.f32 %v3855_v11, %v2385_v12  ;;  %v3857_v41 = vpop.f32.mrb[167].mxu1 }
 0x474   : > { %4145 = vst [vmem:[#allocation2 + $0x8e8] sm:$0xff] %v3854_v6  ;;  %v3858_v22 = vadd.f32 %v3857_v41, %v2385_v12 }
 0x475   : > { %4146 = vst [vmem:[#allocation2 + $0x8f0] sm:$0xff] %v3856_v3 }
 0x476   : > { %4147 = vst [vmem:[#allocation2 + $0x8f8] sm:$0xff] %v3858_v22 }
 0x477 LB: >> { %v9426_v61 = vld [vmem:[#allocation91_spill] sm:$0xff]  ;;  %v9427_v10 = vld [vmem:[#allocation92_spill] sm:$0xff]  ;;  %v9428_v57 = vld [vmem:[#allocation89_spill] sm:$0xff]  ;;  %v9435_v28 = vlaneseq  ;;  %s7790_s18 = sshll.u32 %s6182_s1, 5  ;;  %s4153_s1 = sadd.s32 1, %s6182_s1   ;;  %s6182_s1 = sphi %s7781_s1, %s4153_s1  }
 0x478   : >> { %v9429_v49 = vld [vmem:[#allocation87_spill] sm:$0xff]  ;;  %v9430_v4 = vld [vmem:[#allocation90_spill] sm:$0xff]  ;;  %v9431_v13 = vld [vmem:[#allocation85_spill] sm:$0xff]  ;;  %s4155_s12 = sshra.s32 %s7790_s18, 3  ;;  %s4168_s10 = sadd.s32 128, %s7790_s18 }
 0x479   : >> { %v9432_v54 = vld [vmem:[#allocation88_spill] sm:$0xff]  ;;  %v9433_v36 = vld [vmem:[#allocation86_spill] sm:$0xff]  ;;  %v7787_v62 = vshrl.u32 %v9435_v28, 7  ;;  %s7797_s20 = sshll.u32 %s4155_s12, 4  ;;  %s4169_s17 = sshra.s32 %s4168_s10, 3  ;;  %v9437_v51 = vld [vmem:[#allocation43_spill] sm:$0xff] }
 0x47a   : >> { %v9434_v34 = vld [vmem:[#allocation84_spill] sm:$0xff]  ;;  %s5521_s22 = sshll.u32 %s4169_s17, 4  ;;  %s7800_s23 = scalar_lea.vmem [#allocation2], %s7797_s20  ;;  %v9438_v42 = vld [vmem:[#allocation45_spill] sm:$0xff]  ;;  %v9452_v29 = vld [vmem:[#allocation10_spill] sm:$0xff] }
 0x47b   : >> { %v7793_v27 = vsub.s32 0, %v7787_v62  ;;  %s4190_s13 = sadd.s32 256, %s7790_s18  ;;  %s7820_s9 = scalar_lea.vmem [#allocation2], %s5521_s22  ;;  %v9436_v9 = vld [vmem:[#allocation60_spill] sm:$0xff]  ;;  %v9446_v11 = vld [vmem:[#allocation61_spill] sm:$0xff]  ;;  %v9459_v2 = vld [vmem:[#allocation11_spill] sm:$0xff] }
 0x47c   : >> { %s4191_s0 = sshra.s32 %s4190_s13, 3  ;;  %s4212_s5 = sadd.s32 384, %s7790_s18  ;;  %v9440_v58 = vld [vmem:[#allocation44_spill] sm:$0xff]  ;;  %v9448_v43 = vld [vmem:[#allocation93_spill] sm:$0xff] }
 0x47d   : >> { %v7803_v56 = vld [vmem:[%s7800_s23] sm:$0xff]  ;;  %v7808_v31 = vrot.slane %v9434_v34, %v7793_v27  ;;  %v7812_v1 = vrot.slane %v9433_v36, %v7793_v27  ;;  %v7815_v25 = vld [vmem:[%s7800_s23 + $0x8] sm:$0xff]  ;;  %v7818_v45 = vld [vmem:[%s7800_s23 + $0x10] sm:$0xff]  ;;  %v7828_v5 = vrot.slane %v9432_v54, %v7793_v27  ;;  %v7832_v53 = vrot.slane %v9430_v4, %v7793_v27  ;;  %s5522_s12 = sshll.u32 %s4191_s0, 4  ;;  %s4213_s10 = sshra.s32 %s4212_s5, 3 }
 0x47e   : >> { %v7823_v33 = vld [vmem:[%s7820_s9] sm:$0xff]  ;;  %v7836_v8 = vrot.slane %v9436_v9, %v7793_v27  ;;  %v7840_v35 = vrot.slane %v9427_v10, %v7793_v27  ;;  %v7843_v60 = vld [vmem:[%s7820_s9 + $0x8] sm:$0xff]  ;;  %v7846_v50 = vld [vmem:[%s7820_s9 + $0x10] sm:$0xff]  ;;  %v7852_v59 = vrot.slane %v9437_v51, %v7793_v27  ;;  %v7856_v52 = vrot.slane %v9438_v42, %v7793_v27  ;;  %s5523_s17 = sshll.u32 %s4213_s10, 4  ;;  %s7890_s22 = scalar_lea.vmem [#allocation2], %s5522_s12 }
 0x47f   : >> { %v4182_v19 = vmax.f32 %v7803_v56, %v7823_v33  ;;  %v4183_v37 = vmax.f32 %v7815_v25, %v7843_v60  ;;  %v7861_v63 = vld [vmem:[%s7800_s23 + $0x18] sm:$0xff]  ;;  %v7867_v47 = vld [vmem:[%s7800_s23 + $0x20] sm:$0xff]  ;;  %v7871_v32 = vrot.slane %v9440_v58, %v7793_v27  ;;  %v7875_v23 = vrot.slane %v9431_v13, %v7793_v27  ;;  %v7885_v40 = vld [vmem:[%s7800_s23 + $0x28] sm:$0xff]  ;;  %s4234_s13 = sadd.s32 512, %s7790_s18  ;;  %s7915_s0 = scalar_lea.vmem [#allocation2], %s5523_s17 }
 0x480   : >> { %v7864_v46 = vld [vmem:[%s7820_s9 + $0x18] sm:$0xff]  ;;  %9439 = vst [vmem:[#allocation94_spill] sm:$0xff] %v7867_v47  ;;  %v4184_v0 = vmax.f32 %v7818_v45, %v7846_v50  ;;  %v7882_v30 = vld [vmem:[%s7820_s9 + $0x20] sm:$0xff]  ;;  %9442 = vst [vmem:[#allocation96_spill] sm:$0xff] %v7885_v40  ;;  %v7901_v44 = vrot.slane %v9429_v49, %v7793_v27  ;;  %v7905_v24 = vrot.slane %v9428_v57, %v7793_v27  ;;  %s4235_s5 = sshra.s32 %s4234_s13, 3  ;;  %s4256_s12 = sadd.s32 640, %s7790_s18 }
 0x481   : >> { %v4185_v38 = vmax.f32 %v7861_v63, %v7864_v46  ;;  %9441 = vst [vmem:[#allocation95_spill] sm:$0xff] %v7882_v30  ;;  %v7888_v7 = vld [vmem:[%s7820_s9 + $0x28] sm:$0xff]  ;;  %v7893_v20 = vld [vmem:[%s7890_s22] sm:$0xff]  ;;  %v7908_v17 = vld [vmem:[%s7890_s22 + $0x10] sm:$0xff]  ;;  %v4186_v15 = vmax.f32 %v7867_v47, %v7882_v30  ;;  %v7927_v16 = vrot.slane %v9426_v61, %v7793_v27  ;;  %s5524_s10 = sshll.u32 %s4235_s5, 4  ;;  %s4257_s17 = sshra.s32 %s4256_s12, 3  ;;  %v7935_v3 = vrot.slane %v9446_v11, %v7793_v27 }
 0x482   : >> { %9443 = vst [vmem:[#allocation97_spill] sm:$0xff] %v7888_v7  ;;  %v7897_v26 = vld [vmem:[%s7890_s22 + $0x8] sm:$0xff]  ;;  %9444 = vst [vmem:[#allocation98_spill] sm:$0xff] %v7905_v24  ;;  %v4187_v18 = vmax.f32 %v7885_v40, %v7888_v7  ;;  %v4204_v55 = vmax.f32 %v4182_v19, %v7893_v20  ;;  %v7918_v48 = vld [vmem:[%s7915_s0] sm:$0xff]  ;;  %v4206_v12 = vmax.f32 %v4184_v0, %v7908_v17  ;;  %s5525_s13 = sshll.u32 %s4257_s17, 4  ;;  %s7971_s5 = scalar_lea.vmem [#allocation2], %s5524_s10 }
 0x483   : >> { %v4205_v21 = vmax.f32 %v4183_v37, %v7897_v26  ;;  %v7923_v14 = vld [vmem:[%s7915_s0 + $0x8] sm:$0xff]  ;;  %9445 = vst [vmem:[#allocation99_spill] sm:$0xff] %v7927_v16  ;;  %v7931_v6 = vld [vmem:[%s7915_s0 + $0x10] sm:$0xff]  ;;  %9447 = vst [vmem:[#allocation100_spill] sm:$0xff] %v7935_v3  ;;  %v7939_v41 = vrot.slane %v9448_v43, %v7793_v27  ;;  %v7947_v28 = vrot.slane %v9452_v29, %v7793_v27  ;;  %s4278_s12 = sadd.s32 768, %s7790_s18  ;;  %v7990_v30 = vsub.s32 1, %v7787_v62 }
 0x484   : >> { %v9450_v39 = vld [vmem:[#allocation9_spill] sm:$0xff]  ;;  %v7950_v19 = vld [vmem:[%s7890_s22 + $0x18] sm:$0xff]  ;;  %v4226_v11 = vmax.f32 %v4204_v55, %v7918_v48  ;;  %v4228_v58 = vmax.f32 %v4206_v12, %v7931_v6  ;;  %v7966_v29 = vld [vmem:[%s7890_s22 + $0x28] sm:$0xff]  ;;  %s7993_s10 = scalar_lea.vmem [#allocation2], %s5525_s13  ;;  %s4279_s17 = sshra.s32 %s4278_s12, 3 }
 0x485   : >> { %9449 = vst [vmem:[#allocation101_spill] sm:$0xff] %v7939_v41  ;;  %v7943_v22 = vrot.slane %v9450_v39, %v7793_v27  ;;  %9453 = vst [vmem:[#allocation103_spill] sm:$0xff] %v7947_v28  ;;  %v7953_v37 = vld [vmem:[%s7915_s0 + $0x18] sm:$0xff]  ;;  %v7956_v0 = vld [vmem:[%s7890_s22 + $0x20] sm:$0xff]  ;;  %v4227_v43 = vmax.f32 %v4205_v21, %v7923_v14  ;;  %v4207_v39 = vmax.f32 %v4185_v38, %v7950_v19  ;;  %s4300_s16 = sadd.s32 896, %s7790_s18  ;;  %s5526_s13 = sshll.u32 %s4279_s17, 4 }
 0x486   : >> { %9454 = vst [vmem:[#allocation104_spill] sm:$0xff] %v7953_v37  ;;  %9455 = vst [vmem:[#allocation105_spill] sm:$0xff] %v7956_v0  ;;  %v7963_v42 = vld [vmem:[%s7915_s0 + $0x20] sm:$0xff]  ;;  %v7969_v51 = vld [vmem:[%s7915_s0 + $0x28] sm:$0xff]  ;;  %v7982_v38 = vrot.slane %v9459_v2, %v7793_v27  ;;  %v4208_v7 = vmax.f32 %v4186_v15, %v7956_v0  ;;  %v4209_v40 = vmax.f32 %v4187_v18, %v7966_v29  ;;  %s4301_s2 = sshra.s32 %s4300_s16, 3  ;;  %s8040_s12 = scalar_lea.vmem [#allocation2], %s5526_s13 }
 0x487   : >> { %9451 = vst [vmem:[#allocation102_spill] sm:$0xff] %v7943_v22  ;;  %9456 = vst [vmem:[#allocation106_spill] sm:$0xff] %v7963_v42  ;;  %v7974_v55 = vld [vmem:[%s7971_s5] sm:$0xff]  ;;  %v7978_v21 = vld [vmem:[%s7971_s5 + $0x8] sm:$0xff]  ;;  %v8021_v28 = vrot.slane %v9434_v34, %v7990_v30  ;;  %s5527_s16 = sshll.u32 %s4301_s2, 4  ;;  %s4322_s2 = sadd.s32 1024, %s7790_s18  ;;  %v8092_v3 = vrot.slane %v9429_v49, %v7990_v30 }
 0x488   : >> { %9457 = vst [vmem:[#allocation107_spill] sm:$0xff] %v7966_v29  ;;  %9458 = vst [vmem:[#allocation108_spill] sm:$0xff] %v7969_v51  ;;  %v7985_v12 = vld [vmem:[%s7971_s5 + $0x10] sm:$0xff]  ;;  %v4248_v47 = vmax.f32 %v4226_v11, %v7974_v55  ;;  %v7996_v27 = vld [vmem:[%s7993_s10] sm:$0xff]  ;;  %v4249_v15 = vmax.f32 %v4227_v43, %v7978_v21  ;;  %v4229_v11 = vmax.f32 %v4207_v39, %v7953_v37  ;;  %s8063_s18 = scalar_lea.vmem [#allocation2], %s5527_s16  ;;  %s4323_s17 = sshra.s32 %s4322_s2, 3 }
 0x489   : >> { %9460 = vst [vmem:[#allocation109_spill] sm:$0xff] %v7982_v38  ;;  %9461 = vst [vmem:[#allocation110_spill] sm:$0xff] %v7990_v30  ;;  %v8001_v2 = vld [vmem:[%s7993_s10 + $0x8] sm:$0xff]  ;;  %v4250_v62 = vmax.f32 %v4228_v58, %v7985_v12  ;;  %v8005_v18 = vld [vmem:[%s7993_s10 + $0x10] sm:$0xff]  ;;  %v4230_v43 = vmax.f32 %v4208_v7, %v7963_v42  ;;  %v4231_v58 = vmax.f32 %v4209_v40, %v7969_v51  ;;  %s5528_s13 = sshll.u32 %s4323_s17, 4  ;;  %s9513_s2 = scalar_lea.vmem [#allocation3], %s6315_s21 }
 0x48a   : >> { %v8009_v29 = vld [vmem:[%s7971_s5 + $0x18] sm:$0xff]  ;;  %v8016_v38 = vld [vmem:[%s7971_s5 + $0x20] sm:$0xff]  ;;  %9465 = vst [vmem:[#allocation114_spill] sm:$0xff] %v8021_v28  ;;  %v8025_v39 = vrot.slane %v9433_v36, %v7990_v30  ;;  %v4270_v37 = vmax.f32 %v4248_v47, %v7996_v27  ;;  %v4271_v22 = vmax.f32 %v4249_v15, %v8001_v2  ;;  %v8035_v40 = vld [vmem:[%s7971_s5 + $0x28] sm:$0xff]  ;;  %v8056_v36 = vrot.slane %v9432_v54, %v7990_v30  ;;  %s8108_s16 = scalar_lea.vmem [#allocation2], %s5528_s13  ;;  %s8355_s17 = scalar_lea.vmem %s9513_s2, %s7797_s20 [#allocation3] }
 0x48b   : >> { %9462 = vst [vmem:[#allocation111_spill] sm:$0xff] %v8009_v29  ;;  %v8012_v0 = vld [vmem:[%s7993_s10 + $0x18] sm:$0xff]  ;;  %9464 = vst [vmem:[#allocation113_spill] sm:$0xff] %v8016_v38  ;;  %v4272_v41 = vmax.f32 %v4250_v62, %v8005_v18  ;;  %v4251_v7 = vmax.f32 %v4229_v11, %v8009_v29  ;;  %v8032_v42 = vld [vmem:[%s7993_s10 + $0x20] sm:$0xff]  ;;  %v4252_v62 = vmax.f32 %v4230_v43, %v8016_v38  ;;  %p4150_p0 = scmp.ge.s32.totalorder %s4153_s1, 4  }
 0x48c   : >> { %9463 = vst [vmem:[#allocation112_spill] sm:$0xff] %v8012_v0  ;;  %9466 = vst [vmem:[#allocation115_spill] sm:$0xff] %v8025_v39  ;;  %v8038_v51 = vld [vmem:[%s7993_s10 + $0x28] sm:$0xff]  ;;  %v8043_v34 = vld [vmem:[%s8040_s12] sm:$0xff]  ;;  %v4253_v11 = vmax.f32 %v4231_v58, %v8035_v40  ;;  %v8060_v39 = vrot.slane %v9431_v13, %v7990_v30  ;;  %s9650_s20 = sand.u32 (%p4150_p0), 1, %s6154_s25  }
 0x48d   : >> { %9467 = vst [vmem:[#allocation116_spill] sm:$0xff] %v8032_v42  ;;  %9468 = vst [vmem:[#allocation117_spill] sm:$0xff] %v8035_v40  ;;  %v8047_v47 = vld [vmem:[%s8040_s12 + $0x8] sm:$0xff]  ;;  %v8050_v15 = vld [vmem:[%s8040_s12 + $0x10] sm:$0xff]  ;;  %v4292_v28 = vmax.f32 %v4270_v37, %v8043_v34  ;;  %v4273_v37 = vmax.f32 %v4251_v7, %v8012_v0  ;;  %v4274_v38 = vmax.f32 %v4252_v62, %v8032_v42 }
 0x48e   : >> { %9469 = vst [vmem:[#allocation118_spill] sm:$0xff] %v8038_v51  ;;  %9470 = vst [vmem:[#allocation119_spill] sm:$0xff] %v8056_v36  ;;  %v4306_v43 = vld [vmem:[%s8063_s18] sm:$0xff]  ;;  %v4293_v58 = vmax.f32 %v4271_v22, %v8047_v47  ;;  %v8068_v40 = vld [vmem:[%s8063_s18 + $0x8] sm:$0xff]  ;;  %v4294_v54 = vmax.f32 %v4272_v41, %v8050_v15  ;;  %v4275_v22 = vmax.f32 %v4253_v11, %v8038_v51 }
 0x48f   : >> { %9471 = vst [vmem:[#allocation120_spill] sm:$0xff] %v8060_v39  ;;  %v8072_v13 = vld [vmem:[%s8063_s18 + $0x10] sm:$0xff]  ;;  %v8076_v39 = vld [vmem:[%s8040_s12 + $0x18] sm:$0xff]  ;;  %v8083_v29 = vld [vmem:[%s8040_s12 + $0x20] sm:$0xff]  ;;  %v8088_v41 = vrot.slane %v9430_v4, %v7990_v30  ;;  %v4314_v7 = vmax.f32 %v4292_v28, %v4306_v43 }
 0x490   : >> { %9472 = vst [vmem:[#allocation121_spill] sm:$0xff] %v8076_v39  ;;  %v8079_v36 = vld [vmem:[%s8063_s18 + $0x18] sm:$0xff]  ;;  %9474 = vst [vmem:[#allocation123_spill] sm:$0xff] %v8092_v3  ;;  %v4315_v0 = vmax.f32 %v4293_v58, %v8068_v40  ;;  %v4316_v16 = vmax.f32 %v4294_v54, %v8072_v13  ;;  %v8097_v24 = vmax.f32 %v4273_v37, %v8076_v39  ;;  %v8100_v62 = vld [vmem:[%s8063_s18 + $0x20] sm:$0xff] }
 0x491   : >> { %9473 = vst [vmem:[#allocation122_spill] sm:$0xff] %v8088_v41  ;;  %v8103_v42 = vld [vmem:[%s8040_s12 + $0x28] sm:$0xff]  ;;  %v4328_v4 = vld [vmem:[%s8108_s16] sm:$0xff]  ;;  %v8113_v49 = vld [vmem:[%s8108_s16 + $0x10] sm:$0xff]  ;;  %v8116_v54 = vmax.f32 %v4274_v38, %v8083_v29  ;;  %v8123_v37 = vrot.slane %v9436_v9, %v7990_v30  ;;  %v8127_v3 = vrot.slane %v9428_v57, %v7990_v30  ;;  %v8140_v9 = vrot.slane %v9427_v10, %v7990_v30 }
 0x492   : >> { %9475 = vst [vmem:[#allocation124_spill] sm:$0xff] %v8103_v42  ;;  %v8106_v11 = vld [vmem:[%s8063_s18 + $0x28] sm:$0xff]  ;;  %v8119_v58 = vmax.f32 %v4275_v22, %v8103_v42  ;;  %v4336_v41 = vmax.f32 %v4314_v7, %v4328_v4  ;;  %v8130_v39 = vmax.f32 %v4316_v16, %v8113_v49  ;;  %v8144_v7 = vrot.slane %v9426_v61, %v7990_v30 }
 0x493   : >> { %9476 = vst [vmem:[#allocation125_spill] sm:$0xff] %v8106_v11  ;;  %v4329_v28 = vld [vmem:[%s8108_s16 + $0x8] sm:$0xff]  ;;  %9478 = vst [vmem:[#allocation127_spill] sm:$0xff] %v8123_v37 }
 0x494   : >> { %9477 = vst [vmem:[#allocation126_spill] sm:$0xff] %v8119_v58  ;;  %9479 = vst [vmem:[#allocation128_spill] sm:$0xff] %v8127_v3  ;;  %v4337_v51 = vmax.f32 %v4315_v0, %v4329_v28  ;;  %v4344_v16 = vsub.f32 %v7803_v56, %v4336_v41  ;;  %v4424_v0 = vsub.f32 %v7823_v33, %v4336_v41 }
 0x495   : >> { %9480 = vst [vmem:[#allocation129_spill] sm:$0xff] %v8140_v9  ;;  %9481 = vst [vmem:[#allocation130_spill] sm:$0xff] %v8144_v7  ;;  %v4504_v38 = vsub.f32 %v7893_v20, %v4336_v41  ;;  %v4584_v57 = vsub.f32 %v7918_v48, %v4336_v41  ;;  %v4664_v22 = vsub.f32 %v7974_v55, %v4336_v41 }
 0x496   : >> { %v4744_v42 = vsub.f32 %v7996_v27, %v4336_v41  ;;  %v4824_v3 = vsub.f32 %v8043_v34, %v4336_v41  ;;  %v4904_v10 = vsub.f32 %v4306_v43, %v4336_v41  ;;  %v4352_v9 = vmul.f32 1.442695, %v4344_v16 }
 0x497   : >> { %v4432_v37 = vmul.f32 1.442695, %v4424_v0  ;;  %v4512_v11 = vmul.f32 1.442695, %v4504_v38  ;;  %v4984_v61 = vsub.f32 %v4328_v4, %v4336_v41  ;;  %v4592_v7 = vmul.f32 1.442695, %v4584_v57 }
 0x498   : >> { %v4672_v30 = vmul.f32 1.442695, %v4664_v22  ;;  %v4752_v56 = vmul.f32 1.442695, %v4744_v42  ;;  %v4345_v33 = vsub.f32 %v7815_v25, %v4337_v51  ;;  %5948 = vpow2.f32 %v4352_v9 }
 0x499   : >> { %v4832_v20 = vmul.f32 1.442695, %v4824_v3  ;;  %v4912_v58 = vmul.f32 1.442695, %v4904_v10  ;;  %v4992_v48 = vmul.f32 1.442695, %v4984_v61  ;;  %5950 = vpow2.f32 %v4432_v37 }
 0x49a   : >> { %v4354_v55 = vmul.f32 1.442695, %v4345_v33  ;;  %v4425_v27 = vsub.f32 %v7843_v60, %v4337_v51  ;;  %v4505_v34 = vsub.f32 %v7897_v26, %v4337_v51  ;;  %5952 = vpow2.f32 %v4512_v11 }
 0x49b   : >> { %v4585_v43 = vsub.f32 %v7923_v14, %v4337_v51  ;;  %v4665_v4 = vsub.f32 %v7978_v21, %v4337_v51  ;;  %v4745_v57 = vsub.f32 %v8001_v2, %v4337_v51  ;;  %5954 = vpow2.f32 %v4592_v7 }
 0x49c   : >> { %v4434_v42 = vmul.f32 1.442695, %v4425_v27  ;;  %v4514_v25 = vmul.f32 1.442695, %v4505_v34  ;;  %v4825_v9 = vsub.f32 %v8047_v47, %v4337_v51  ;;  %5956 = vpow2.f32 %v4672_v30 }
 0x49d   : >> { %v4594_v61 = vmul.f32 1.442695, %v4585_v43  ;;  %v4674_v10 = vmul.f32 1.442695, %v4665_v4  ;;  %v4754_v3 = vmul.f32 1.442695, %v4745_v57  ;;  %5958 = vpow2.f32 %v4752_v56 }
 0x49e   : >> { %v4834_v60 = vmul.f32 1.442695, %v4825_v9  ;;  %v4905_v26 = vsub.f32 %v8068_v40, %v4337_v51  ;;  %v4985_v41 = vsub.f32 %v4329_v28, %v4337_v51  ;;  %5960 = vpow2.f32 %v4832_v20  ;;  %v8194_v56 = vld [vmem:[%s8108_s16 + $0x18] sm:$0xff] }
 0x49f   : >> { %v4346_v14 = vsub.f32 %v7818_v45, %v8130_v39  ;;  %v4426_v2 = vsub.f32 %v7846_v50, %v8130_v39  ;;  %v4506_v21 = vsub.f32 %v7908_v17, %v8130_v39  ;;  %5962 = vpow2.f32 %v4912_v58 }
 0x4a0   : >> { %v4914_v30 = vmul.f32 1.442695, %v4905_v26  ;;  %v4994_v47 = vmul.f32 1.442695, %v4985_v41  ;;  %v4586_v11 = vsub.f32 %v7931_v6, %v8130_v39  ;;  %5964 = vpow2.f32 %v4992_v48 }
 0x4a1   : >> { %v4356_v37 = vmul.f32 1.442695, %v4346_v14  ;;  %v4436_v40 = vmul.f32 1.442695, %v4426_v2  ;;  %v4516_v51 = vmul.f32 1.442695, %v4506_v21  ;;  %5966 = vpow2.f32 %v4354_v55 }
 0x4a2   : >> { %v8169_v28 = vmul.f32 1.442695, %v4586_v11  ;;  %v4666_v45 = vsub.f32 %v7985_v12, %v8130_v39  ;;  %v4746_v50 = vsub.f32 %v8005_v18, %v8130_v39  ;;  %v8175_v17 = vpop.eup %5948  ;;  %5968 = vpow2.f32 %v4434_v42 }
 0x4a3   : >> { %v4826_v6 = vsub.f32 %v8050_v15, %v8130_v39  ;;  %v4906_v58 = vsub.f32 %v8072_v13, %v8130_v39  ;;  %v4986_v38 = vsub.f32 %v8113_v49, %v8130_v39  ;;  %v8183_v22 = vpop.eup %5950  ;;  %v4384_v12 = vmul.f32 %v8175_v17, %v7808_v31  ;;  %v8197_v49 = vld [vmem:[%s8108_s16 + $0x20] sm:$0xff] }
 0x4a4   : >> { %5970 = vpow2.f32 %v4514_v25  ;;  %v4676_v18 = vmul.f32 1.442695, %v4666_v45  ;;  %v4756_v7 = vmul.f32 1.442695, %v4746_v50  ;;  %v8187_v16 = vpop.eup %5952  ;;  %v4448_v0 = vadd.f32 %v8183_v22, %v8175_v17 }
 0x4a5   : >> { %v4464_v15 = vmul.f32 %v8183_v22, %v7812_v1  ;;  %5972 = vpow2.f32 %v4594_v61  ;;  %v4836_v13 = vmul.f32 1.442695, %v4826_v6  ;;  %v8199_v39 = vpop.eup %5954  ;;  %v4544_v33 = vmul.f32 %v8187_v16, %v7828_v5 }
 0x4a6   : >> { %5974 = vpow2.f32 %v4674_v10  ;;  %v4916_v20 = vmul.f32 1.442695, %v4906_v58  ;;  %v8203_v48 = vmul.f32 1.442695, %v4986_v38  ;;  %v8205_v55 = vpop.eup %5956  ;;  %v4528_v34 = vadd.f32 %v8187_v16, %v4448_v0 }
 0x4a7   : >> { %v4472_v27 = vadd.f32 %v4464_v15, %v4384_v12  ;;  %v4624_v43 = vmul.f32 %v8199_v39, %v7832_v53  ;;  %5976 = vpow2.f32 %v4754_v3  ;;  %v8210_v4 = vpop.eup %5958  ;;  %v4704_v57 = vmul.f32 %v8205_v55, %v7836_v8 }
 0x4a8   : >> { %5978 = vpow2.f32 %v4834_v60  ;;  %v9482_v42 = vmax.f32 %v8097_v24, %v8079_v36  ;;  %v9483_v9 = vmax.f32 %v8116_v54, %v8100_v62  ;;  %v8226_v10 = vpop.eup %5960  ;;  %v4608_v26 = vadd.f32 %v8199_v39, %v4528_v34  ;;  %v9486_v34 = vld [vmem:[#allocation98_spill] sm:$0xff] }
 0x4a9   : >> { %v4552_v3 = vadd.f32 %v4544_v33, %v4472_v27  ;;  %v4784_v60 = vmul.f32 %v8210_v4, %v7840_v35  ;;  %5980 = vpow2.f32 %v4914_v30  ;;  %v8231_v41 = vpop.eup %5962  ;;  %v4864_v24 = vmul.f32 %v8226_v10, %v7852_v59 }
 0x4aa   : >> { %v8218_v25 = vmax.f32 %v9482_v42, %v8194_v56  ;;  %v8224_v61 = vmax.f32 %v9483_v9, %v8197_v49  ;;  %5982 = vpow2.f32 %v4994_v47  ;;  %v8239_v2 = vpop.eup %5964  ;;  %v4688_v11 = vadd.f32 %v8205_v55, %v4608_v26  ;;  %v9488_v9 = vld [vmem:[#allocation99_spill] sm:$0xff] }
 0x4ab   : >> { %v4632_v21 = vadd.f32 %v4624_v43, %v4552_v3  ;;  %v4944_v30 = vmul.f32 %v8231_v41, %v7856_v52  ;;  %5984 = vpow2.f32 %v4356_v37  ;;  %v8244_v45 = vpop.eup %5966  ;;  %v5024_v47 = vmul.f32 %v8239_v2, %v7871_v32 }
 0x4ac   : >> { %v4347_v54 = vsub.f32 %v7861_v63, %v8218_v25  ;;  %v4427_v14 = vsub.f32 %v7864_v46, %v8218_v25  ;;  %5986 = vpow2.f32 %v4436_v40  ;;  %v8248_v6 = vpop.eup %5968  ;;  %v4768_v58 = vadd.f32 %v8210_v4, %v4688_v11  ;;  %v9492_v11 = vld [vmem:[#allocation101_spill] sm:$0xff] }
 0x4ad   : >> { %v4712_v46 = vadd.f32 %v4704_v57, %v4632_v21  ;;  %v4385_v38 = vmul.f32 %v8244_v45, %v7875_v23  ;;  %5988 = vpow2.f32 %v4516_v51  ;;  %v4449_v37 = vadd.f32 %v8248_v6, %v8244_v45 }
 0x4ae   : >> { %v4358_v50 = vmul.f32 1.442695, %v4347_v54  ;;  %v4438_v63 = vmul.f32 1.442695, %v4427_v14  ;;  %v8253_v12 = vpop.eup %5970  ;;  %v4465_v0 = vmul.f32 %v8248_v6, %v7901_v44  ;;  %5990 = vpow2.f32 %v8169_v28 }
 0x4af   : >> { %9484 = vst [vmem:[#allocation131_spill] sm:$0xff] %v8253_v12  ;;  %v4507_v40 = vsub.f32 %v7950_v19, %v8218_v25  ;;  %v8262_v15 = vpop.eup %5972  ;;  %v4792_v33 = vadd.f32 %v4784_v60, %v4712_v46  ;;  %v4848_v27 = vadd.f32 %v8226_v10, %v4768_v58  ;;  %v4545_v51 = vmul.f32 %v8253_v12, %v9486_v34  ;;  %v9490_v60 = vld [vmem:[#allocation100_spill] sm:$0xff] }
 0x4b0   : >> { %9485 = vst [vmem:[#allocation132_spill] sm:$0xff] %v8262_v15  ;;  %5992 = vpow2.f32 %v4676_v18  ;;  %v8267_v43 = vpop.eup %5974  ;;  %v4473_v57 = vadd.f32 %v4465_v0, %v4385_v38  ;;  %v4529_v42 = vadd.f32 %v8253_v12, %v4449_v37  ;;  %v4625_v28 = vmul.f32 %v8262_v15, %v9488_v9  ;;  %v9494_v38 = vld [vmem:[#allocation102_spill] sm:$0xff] }
 0x4b1   : >> { %9487 = vst [vmem:[#allocation98_spill] sm:$0xff] %v8267_v43  ;;  %5994 = vpow2.f32 %v4756_v7  ;;  %v8272_v3 = vpop.eup %5976  ;;  %v4872_v19 = vadd.f32 %v4864_v24, %v4792_v33  ;;  %v4928_v26 = vadd.f32 %v8231_v41, %v4848_v27  ;;  %v4705_v54 = vmul.f32 %v8267_v43, %v9490_v60  ;;  %v9496_v27 = vld [vmem:[#allocation103_spill] sm:$0xff] }
 0x4b2   : >> { %9489 = vst [vmem:[#allocation99_spill] sm:$0xff] %v8272_v3  ;;  %5996 = vpow2.f32 %v4836_v13  ;;  %v8277_v14 = vpop.eup %5978  ;;  %v4553_v18 = vadd.f32 %v4545_v51, %v4473_v57  ;;  %v4609_v21 = vadd.f32 %v8262_v15, %v4529_v42  ;;  %v4785_v46 = vmul.f32 %v8272_v3, %v9492_v11 }
 0x4b3   : >> { %9491 = vst [vmem:[#allocation133_spill] sm:$0xff] %v8277_v14  ;;  %5998 = vpow2.f32 %v4916_v20  ;;  %v8282_v58 = vpop.eup %5980  ;;  %v4952_v7 = vadd.f32 %v4944_v30, %v4872_v19  ;;  %v5008_v24 = vadd.f32 %v8239_v2, %v4928_v26  ;;  %v4865_v37 = vmul.f32 %v8277_v14, %v9494_v38  ;;  %v9498_v30 = vld [vmem:[#allocation109_spill] sm:$0xff] }
 0x4b4   : >> { %9493 = vst [vmem:[#allocation134_spill] sm:$0xff] %v8282_v58  ;;  %6000 = vpow2.f32 %v8203_v48  ;;  %v8288_v13 = vpop.eup %5982  ;;  %v4633_v0 = vadd.f32 %v4625_v28, %v4553_v18  ;;  %v4689_v33 = vadd.f32 %v8267_v43, %v4609_v21  ;;  %v4945_v51 = vmul.f32 %v8282_v58, %v9496_v27 }
 0x4b5   : >> { %9495 = vst [vmem:[#allocation102_spill] sm:$0xff] %v8288_v13  ;;  %6002 = vpow2.f32 %v4358_v50  ;;  %v8293_v20 = vpop.eup %5984  ;;  %v5032_v57 = vadd.f32 %v5024_v47, %v4952_v7  ;;  %v5025_v42 = vmul.f32 %v8288_v13, %v9498_v30  ;;  %v4518_v19 = vmul.f32 1.442695, %v4507_v40  ;;  %v9501_v40 = vld [vmem:[#allocation104_spill] sm:$0xff] }
 0x4b6   : >> { %9497 = vst [vmem:[#allocation103_spill] sm:$0xff] %v8293_v20  ;;  %6004 = vrcp.f32 %v5008_v24  ;;  %v8297_v26 = vpop.eup %5986  ;;  %v4713_v48 = vadd.f32 %v4705_v54, %v4633_v0  ;;  %v4769_v15 = vadd.f32 %v8272_v3, %v4689_v33  ;;  %v4386_v28 = vmul.f32 %v8293_v20, %v7808_v31  ;;  %v9503_v0 = vld [vmem:[#allocation111_spill] sm:$0xff] }
 0x4b7   : >> { %9499 = vst [vmem:[#allocation109_spill] sm:$0xff] %v8297_v26  ;;  %6006 = vpow2.f32 %v4438_v63  ;;  %v8302_v18 = vpop.eup %5988  ;;  %v4450_v50 = vadd.f32 %v8297_v26, %v8293_v20  ;;  %v4466_v47 = vmul.f32 %v8297_v26, %v7812_v1  ;;  %v4587_v21 = vsub.f32 %v9501_v40, %v8218_v25 }
 0x4b8   : >> { %9500 = vst [vmem:[#allocation135_spill] sm:$0xff] %v8302_v18  ;;  %6008 = vpow2.f32 %v4518_v19  ;;  %v8310_v7 = vpop.eup %5990  ;;  %v4793_v54 = vadd.f32 %v4785_v46, %v4713_v48  ;;  %v4849_v24 = vadd.f32 %v8277_v14, %v4769_v15  ;;  %v4546_v63 = vmul.f32 %v8302_v18, %v7828_v5 }
 0x4b9   : >> { %9502 = vst [vmem:[#allocation104_spill] sm:$0xff] %v8310_v7  ;;  %v4667_v33 = vsub.f32 %v9503_v0, %v8218_v25  ;;  %v4474_v20 = vadd.f32 %v4466_v47, %v4386_v28  ;;  %v4530_v26 = vadd.f32 %v8302_v18, %v4450_v50  ;;  %v4626_v19 = vmul.f32 %v8310_v7, %v7832_v53 }
 0x4ba   : >> { %v8317_v3 = vpop.eup %5992  ;;  %v4598_v40 = vmul.f32 1.442695, %v4587_v21  ;;  %v4873_v46 = vadd.f32 %v4865_v37, %v4793_v54  ;;  %v4929_v15 = vadd.f32 %v8282_v58, %v4849_v24 }
 0x4bb   : >> { %9504 = vst [vmem:[#allocation111_spill] sm:$0xff] %v8317_v3  ;;  %v8322_v43 = vpop.eup %5994  ;;  %v4706_v48 = vmul.f32 %v8317_v3, %v7836_v8  ;;  %v4678_v14 = vmul.f32 1.442695, %v4667_v33  ;;  %v4554_v0 = vadd.f32 %v4546_v63, %v4474_v20  ;;  %v4610_v28 = vadd.f32 %v8310_v7, %v4530_v26  ;;  %v9509_v33 = vld [vmem:[#allocation112_spill] sm:$0xff] }
 0x4bc   : >> { %9505 = vst [vmem:[#allocation136_spill] sm:$0xff] %v8322_v43  ;;  %v8327_v12 = vpop.eup %5996  ;;  %v4786_v50 = vmul.f32 %v8322_v43, %v7840_v35  ;;  %6010 = vpow2.f32 %v4598_v40  ;;  %v4953_v37 = vadd.f32 %v4945_v51, %v4873_v46  ;;  %v5009_v21 = vadd.f32 %v8288_v13, %v4929_v15 }
 0x4bd   : >> { %9506 = vst [vmem:[#allocation137_spill] sm:$0xff] %v8327_v12  ;;  %v8332_v47 = vpop.eup %5998  ;;  %v4866_v54 = vmul.f32 %v8327_v12, %v7852_v59  ;;  %6012 = vpow2.f32 %v4678_v14  ;;  %v4634_v20 = vadd.f32 %v4626_v19, %v4554_v0  ;;  %v4690_v26 = vadd.f32 %v8317_v3, %v4610_v28  ;;  %v9511_v14 = vld [vmem:[#allocation121_spill] sm:$0xff] }
 0x4be   : >> { %9507 = vst [vmem:[#allocation138_spill] sm:$0xff] %v8332_v47  ;;  %v8337_v24 = vpop.eup %6000  ;;  %v4946_v63 = vmul.f32 %v8332_v47, %v7856_v52  ;;  %v4747_v40 = vsub.f32 %v9509_v33, %v8218_v25  ;;  %v5033_v51 = vadd.f32 %v5025_v42, %v4953_v37  ;;  %6014 = vrcp.f32 %v5009_v21 }
 0x4bf   : >> { %9508 = vst [vmem:[#allocation139_spill] sm:$0xff] %v8337_v24  ;;  %v8344_v7 = vpop.eup %6002  ;;  %v5026_v46 = vmul.f32 %v8337_v24, %v7871_v32  ;;  %v4827_v15 = vsub.f32 %v9511_v14, %v8218_v25  ;;  %v4714_v19 = vadd.f32 %v4706_v48, %v4634_v20  ;;  %v4770_v0 = vadd.f32 %v8322_v43, %v4690_v26 }
 0x4c0   : >> { %9510 = vst [vmem:[#allocation112_spill] sm:$0xff] %v8344_v7  ;;  %v8350_v18 = vpop.eup %6004  ;;  %v4387_v28 = vmul.f32 %v8344_v7, %v7875_v23  ;;  %v4758_v42 = vmul.f32 1.442695, %v4747_v40  ;;  %v4907_v14 = vsub.f32 %v8079_v36, %v8218_v25  ;;  %v4987_v3 = vsub.f32 %v8194_v56, %v8218_v25 }
 0x4c1   : >> { %9512 = vst [vmem:[#allocation121_spill] sm:$0xff] %v8350_v18  ;;  %v8360_v37 = vpop.eup %6006  ;;  %v5072_v21 = vmul.f32 %v8350_v18, %v5032_v57  ;;  %v4838_v33 = vmul.f32 1.442695, %v4827_v15  ;;  %v4794_v48 = vadd.f32 %v4786_v50, %v4714_v19  ;;  %v4850_v20 = vadd.f32 %v8327_v12, %v4770_v0  ;;  %v9516_v19 = vld [vmem:[#allocation94_spill] sm:$0xff] }
 0x4c2   : >> { %9514 = vst [vmem:[#allocation140_spill] sm:$0xff] %v8360_v37  ;;  %v8367_v13 = vpop.eup %6008  ;;  %v4451_v26 = vadd.f32 %v8360_v37, %v8344_v7  ;;  %v4467_v40 = vmul.f32 %v8360_v37, %v7901_v44  ;;  %6016 = vpow2.f32 %v4758_v42  ;;  %v4918_v36 = vmul.f32 1.442695, %v4907_v14  ;;  %v9517_v7 = vld [vmem:[#allocation95_spill] sm:$0xff] }
 0x4c3   : >> { %9515 = vst [vmem:[#allocation141_spill] sm:$0xff] %v8367_v13  ;;  %5082 = vst [vmem:[%s8355_s17] sm:$0xff] %v5072_v21  ;;  %v4547_v57 = vmul.f32 %v8367_v13, %v9486_v34  ;;  %v4998_v15 = vmul.f32 1.442695, %v4987_v3  ;;  %v4874_v43 = vadd.f32 %v4866_v54, %v4794_v48  ;;  %v4930_v56 = vadd.f32 %v8332_v47, %v4850_v20  ;;  %v9518_v21 = vld [vmem:[#allocation105_spill] sm:$0xff] }
 0x4c4   : >> { %v4475_v25 = vadd.f32 %v4467_v40, %v4387_v28  ;;  %v4531_v50 = vadd.f32 %v8367_v13, %v4451_v26  ;;  %6018 = vpow2.f32 %v4838_v33  ;;  %v4348_v0 = vsub.f32 %v9516_v19, %v8224_v61  ;;  %v8410_v19 = vld [vmem:[%s7820_s9 + $0x30] sm:$0xff] }
 0x4c5   : >> { %v4428_v37 = vsub.f32 %v9517_v7, %v8224_v61  ;;  %v4508_v12 = vsub.f32 %v9518_v21, %v8224_v61  ;;  %v4954_v42 = vadd.f32 %v4946_v63, %v4874_v43  ;;  %v5010_v3 = vadd.f32 %v8337_v24, %v4930_v56  ;;  %v9524_v21 = vld [vmem:[#allocation116_spill] sm:$0xff]  ;;  %v8563_v24 = vld [vmem:[%s8040_s12 + $0x30] sm:$0xff] }
 0x4c6   : >> { %v8385_v58 = vpop.eup %6010  ;;  %v4555_v54 = vadd.f32 %v4547_v57, %v4475_v25  ;;  %6020 = vpow2.f32 %v4918_v36  ;;  %v4360_v7 = vmul.f32 1.442695, %v4348_v0 }
 0x4c7   : >> { %9519 = vst [vmem:[#allocation94_spill] sm:$0xff] %v8385_v58  ;;  %v8388_v28 = vpop.eup %6012  ;;  %v4611_v33 = vadd.f32 %v8385_v58, %v4531_v50  ;;  %v4627_v14 = vmul.f32 %v8385_v58, %v9488_v9  ;;  %6022 = vpow2.f32 %v4998_v15  ;;  %v5034_v48 = vadd.f32 %v5026_v46, %v4954_v42  ;;  %v9522_v15 = vld [vmem:[#allocation106_spill] sm:$0xff]  ;;  %v9523_v46 = vld [vmem:[#allocation113_spill] sm:$0xff] }
 0x4c8   : >> { %9520 = vst [vmem:[#allocation95_spill] sm:$0xff] %v8388_v28  ;;  %6024 = vrcp.f32 %v5010_v3  ;;  %v4707_v43 = vmul.f32 %v8388_v28, %v9490_v60  ;;  %v4440_v63 = vmul.f32 1.442695, %v4428_v37  ;;  %v8395_v20 = vpop.eup %6014  ;;  %v4520_v57 = vmul.f32 1.442695, %v4508_v12  ;;  %v8404_v50 = vld [vmem:[%s8108_s16 + $0x28] sm:$0xff] }
 0x4c9   : >> { %9521 = vst [vmem:[#allocation105_spill] sm:$0xff] %v8395_v20  ;;  %v4635_v26 = vadd.f32 %v4627_v14, %v4555_v54  ;;  %v4691_v40 = vadd.f32 %v8388_v28, %v4611_v33  ;;  %6026 = vpow2.f32 %v4360_v7  ;;  %v5073_v36 = vmul.f32 %v8395_v20, %v5033_v51  ;;  %v8407_v37 = vld [vmem:[%s7800_s23 + $0x30] sm:$0xff]  ;;  %v8536_v20 = vld [vmem:[%s7890_s22 + $0x38] sm:$0xff] }
 0x4ca   : >> { %6028 = vpow2.f32 %v4440_v63  ;;  %v4588_v56 = vsub.f32 %v9522_v15, %v8224_v61  ;;  %v4668_v25 = vsub.f32 %v9523_v46, %v8224_v61  ;;  %v4748_v12 = vsub.f32 %v9524_v21, %v8224_v61  ;;  %v9526_v63 = vld [vmem:[#allocation126_spill] sm:$0xff]  ;;  %v9530_v46 = vld [vmem:[#allocation96_spill] sm:$0xff]  ;;  %v9531_v21 = vld [vmem:[#allocation97_spill] sm:$0xff] }
 0x4cb   : >> { %v4715_v0 = vadd.f32 %v4707_v43, %v4635_v26  ;;  %6030 = vpow2.f32 %v4520_v57  ;;  %v4828_v51 = vsub.f32 %v8083_v29, %v8224_v61  ;;  %5083 = vst [vmem:[%s8355_s17 + $0x8] sm:$0xff] %v5073_v36  ;;  %v4908_v54 = vsub.f32 %v8100_v62, %v8224_v61  ;;  %v9527_v26 = vld [vmem:[#allocation125_spill] sm:$0xff]  ;;  %v9536_v29 = vld [vmem:[#allocation107_spill] sm:$0xff] }
 0x4cc   : >> { %v4600_v42 = vmul.f32 1.442695, %v4588_v56  ;;  %v4680_v3 = vmul.f32 1.442695, %v4668_v25  ;;  %v4988_v33 = vsub.f32 %v8197_v49, %v8224_v61  ;;  %v8421_v14 = vpop.eup %6016  ;;  %v4760_v7 = vmul.f32 1.442695, %v4748_v12 }
 0x4cd   : >> { %9525 = vst [vmem:[#allocation106_spill] sm:$0xff] %v8421_v14  ;;  %v4840_v43 = vmul.f32 1.442695, %v4828_v51  ;;  %v9528_v57 = vmax.f32 %v9526_v63, %v9527_v26  ;;  %v4771_v36 = vadd.f32 %v8421_v14, %v4691_v40  ;;  %v4787_v62 = vmul.f32 %v8421_v14, %v9492_v11 }
 0x4ce   : >> { %6032 = vpow2.f32 %v4600_v42  ;;  %v4920_v49 = vmul.f32 1.442695, %v4908_v54  ;;  %v8434_v61 = vpop.eup %6018  ;;  %v5000_v56 = vmul.f32 1.442695, %v4988_v33 }
 0x4cf   : >> { %v8427_v15 = vmax.f32 %v9528_v57, %v8404_v50  ;;  %9529 = vst [vmem:[#allocation113_spill] sm:$0xff] %v8434_v61  ;;  %6034 = vpow2.f32 %v4680_v3  ;;  %v4795_v63 = vadd.f32 %v4787_v62, %v4715_v0  ;;  %v4851_v40 = vadd.f32 %v8434_v61, %v4771_v36 }
 0x4d0   : >> { %v8440_v51 = vpop.eup %6020  ;;  %v4867_v57 = vmul.f32 %v8434_v61, %v9494_v38  ;;  %6036 = vpow2.f32 %v4760_v7 }
 0x4d1   : >> { %v4349_v25 = vsub.f32 %v9530_v46, %v8427_v15  ;;  %v4429_v12 = vsub.f32 %v9531_v21, %v8427_v15  ;;  %9532 = vst [vmem:[#allocation116_spill] sm:$0xff] %v8440_v51  ;;  %v8445_v42 = vpop.eup %6022  ;;  %v4947_v3 = vmul.f32 %v8440_v51, %v9496_v27  ;;  %6038 = vpow2.f32 %v4840_v43 }
 0x4d2   : >> { %9533 = vst [vmem:[#allocation126_spill] sm:$0xff] %v8445_v42  ;;  %v8449_v46 = vpop.eup %6024  ;;  %v4875_v21 = vadd.f32 %v4867_v57, %v4795_v63  ;;  %v4931_v0 = vadd.f32 %v8440_v51, %v4851_v40  ;;  %v5027_v36 = vmul.f32 %v8445_v42, %v9498_v30  ;;  %6040 = vpow2.f32 %v4920_v49 }
 0x4d3   : >> { %v4362_v54 = vmul.f32 1.442695, %v4349_v25  ;;  %v4442_v33 = vmul.f32 1.442695, %v4429_v12  ;;  %9534 = vst [vmem:[#allocation125_spill] sm:$0xff] %v8449_v46  ;;  %v8454_v62 = vpop.eup %6026  ;;  %v5074_v7 = vmul.f32 %v8449_v46, %v5034_v48  ;;  %6042 = vpow2.f32 %v5000_v56  ;;  %v9537_v25 = vld [vmem:[#allocation108_spill] sm:$0xff] }
 0x4d4   : >> { %9535 = vst [vmem:[#allocation96_spill] sm:$0xff] %v8454_v62  ;;  %v4509_v43 = vsub.f32 %v9536_v29, %v8427_v15  ;;  %v4589_v12 = vsub.f32 %v9537_v25, %v8427_v15  ;;  %v8461_v61 = vpop.eup %6028  ;;  %v4955_v63 = vadd.f32 %v4947_v3, %v4875_v21  ;;  %v5011_v40 = vadd.f32 %v8445_v42, %v4931_v0 }
 0x4d5   : >> { %9538 = vst [vmem:[#allocation97_spill] sm:$0xff] %v8461_v61  ;;  %v4388_v57 = vmul.f32 %v8454_v62, %v7808_v31  ;;  %6044 = vpow2.f32 %v4362_v54  ;;  %v8466_v49 = vpop.eup %6030  ;;  %5084 = vst [vmem:[%s8355_s17 + $0x10] sm:$0xff] %v5074_v7  ;;  %v4452_v48 = vadd.f32 %v8461_v61, %v8454_v62  ;;  %v4468_v29 = vmul.f32 %v8461_v61, %v7812_v1  ;;  %v9540_v7 = vld [vmem:[#allocation117_spill] sm:$0xff] }
 0x4d6   : >> { %9539 = vst [vmem:[#allocation107_spill] sm:$0xff] %v8466_v49  ;;  %6046 = vpow2.f32 %v4442_v33  ;;  %v4522_v56 = vmul.f32 1.442695, %v4509_v43  ;;  %v5035_v25 = vadd.f32 %v5027_v36, %v4955_v63  ;;  %v4548_v3 = vmul.f32 %v8466_v49, %v7828_v5  ;;  %v9542_v33 = vld [vmem:[#allocation118_spill] sm:$0xff]  ;;  %v9543_v36 = vld [vmem:[#allocation124_spill] sm:$0xff] }
 0x4d7   : >> { %6048 = vrcp.f32 %v5011_v40  ;;  %v4602_v21 = vmul.f32 1.442695, %v4589_v12  ;;  %v4476_v0 = vadd.f32 %v4468_v29, %v4388_v57  ;;  %v4532_v54 = vadd.f32 %v8466_v49, %v4452_v48 }
 0x4d8   : >> { %6050 = vpow2.f32 %v4522_v56  ;;  %v4669_v46 = vsub.f32 %v9540_v7, %v8427_v15  ;;  %v8478_v62 = vpop.eup %6032  ;;  %v4749_v43 = vsub.f32 %v9542_v33, %v8427_v15  ;;  %v4829_v63 = vsub.f32 %v9543_v36, %v8427_v15 }
 0x4d9   : >> { %9541 = vst [vmem:[#allocation108_spill] sm:$0xff] %v8478_v62  ;;  %6052 = vpow2.f32 %v4602_v21  ;;  %v4909_v40 = vsub.f32 %v9527_v26, %v8427_v15  ;;  %v8486_v12 = vpop.eup %6034  ;;  %v4556_v57 = vadd.f32 %v4548_v3, %v4476_v0  ;;  %v4612_v48 = vadd.f32 %v8478_v62, %v4532_v54  ;;  %v8492_v21 = vld [vmem:[%s7890_s22 + $0x30] sm:$0xff] }
 0x4da   : >> { %9544 = vst [vmem:[#allocation117_spill] sm:$0xff] %v8486_v12  ;;  %v4628_v29 = vmul.f32 %v8478_v62, %v7832_v53  ;;  %v4682_v56 = vmul.f32 1.442695, %v4669_v46  ;;  %v8494_v7 = vpop.eup %6036  ;;  %v4708_v33 = vmul.f32 %v8486_v12, %v7836_v8  ;;  %v4762_v26 = vmul.f32 1.442695, %v4749_v43  ;;  %v8504_v54 = vld [vmem:[%s7915_s0 + $0x30] sm:$0xff] }
 0x4db   : >> { %9545 = vst [vmem:[#allocation118_spill] sm:$0xff] %v8494_v7  ;;  %v4842_v36 = vmul.f32 1.442695, %v4829_v63  ;;  %v4922_v49 = vmul.f32 1.442695, %v4909_v40  ;;  %v8498_v61 = vpop.eup %6038  ;;  %v4692_v0 = vadd.f32 %v8486_v12, %v4612_v48  ;;  %v4788_v46 = vmul.f32 %v8494_v7, %v7840_v35  ;;  %v8520_v48 = vld [vmem:[%s7820_s9 + $0x38] sm:$0xff] }
 0x4dc   : >> { %9546 = vst [vmem:[#allocation124_spill] sm:$0xff] %v8498_v61  ;;  %v4636_v3 = vadd.f32 %v4628_v29, %v4556_v57  ;;  %6054 = vpow2.f32 %v4682_v56  ;;  %v8506_v62 = vpop.eup %6040  ;;  %v4868_v42 = vmul.f32 %v8498_v61, %v7852_v59  ;;  %v4989_v43 = vsub.f32 %v8404_v50, %v8427_v15  ;;  %v8517_v57 = vld [vmem:[%s7800_s23 + $0x38] sm:$0xff]  ;;  %v8528_v50 = vld [vmem:[%s7971_s5 + $0x30] sm:$0xff]  ;;  %s5110_s23 = scalar_lea.sflag (%p4150_p0), [#allocation4], %s9650_s20 }
 0x4dd   : >> { %9547 = vst [vmem:[#allocation142_spill] sm:$0xff] %v8506_v62  ;;  %6056 = vpow2.f32 %v4762_v26  ;;  %v9548_v63 = vmax.f32 %v8407_v37, %v8410_v19  ;;  %v8522_v29 = vpop.eup %6042  ;;  %v4772_v12 = vadd.f32 %v8494_v7, %v4692_v0  ;;  %v4948_v26 = vmul.f32 %v8506_v62, %v7856_v52  ;;  %v8544_v7 = vld [vmem:[%s7993_s10 + $0x30] sm:$0xff] }
 0x4de   : >> { %9549 = vst [vmem:[#allocation143_spill] sm:$0xff] %v8522_v29  ;;  %v4716_v56 = vadd.f32 %v4708_v33, %v4636_v3  ;;  %6058 = vpow2.f32 %v4842_v36  ;;  %v5002_v51 = vmul.f32 1.442695, %v4989_v43  ;;  %v4189_v28 = vmax.f32 %v8517_v57, %v8520_v48 }
 0x4df   : >> { %v4210_v40 = vmax.f32 %v9548_v63, %v8492_v21  ;;  %v8530_v15 = vpop.eup %6044  ;;  %v5028_v63 = vmul.f32 %v8522_v29, %v7871_v32  ;;  %6060 = vpow2.f32 %v4922_v49  ;;  %v4852_v36 = vadd.f32 %v8498_v61, %v4772_v12 }
 0x4e0   : >> { %9550 = vst [vmem:[#allocation144_spill] sm:$0xff] %v8530_v15  ;;  %v8538_v33 = vpop.eup %6046  ;;  %v4796_v3 = vadd.f32 %v4788_v46, %v4716_v56  ;;  %v4389_v0 = vmul.f32 %v8530_v15, %v7875_v23  ;;  %6062 = vpow2.f32 %v5002_v51  ;;  %v8556_v46 = vld [vmem:[%s7915_s0 + $0x38] sm:$0xff] }
 0x4e1   : >> { %v4232_v14 = vmax.f32 %v4210_v40, %v8504_v54  ;;  %9551 = vst [vmem:[#allocation145_spill] sm:$0xff] %v8538_v33  ;;  %v8548_v49 = vpop.eup %6048  ;;  %v4453_v43 = vadd.f32 %v8538_v33, %v8530_v15  ;;  %v4469_v40 = vmul.f32 %v8538_v33, %v7901_v44  ;;  %v4932_v13 = vadd.f32 %v8506_v62, %v4852_v36  ;;  %v8580_v36 = vld [vmem:[%s8063_s18 + $0x30] sm:$0xff] }
 0x4e2   : >> { %9552 = vst [vmem:[#allocation146_spill] sm:$0xff] %v8548_v49  ;;  %v8558_v56 = vpop.eup %6050  ;;  %v5075_v61 = vmul.f32 %v8548_v49, %v5035_v25  ;;  %v4876_v58 = vadd.f32 %v4868_v42, %v4796_v3  ;;  %v4211_v15 = vmax.f32 %v4189_v28, %v8536_v20  ;;  %v8573_v25 = vld [vmem:[%s7971_s5 + $0x38] sm:$0xff]  ;;  %v9557_v62 = vld [vmem:[#allocation115_spill] sm:$0xff] }
 0x4e3   : >> { %v4254_v12 = vmax.f32 %v4232_v14, %v8528_v50  ;;  %9553 = vst [vmem:[#allocation147_spill] sm:$0xff] %v8558_v56  ;;  %v8566_v33 = vpop.eup %6052  ;;  %v4477_v51 = vadd.f32 %v4469_v40, %v4389_v0  ;;  %v4533_v14 = vadd.f32 %v8558_v56, %v4453_v43  ;;  %v4549_v47 = vmul.f32 %v8558_v56, %v9486_v34  ;;  %v8586_v49 = vld [vmem:[%s7993_s10 + $0x38] sm:$0xff]  ;;  %v9555_v56 = vld [vmem:[#allocation114_spill] sm:$0xff] }
 0x4e4   : >> { %9554 = vst [vmem:[#allocation148_spill] sm:$0xff] %v8566_v33  ;;  %5085 = vst [vmem:[%s8355_s17 + $0x18] sm:$0xff] %v5075_v61  ;;  %v4956_v42 = vadd.f32 %v4948_v26, %v4876_v58  ;;  %v5012_v3 = vadd.f32 %v8522_v29, %v4932_v13  ;;  %v4629_v28 = vmul.f32 %v8566_v33, %v9488_v9  ;;  %v4334_v26 = vld [vmem:[%s8108_s16 + $0x30] sm:$0xff] }
 0x4e5   : >> { %v4276_v18 = vmax.f32 %v4254_v12, %v8544_v7  ;;  %v4233_v0 = vmax.f32 %v4211_v15, %v8556_v46  ;;  %v4557_v43 = vadd.f32 %v4549_v47, %v4477_v51  ;;  %v4613_v40 = vadd.f32 %v8566_v33, %v4533_v14  ;;  %v8603_v33 = vld [vmem:[%s8040_s12 + $0x38] sm:$0xff] }
 0x4e6   : >> { %v4408_v58 = vmul.f32 %v8175_v17, %v9555_v56  ;;  %v8590_v61 = vpop.eup %6054  ;;  %v5036_v13 = vadd.f32 %v5028_v63, %v4956_v42  ;;  %6064 = vrcp.f32 %v5012_v3  ;;  %v4488_v47 = vmul.f32 %v8183_v22, %v9557_v62 }
 0x4e7   : >> { %v4298_v12 = vmax.f32 %v4276_v18, %v8563_v24  ;;  %9556 = vst [vmem:[#allocation149_spill] sm:$0xff] %v8590_v61  ;;  %v4255_v29 = vmax.f32 %v4233_v0, %v8573_v25  ;;  %v8596_v15 = vpop.eup %6056  ;;  %v4637_v51 = vadd.f32 %v4629_v28, %v4557_v43  ;;  %v4693_v18 = vadd.f32 %v8590_v61, %v4613_v40  ;;  %v9560_v0 = vld [vmem:[#allocation119_spill] sm:$0xff] }
 0x4e8   : >> { %9558 = vst [vmem:[#allocation150_spill] sm:$0xff] %v8596_v15  ;;  %v4709_v14 = vmul.f32 %v8590_v61, %v9490_v60  ;;  %v8605_v63 = vpop.eup %6058  ;;  %v4789_v42 = vmul.f32 %v8596_v15, %v9492_v11  ;;  %v4496_v22 = vadd.f32 %v4488_v47, %v4408_v58  ;;  %v4568_v28 = vmul.f32 %v8187_v16, %v9560_v0 }
 0x4e9   : >> { %v4320_v17 = vmax.f32 %v4298_v12, %v8580_v36  ;;  %9559 = vst [vmem:[#allocation151_spill] sm:$0xff] %v8605_v63  ;;  %v4277_v3 = vmax.f32 %v4255_v29, %v8586_v49  ;;  %v8612_v43 = vpop.eup %6060  ;;  %v4773_v61 = vadd.f32 %v8596_v15, %v4693_v18  ;;  %v4869_v12 = vmul.f32 %v8605_v63, %v9494_v38  ;;  %v9561_v29 = vld [vmem:[#allocation122_spill] sm:$0xff] }
 0x4ea   : >> { %v4717_v40 = vadd.f32 %v4709_v14, %v4637_v51  ;;  %v4949_v56 = vmul.f32 %v8612_v43, %v9496_v27  ;;  %v4576_v60 = vadd.f32 %v4568_v28, %v4496_v22  ;;  %v4648_v58 = vmul.f32 %v8199_v39, %v9561_v29  ;;  %v8622_v47 = vpop.eup %6062 }
 0x4eb   : >> { %v4342_v62 = vmax.f32 %v4320_v17, %v4334_v26  ;;  %v4299_v11 = vmax.f32 %v4277_v3, %v8603_v33  ;;  %v4853_v51 = vadd.f32 %v8605_v63, %v4773_v61  ;;  %v5029_v17 = vmul.f32 %v8622_v47, %v9498_v30 }
 0x4ec   : >> { %v4797_v16 = vadd.f32 %v4789_v42, %v4717_v40 }
 0x4ed   : >> { %v4350_v18 = vsub.f32 %v8407_v37, %v4342_v62  ;;  %v4430_v14 = vsub.f32 %v8410_v19, %v4342_v62  ;;  %v4510_v15 = vsub.f32 %v8492_v21, %v4342_v62  ;;  %v4590_v3 = vsub.f32 %v8504_v54, %v4342_v62  ;;  %v4313_v54 = vld [vmem:[%s8063_s18 + $0x38] sm:$0xff] }
 0x4ee   : >> { %v4670_v22 = vsub.f32 %v8528_v50, %v4342_v62  ;;  %v4877_v39 = vadd.f32 %v4869_v12, %v4797_v16  ;;  %v4933_v28 = vadd.f32 %v8612_v43, %v4853_v51  ;;  %v4750_v19 = vsub.f32 %v8544_v7, %v4342_v62 }
 0x4ef   : >> { %v4364_v42 = vmul.f32 1.442695, %v4350_v18  ;;  %v4444_v40 = vmul.f32 1.442695, %v4430_v14  ;;  %v4524_v61 = vmul.f32 1.442695, %v4510_v15  ;;  %v4830_v21 = vsub.f32 %v8563_v24, %v4342_v62 }
 0x4f0   : >> { %v4604_v63 = vmul.f32 1.442695, %v4590_v3  ;;  %v4684_v37 = vmul.f32 1.442695, %v4670_v22  ;;  %v4957_v29 = vadd.f32 %v4949_v56, %v4877_v39  ;;  %v5013_v0 = vadd.f32 %v8622_v47, %v4933_v28  ;;  %v8637_v50 = vpop.eup %6064  ;;  %v4335_v56 = vld [vmem:[%s8108_s16 + $0x38] sm:$0xff]  ;;  %v9563_v39 = vld [vmem:[#allocation127_spill] sm:$0xff] }
 0x4f1   : >> { %6066 = vpow2.f32 %v4364_v42  ;;  %9562 = vst [vmem:[#allocation152_spill] sm:$0xff] %v8637_v50  ;;  %v4764_v12 = vmul.f32 1.442695, %v4750_v19  ;;  %v4910_v16 = vsub.f32 %v8580_v36, %v4342_v62  ;;  %v4990_v15 = vsub.f32 %v4334_v26, %v4342_v62  ;;  %v9564_v42 = vld [vmem:[#allocation129_spill] sm:$0xff]  ;;  %v9566_v26 = vld [vmem:[#allocation43_spill] sm:$0xff] }
 0x4f2   : >> { %6068 = vpow2.f32 %v4444_v40  ;;  %v5076_v51 = vmul.f32 %v8637_v50, %v5036_v13  ;;  %v5037_v18 = vadd.f32 %v5029_v17, %v4957_v29  ;;  %v4844_v7 = vmul.f32 1.442695, %v4830_v21  ;;  %v9565_v13 = vld [vmem:[#allocation110_spill] sm:$0xff]  ;;  %v9567_v29 = vld [vmem:[#allocation45_spill] sm:$0xff]  ;;  %v9606_v50 = vld [vmem:[#allocation136_spill] sm:$0xff] }
 0x4f3   : >> { %6070 = vrcp.f32 %v5013_v0  ;;  %v4924_v14 = vmul.f32 1.442695, %v4910_v16  ;;  %v5004_v3 = vmul.f32 1.442695, %v4990_v15  ;;  %v4321_v22 = vmax.f32 %v4299_v11, %v4313_v54 }
 0x4f4   : >> { %6072 = vpow2.f32 %v4524_v61  ;;  %5086 = vst [vmem:[%s8355_s17 + $0x20] sm:$0xff] %v5076_v51  ;;  %v4656_v24 = vadd.f32 %v4648_v58, %v4576_v60  ;;  %v4728_v28 = vmul.f32 %v8205_v55, %v9563_v39  ;;  %v4808_v36 = vmul.f32 %v8210_v4, %v9564_v42  ;;  %v9568_v60 = vld [vmem:[#allocation44_spill] sm:$0xff] }
 0x4f5   : >> { %6074 = vpow2.f32 %v4604_v63  ;;  %v4343_v62 = vmax.f32 %v4321_v22, %v4335_v56  ;;  %v8649_v0 = vrot.slane %v9566_v26, %v9565_v13  ;;  %v8653_v17 = vrot.slane %v9567_v29, %v9565_v13  ;;  %v9569_v55 = vld [vmem:[#allocation120_spill] sm:$0xff] }
 0x4f6   : >> { %6076 = vpow2.f32 %v4684_v37  ;;  %v4736_v11 = vadd.f32 %v4728_v28, %v4656_v24  ;;  %v8657_v63 = vrot.slane %v9568_v60, %v9565_v13  ;;  %v8661_v58 = vmul.f32 %v8244_v45, %v9569_v55 }
 0x4f7   : >> { %6078 = vpow2.f32 %v4764_v12  ;;  %v4351_v4 = vsub.f32 %v8517_v57, %v4343_v62  ;;  %v4431_v40 = vsub.f32 %v8520_v48, %v4343_v62  ;;  %v4511_v61 = vsub.f32 %v8536_v20, %v4343_v62 }
 0x4f8   : >> { %6080 = vpow2.f32 %v4844_v7  ;;  %v4591_v37 = vsub.f32 %v8556_v46, %v4343_v62  ;;  %v4671_v19 = vsub.f32 %v8573_v25, %v4343_v62  ;;  %v4751_v21 = vsub.f32 %v8586_v49, %v4343_v62 }
 0x4f9   : >> { %6082 = vpow2.f32 %v4924_v14  ;;  %v4366_v12 = vmul.f32 1.442695, %v4351_v4  ;;  %v4446_v16 = vmul.f32 1.442695, %v4431_v40  ;;  %v4526_v15 = vmul.f32 1.442695, %v4511_v61 }
 0x4fa   : >> { %6084 = vpow2.f32 %v5004_v3  ;;  %v4606_v51 = vmul.f32 1.442695, %v4591_v37  ;;  %v4686_v7 = vmul.f32 1.442695, %v4671_v19  ;;  %v4766_v57 = vmul.f32 1.442695, %v4751_v21 }
 0x4fb   : >> { %v8669_v45 = vpop.eup %6066  ;;  %v4831_v48 = vsub.f32 %v8603_v33, %v4343_v62  ;;  %6086 = vpow2.f32 %v4366_v12  ;;  %v4911_v46 = vsub.f32 %v4313_v54, %v4343_v62  ;;  %v4991_v25 = vsub.f32 %v4335_v56, %v4343_v62 }
 0x4fc   : >> { %v8672_v22 = vpop.eup %6068  ;;  %v4390_v20 = vmul.f32 %v8669_v45, %v7808_v31  ;;  %6088 = vpow2.f32 %v4446_v16  ;;  %v4888_v4 = vmul.f32 %v8226_v10, %v8649_v0 }
 0x4fd   : >> { %v8676_v49 = vpop.eup %6070  ;;  %v4454_v14 = vadd.f32 %v8672_v22, %v8669_v45  ;;  %v4470_v3 = vmul.f32 %v8672_v22, %v7812_v1  ;;  %v4846_v24 = vmul.f32 1.442695, %v4831_v48  ;;  %6090 = vpow2.f32 %v4526_v15  ;;  %v9571_v48 = vld [vmem:[#allocation123_spill] sm:$0xff] }
 0x4fe   : >> { %9570 = vst [vmem:[#allocation127_spill] sm:$0xff] %v8676_v49  ;;  %v8682_v33 = vpop.eup %6072  ;;  %v5077_v28 = vmul.f32 %v8676_v49, %v5037_v18  ;;  %v4926_v31 = vmul.f32 1.442695, %v4911_v46  ;;  %v5006_v26 = vmul.f32 1.442695, %v4991_v25  ;;  %6092 = vpow2.f32 %v4606_v51  ;;  %v9572_v25 = vld [vmem:[#allocation128_spill] sm:$0xff] }
 0x4ff   : >> { %v8685_v54 = vpop.eup %6074  ;;  %v4478_v56 = vadd.f32 %v4470_v3, %v4390_v20  ;;  %v4534_v62 = vadd.f32 %v8682_v33, %v4454_v14  ;;  %v4550_v29 = vmul.f32 %v8682_v33, %v7828_v5  ;;  %6094 = vpow2.f32 %v4686_v7  ;;  %v9573_v14 = vld [vmem:[#allocation131_spill] sm:$0xff]  ;;  %v9574_v3 = vld [vmem:[#allocation130_spill] sm:$0xff] }
 0x500   : >> { %v8690_v60 = vpop.eup %6076  ;;  %5087 = vst [vmem:[%s8355_s17 + $0x28] sm:$0xff] %v5077_v28  ;;  %v4630_v1 = vmul.f32 %v8685_v54, %v7832_v53  ;;  %v4816_v18 = vadd.f32 %v4808_v36, %v4736_v11  ;;  %6096 = vpow2.f32 %v4766_v57  ;;  %v4968_v36 = vmul.f32 %v8231_v41, %v8653_v17  ;;  %v9605_v49 = vld [vmem:[#allocation111_spill] sm:$0xff] }
 0x501   : >> { %v8697_v40 = vpop.eup %6078  ;;  %v4558_v61 = vadd.f32 %v4550_v29, %v4478_v56  ;;  %v4614_v37 = vadd.f32 %v8685_v54, %v4534_v62  ;;  %v4710_v5 = vmul.f32 %v8690_v60, %v7836_v8  ;;  %6098 = vpow2.f32 %v4846_v24  ;;  %v9575_v24 = vld [vmem:[#allocation132_spill] sm:$0xff] }
 0x502   : >> { %v8702_v19 = vpop.eup %6080  ;;  %v4790_v21 = vmul.f32 %v8697_v40, %v7840_v35  ;;  %v4896_v53 = vadd.f32 %v4888_v4, %v4816_v18  ;;  %6100 = vpow2.f32 %v4926_v31  ;;  %v5048_v51 = vmul.f32 %v8239_v2, %v8657_v63  ;;  %v9576_v2 = vld [vmem:[#allocation61_spill] sm:$0xff] }
 0x503   : >> { %v8708_v10 = vpop.eup %6082  ;;  %v4638_v11 = vadd.f32 %v4630_v1, %v4558_v61  ;;  %v4694_v12 = vadd.f32 %v8690_v60, %v4614_v37  ;;  %v4870_v16 = vmul.f32 %v8702_v19, %v7852_v59  ;;  %6102 = vpow2.f32 %v5006_v26  ;;  %v9579_v4 = vld [vmem:[#allocation121_spill] sm:$0xff]  ;;  %v9580_v37 = vld [vmem:[#allocation98_spill] sm:$0xff] }
 0x504   : >> { %v8713_v8 = vpop.eup %6084  ;;  %v4950_v15 = vmul.f32 %v8708_v10, %v7856_v52  ;;  %v4976_v35 = vadd.f32 %v4968_v36, %v4896_v53  ;;  %v4489_v59 = vmul.f32 %v8248_v6, %v9571_v48  ;;  %v4569_v52 = vmul.f32 %v9573_v14, %v9572_v25 }
 0x505   : >> { %v4718_v41 = vadd.f32 %v4710_v5, %v4638_v11  ;;  %v4774_v7 = vadd.f32 %v8697_v40, %v4694_v12  ;;  %v5030_v57 = vmul.f32 %v8713_v8, %v7871_v32  ;;  %v8724_v20 = vpop.eup %6086  ;;  %v4649_v28 = vmul.f32 %v9575_v24, %v9574_v3 }
 0x506   : >> { %v5056_v46 = vadd.f32 %v5048_v51, %v4976_v35  ;;  %v8732_v31 = vrot.slane %v9576_v2, %v9565_v13  ;;  %v8734_v26 = vpop.eup %6088  ;;  %v4391_v6 = vmul.f32 %v8724_v20, %v7875_v23  ;;  %v4497_v62 = vadd.f32 %v4489_v59, %v8661_v58  ;;  %v9583_v51 = vld [vmem:[#allocation93_spill] sm:$0xff] }
 0x507   : >> { %9577 = vst [vmem:[#allocation129_spill] sm:$0xff] %v8734_v26  ;;  %v4798_v56 = vadd.f32 %v4790_v21, %v4718_v41  ;;  %v4854_v32 = vadd.f32 %v8702_v19, %v4774_v7  ;;  %v8740_v29 = vpop.eup %6090  ;;  %v4455_v1 = vadd.f32 %v8734_v26, %v8724_v20  ;;  %v4471_v18 = vmul.f32 %v8734_v26, %v7901_v44 }
 0x508   : >> { %9578 = vst [vmem:[#allocation110_spill] sm:$0xff] %v8740_v29  ;;  %v5090_v61 = vmul.f32 %v9579_v4, %v5056_v46  ;;  %v4729_v5 = vmul.f32 %v9580_v37, %v8732_v31  ;;  %v8749_v21 = vpop.eup %6092  ;;  %v4551_v58 = vmul.f32 %v8740_v29, %v9486_v34  ;;  %v4577_v36 = vadd.f32 %v4569_v52, %v4497_v62  ;;  %v9585_v34 = vld [vmem:[#allocation100_spill] sm:$0xff] }
 0x509   : >> { %9581 = vst [vmem:[#allocation120_spill] sm:$0xff] %v8749_v21  ;;  %v4878_v53 = vadd.f32 %v4870_v16, %v4798_v56  ;;  %v4934_v23 = vadd.f32 %v8708_v10, %v4854_v32  ;;  %v8754_v11 = vpop.eup %6094  ;;  %v4479_v12 = vadd.f32 %v4471_v18, %v4391_v6  ;;  %v4535_v35 = vadd.f32 %v8740_v29, %v4455_v1  ;;  %v9588_v32 = vld [vmem:[#allocation99_spill] sm:$0xff] }
 0x50a   : >> { %9582 = vst [vmem:[#allocation123_spill] sm:$0xff] %v8754_v11  ;;  %v4631_v44 = vmul.f32 %v8749_v21, %v9488_v9  ;;  %5504 = vst [vmem:[%s8355_s17 + $0x100] sm:$0xff] %v5090_v61  ;;  %v8762_v41 = vrot.slane %v9583_v51, %v9565_v13  ;;  %v8764_v16 = vpop.eup %6096  ;;  %v4711_v46 = vmul.f32 %v8754_v11, %v9585_v34  ;;  %v9587_v9 = vld [vmem:[#allocation101_spill] sm:$0xff] }
 0x50b   : >> { %9584 = vst [vmem:[#allocation128_spill] sm:$0xff] %v8764_v16  ;;  %v4958_v7 = vadd.f32 %v4950_v15, %v4878_v53  ;;  %v5014_v59 = vadd.f32 %v8713_v8, %v4934_v23  ;;  %v4657_v14 = vadd.f32 %v4649_v28, %v4577_v36  ;;  %v8769_v52 = vpop.eup %6098  ;;  %v4559_v24 = vadd.f32 %v4551_v58, %v4479_v12  ;;  %v9591_v53 = vld [vmem:[#allocation9_spill] sm:$0xff]  ;;  %v9592_v36 = vld [vmem:[#allocation10_spill] sm:$0xff] }
 0x50c   : >> { %9586 = vst [vmem:[#allocation131_spill] sm:$0xff] %v8769_v52  ;;  %v4615_v2 = vadd.f32 %v8749_v21, %v4535_v35  ;;  %v4791_v56 = vmul.f32 %v8764_v16, %v9587_v9  ;;  %v4809_v6 = vmul.f32 %v9588_v32, %v8762_v41  ;;  %v8776_v62 = vpop.eup %6100  ;;  %v4871_v1 = vmul.f32 %v8769_v52, %v9494_v38  ;;  %v9599_v9 = vld [vmem:[#allocation115_spill] sm:$0xff]  ;;  %v9600_v32 = vld [vmem:[#allocation109_spill] sm:$0xff] }
 0x50d   : >> { %9589 = vst [vmem:[#allocation130_spill] sm:$0xff] %v8776_v62  ;;  %v5038_v15 = vadd.f32 %v5030_v57, %v4958_v7  ;;  %6104 = vrcp.f32 %v5014_v59  ;;  %v4737_v18 = vadd.f32 %v4729_v5, %v4657_v14  ;;  %v8780_v28 = vpop.eup %6102  ;;  %v4639_v4 = vadd.f32 %v4631_v44, %v4559_v24  ;;  %v9593_v5 = vld [vmem:[#allocation11_spill] sm:$0xff]  ;;  %v9595_v7 = vld [vmem:[#allocation114_spill] sm:$0xff] }
 0x50e   : >> { %9590 = vst [vmem:[#allocation132_spill] sm:$0xff] %v8780_v28  ;;  %v4695_v61 = vadd.f32 %v8754_v11, %v4615_v2  ;;  %v4951_v37 = vmul.f32 %v8776_v62, %v9496_v27  ;;  %v8787_v23 = vrot.slane %v9591_v53, %v9565_v13  ;;  %v5031_v57 = vmul.f32 %v8780_v28, %v9498_v30  ;;  %v9594_v27 = vld [vmem:[#allocation133_spill] sm:$0xff]  ;;  %v9596_v59 = vld [vmem:[#allocation103_spill] sm:$0xff]  ;;  %v9597_v30 = vld [vmem:[#allocation134_spill] sm:$0xff] }
 0x50f   : >> { %v4817_v58 = vadd.f32 %v4809_v6, %v4737_v18  ;;  %v8793_v38 = vrot.slane %v9592_v36, %v9565_v13  ;;  %v8797_v12 = vrot.slane %v9593_v5, %v9565_v13  ;;  %v4719_v35 = vadd.f32 %v4711_v46, %v4639_v4  ;;  %v9598_v24 = vld [vmem:[#allocation102_spill] sm:$0xff]  ;;  %v9601_v13 = vld [vmem:[#allocation119_spill] sm:$0xff]  ;;  %v9604_v5 = vld [vmem:[#allocation104_spill] sm:$0xff] }
 0x510   : >> { %v4775_v44 = vadd.f32 %v8764_v16, %v4695_v61  ;;  %v4889_v51 = vmul.f32 %v9594_v27, %v8787_v23  ;;  %v4410_v34 = vmul.f32 %v9596_v59, %v9595_v7  ;;  %v4490_v6 = vmul.f32 %v9600_v32, %v9599_v9  ;;  %v9602_v18 = vld [vmem:[#allocation135_spill] sm:$0xff]  ;;  %v9603_v36 = vld [vmem:[#allocation122_spill] sm:$0xff]  ;;  %v9607_v16 = vld [vmem:[#allocation137_spill] sm:$0xff] }
 0x511   : >> { %v4969_v14 = vmul.f32 %v9597_v30, %v8793_v38  ;;  %v5049_v2 = vmul.f32 %v9598_v24, %v8797_v12  ;;  %v4570_v46 = vmul.f32 %v9602_v18, %v9601_v13  ;;  %v4799_v4 = vadd.f32 %v4791_v56, %v4719_v35  ;;  %v9608_v35 = vld [vmem:[#allocation138_spill] sm:$0xff] }
 0x512   : >> { %v4855_v61 = vadd.f32 %v8769_v52, %v4775_v44  ;;  %v4897_v53 = vadd.f32 %v4889_v51, %v4817_v58  ;;  %v4650_v27 = vmul.f32 %v9604_v5, %v9603_v36  ;;  %v4498_v59 = vadd.f32 %v4490_v6, %v4410_v34  ;;  %v9609_v51 = vld [vmem:[#allocation139_spill] sm:$0xff]  ;;  %v9610_v6 = vld [vmem:[#allocation112_spill] sm:$0xff] }
 0x513   : >> { %v4730_v30 = vmul.f32 %v9605_v49, %v9563_v39  ;;  %v4810_v24 = vmul.f32 %v9606_v50, %v9564_v42  ;;  %v4890_v32 = vmul.f32 %v9607_v16, %v8649_v0  ;;  %v4879_v11 = vadd.f32 %v4871_v1, %v4799_v4  ;;  %v9611_v5 = vld [vmem:[#allocation140_spill] sm:$0xff] }
 0x514   : >> { %v4935_v18 = vadd.f32 %v8776_v62, %v4855_v61  ;;  %v4977_v56 = vadd.f32 %v4969_v14, %v4897_v53  ;;  %v4970_v58 = vmul.f32 %v9608_v35, %v8653_v17  ;;  %v4578_v44 = vadd.f32 %v4570_v46, %v4498_v59  ;;  %v9612_v14 = vld [vmem:[#allocation141_spill] sm:$0xff]  ;;  %v9614_v59 = vld [vmem:[#allocation94_spill] sm:$0xff] }
 0x515   : >> { %v5050_v34 = vmul.f32 %v9609_v51, %v8657_v63  ;;  %v4411_v49 = vmul.f32 %v9610_v6, %v9569_v55  ;;  %v4491_v50 = vmul.f32 %v9611_v5, %v9571_v48  ;;  %v4959_v52 = vadd.f32 %v4951_v37, %v4879_v11  ;;  %v9615_v51 = vld [vmem:[#allocation95_spill] sm:$0xff] }
 0x516   : >> { %v5015_v16 = vadd.f32 %v8780_v28, %v4935_v18  ;;  %v5057_v1 = vadd.f32 %v5049_v2, %v4977_v56  ;;  %v4571_v4 = vmul.f32 %v9612_v14, %v9572_v25  ;;  %v4658_v46 = vadd.f32 %v4650_v27, %v4578_v44  ;;  %v9616_v18 = vld [vmem:[#allocation105_spill] sm:$0xff]  ;;  %v9617_v14 = vld [vmem:[#allocation106_spill] sm:$0xff] }
 0x517   : >> { %v8833_v61 = vpop.eup %6104  ;;  %v4499_v53 = vadd.f32 %v4491_v50, %v4411_v49  ;;  %v4651_v35 = vmul.f32 %v9614_v59, %v9574_v3  ;;  %v4731_v6 = vmul.f32 %v9615_v51, %v8732_v31  ;;  %v5039_v37 = vadd.f32 %v5031_v57, %v4959_v52  ;;  %v9618_v27 = vld [vmem:[#allocation113_spill] sm:$0xff]  ;;  %v9619_v49 = vld [vmem:[#allocation116_spill] sm:$0xff]  ;;  %v9620_v59 = vld [vmem:[#allocation126_spill] sm:$0xff] }
 0x518   : >> { %9613 = vst [vmem:[#allocation121_spill] sm:$0xff] %v8833_v61  ;;  %v5078_v11 = vmul.f32 %v8833_v61, %v5038_v15  ;;  %6106 = vrcp.f32 %v5015_v16  ;;  %v5091_v2 = vmul.f32 %v9616_v18, %v5057_v1  ;;  %v4738_v56 = vadd.f32 %v4730_v30, %v4658_v46  ;;  %v9621_v52 = vld [vmem:[#allocation96_spill] sm:$0xff]  ;;  %v9622_v30 = vld [vmem:[#allocation97_spill] sm:$0xff]  ;;  %v9623_v46 = vld [vmem:[#allocation107_spill] sm:$0xff] }
 0x519   : >> { %v4579_v5 = vadd.f32 %v4571_v4, %v4499_v53  ;;  %v4811_v28 = vmul.f32 %v9617_v14, %v8762_v41  ;;  %v4891_v44 = vmul.f32 %v9618_v27, %v8787_v23  ;;  %v4971_v50 = vmul.f32 %v9619_v49, %v8793_v38  ;;  %v9624_v51 = vld [vmem:[#allocation108_spill] sm:$0xff]  ;;  %v9626_v27 = vld [vmem:[#allocation118_spill] sm:$0xff] }
 0x51a   : >> { %5088 = vst [vmem:[%s8355_s17 + $0x30] sm:$0xff] %v5078_v11  ;;  %5505 = vst [vmem:[%s8355_s17 + $0x108] sm:$0xff] %v5091_v2  ;;  %v5051_v15 = vmul.f32 %v9620_v59, %v8797_v12  ;;  %v4412_v57 = vmul.f32 %v9621_v52, %v9595_v7  ;;  %v4492_v16 = vmul.f32 %v9622_v30, %v9599_v9  ;;  %v9625_v2 = vld [vmem:[#allocation117_spill] sm:$0xff]  ;;  %v9627_v59 = vld [vmem:[#allocation124_spill] sm:$0xff] }
 0x51b   : >> { %v4818_v1 = vadd.f32 %v4810_v24, %v4738_v56  ;;  %v4659_v4 = vadd.f32 %v4651_v35, %v4579_v5  ;;  %v4572_v53 = vmul.f32 %v9623_v46, %v9601_v13  ;;  %v4652_v11 = vmul.f32 %v9624_v51, %v9603_v36  ;;  %v9628_v24 = vld [vmem:[#allocation142_spill] sm:$0xff]  ;;  %v9629_v56 = vld [vmem:[#allocation143_spill] sm:$0xff]  ;;  %v9631_v51 = vld [vmem:[#allocation145_spill] sm:$0xff] }
 0x51c   : >> { %v4500_v18 = vadd.f32 %v4492_v16, %v4412_v57  ;;  %v4732_v14 = vmul.f32 %v9625_v2, %v9563_v39  ;;  %v4812_v49 = vmul.f32 %v9626_v27, %v9564_v42  ;;  %v4892_v52 = vmul.f32 %v9627_v59, %v8649_v0  ;;  %v9630_v57 = vld [vmem:[#allocation144_spill] sm:$0xff]  ;;  %v9632_v27 = vld [vmem:[#allocation147_spill] sm:$0xff] }
 0x51d   : >> { %v4898_v61 = vadd.f32 %v4890_v32, %v4818_v1  ;;  %v4739_v30 = vadd.f32 %v4731_v6, %v4659_v4  ;;  %v4972_v35 = vmul.f32 %v9628_v24, %v8653_v17  ;;  %v5052_v5 = vmul.f32 %v9629_v56, %v8657_v63  ;;  %v9633_v32 = vld [vmem:[#allocation148_spill] sm:$0xff]  ;;  %v9634_v1 = vld [vmem:[#allocation149_spill] sm:$0xff] }
 0x51e   : >> { %v4580_v46 = vadd.f32 %v4572_v53, %v4500_v18  ;;  %v4413_v16 = vmul.f32 %v9630_v57, %v9569_v55  ;;  %v4493_v2 = vmul.f32 %v9631_v51, %v9571_v48  ;;  %v4573_v62 = vmul.f32 %v9632_v27, %v9572_v25  ;;  %v9635_v53 = vld [vmem:[#allocation150_spill] sm:$0xff]  ;;  %v9636_v57 = vld [vmem:[#allocation151_spill] sm:$0xff] }
 0x51f   : >> { %v4978_v21 = vadd.f32 %v4970_v58, %v4898_v61  ;;  %v4819_v59 = vadd.f32 %v4811_v28, %v4739_v30  ;;  %v4653_v6 = vmul.f32 %v9633_v32, %v9574_v3  ;;  %v4733_v4 = vmul.f32 %v9634_v1, %v8732_v31  ;;  %v9645_v1 = vld [vmem:[#allocation130_spill] sm:$0xff] }
 0x520   : >> { %v4660_v24 = vadd.f32 %v4652_v11, %v4580_v46  ;;  %v4501_v56 = vadd.f32 %v4493_v2, %v4413_v16  ;;  %v4813_v18 = vmul.f32 %v9635_v53, %v8762_v41  ;;  %v4893_v29 = vmul.f32 %v9636_v57, %v8787_v23 }
 0x521   : >> { %v5058_v51 = vadd.f32 %v5050_v34, %v4978_v21  ;;  %v4899_v26 = vadd.f32 %v4891_v44, %v4819_v59  ;;  %v4973_v28 = vmul.f32 %v8612_v43, %v8793_v38  ;;  %v5053_v58 = vmul.f32 %v8622_v47, %v8797_v12  ;;  %v9637_v21 = vld [vmem:[#allocation125_spill] sm:$0xff] }
 0x522   : >> { %v6107_v61 = vpop.eup %6106  ;;  %v4740_v30 = vadd.f32 %v4732_v14, %v4660_v24  ;;  %v4581_v11 = vadd.f32 %v4573_v62, %v4501_v56  ;;  %v4414_v46 = vmul.f32 %v8669_v45, %v9595_v7  ;;  %v4494_v16 = vmul.f32 %v8672_v22, %v9599_v9  ;;  %v9646_v24 = vld [vmem:[#allocation132_spill] sm:$0xff] }
 0x523   : >> { %v5079_v2 = vmul.f32 %v6107_v61, %v5039_v37  ;;  %v5092_v34 = vmul.f32 %v9637_v21, %v5058_v51  ;;  %v4979_v44 = vadd.f32 %v4971_v50, %v4899_v26  ;;  %v4574_v43 = vmul.f32 %v8682_v33, %v9601_v13  ;;  %v9647_v56 = vld [vmem:[#allocation152_spill] sm:$0xff]  ;;  %v9648_v51 = vld [vmem:[#allocation127_spill] sm:$0xff] }
 0x524   : >> { %v4820_v27 = vadd.f32 %v4812_v49, %v4740_v30  ;;  %v4661_v59 = vadd.f32 %v4653_v6, %v4581_v11  ;;  %v4502_v32 = vadd.f32 %v4494_v16, %v4414_v46  ;;  %v4654_v47 = vmul.f32 %v8685_v54, %v9603_v36  ;;  %v9638_v54 = vld [vmem:[#allocation146_spill] sm:$0xff]  ;;  %v9649_v16 = vld [vmem:[#allocation121_spill] sm:$0xff] }
 0x525   : >> { %5089 = vst [vmem:[%s8355_s17 + $0x38] sm:$0xff] %v5079_v2  ;;  %5506 = vst [vmem:[%s8355_s17 + $0x110] sm:$0xff] %v5092_v34  ;;  %v5059_v62 = vadd.f32 %v5051_v15, %v4979_v44  ;;  %v4734_v45 = vmul.f32 %v8690_v60, %v9563_v39  ;;  %v4814_v22 = vmul.f32 %v8697_v40, %v9564_v42  ;;  %v9639_v60 = vld [vmem:[#allocation129_spill] sm:$0xff] }
 0x526   : >> { %v4894_v26 = vmul.f32 %v8702_v19, %v8649_v0  ;;  %v4900_v33 = vadd.f32 %v4892_v52, %v4820_v27  ;;  %v4741_v7 = vadd.f32 %v4733_v4, %v4661_v59  ;;  %v4582_v9 = vadd.f32 %v4574_v43, %v4502_v32  ;;  %v9640_v19 = vld [vmem:[#allocation110_spill] sm:$0xff] }
 0x527   : >> { %v4974_v13 = vmul.f32 %v8708_v10, %v8653_v17  ;;  %v5093_v36 = vmul.f32 %v9638_v54, %v5059_v62  ;;  %v5054_v37 = vmul.f32 %v8713_v8, %v8657_v63  ;;  %v4415_v39 = vmul.f32 %v8724_v20, %v9569_v55  ;;  %v9641_v10 = vld [vmem:[#allocation120_spill] sm:$0xff]  ;;  %v9642_v63 = vld [vmem:[#allocation123_spill] sm:$0xff] }
 0x528   : >> { %v4495_v42 = vmul.f32 %v9639_v60, %v9571_v48  ;;  %v4980_v40 = vadd.f32 %v4972_v35, %v4900_v33  ;;  %v4821_v50 = vadd.f32 %v4813_v18, %v4741_v7  ;;  %v4662_v0 = vadd.f32 %v4654_v47, %v4582_v9  ;;  %v9643_v55 = vld [vmem:[#allocation128_spill] sm:$0xff]  ;;  %v9644_v35 = vld [vmem:[#allocation131_spill] sm:$0xff] }
 0x529   : >> { %v4575_v15 = vmul.f32 %v9640_v19, %v9572_v25  ;;  %5507 = vst [vmem:[%s8355_s17 + $0x118] sm:$0xff] %v5093_v36  ;;  %v4655_v14 = vmul.f32 %v9641_v10, %v9574_v3  ;;  %v4735_v8 = vmul.f32 %v9642_v63, %v8732_v31  ;;  %v4815_v20 = vmul.f32 %v9643_v55, %v8762_v41 }
 0x52a   : >> { %v4503_v17 = vadd.f32 %v4495_v42, %v4415_v39  ;;  %v5060_v49 = vadd.f32 %v5052_v5, %v4980_v40  ;;  %v4901_v48 = vadd.f32 %v4893_v29, %v4821_v50  ;;  %v4742_v52 = vadd.f32 %v4734_v45, %v4662_v0 }
 0x52b   : >> { %v4895_v6 = vmul.f32 %v9644_v35, %v8787_v23  ;;  %v4975_v4 = vmul.f32 %v9645_v1, %v8793_v38  ;;  %v5055_v3 = vmul.f32 %v9646_v24, %v8797_v12 }
 0x52c   : >> { %v4583_v25 = vadd.f32 %v4575_v15, %v4503_v17  ;;  %v5094_v53 = vmul.f32 %v9647_v56, %v5060_v49  ;;  %v4981_v31 = vadd.f32 %v4973_v28, %v4901_v48  ;;  %v4822_v18 = vadd.f32 %v4814_v22, %v4742_v52 }
 0x52e   : >> { %v4663_v41 = vadd.f32 %v4655_v14, %v4583_v25  ;;  %5508 = vst [vmem:[%s8355_s17 + $0x120] sm:$0xff] %v5094_v53  ;;  %v5061_v29 = vadd.f32 %v5053_v58, %v4981_v31  ;;  %v4902_v5 = vadd.f32 %v4894_v26, %v4822_v18 }
 0x530   : >> { %v4743_v57 = vadd.f32 %v4735_v8, %v4663_v41  ;;  %v5095_v23 = vmul.f32 %v9648_v51, %v5061_v29  ;;  %v4982_v30 = vadd.f32 %v4974_v13, %v4902_v5 }
 0x532   : >> { %v4823_v11 = vadd.f32 %v4815_v20, %v4743_v57  ;;  %5509 = vst [vmem:[%s8355_s17 + $0x128] sm:$0xff] %v5095_v23  ;;  %v5062_v38 = vadd.f32 %v5054_v37, %v4982_v30 }
 0x534   : >> { %v4903_v46 = vadd.f32 %v4895_v6, %v4823_v11  ;;  %v5096_v12 = vmul.f32 %v9649_v16, %v5062_v38 }
 0x536   : >> { %v4983_v2 = vadd.f32 %v4975_v4, %v4903_v46  ;;  %5510 = vst [vmem:[%s8355_s17 + $0x130] sm:$0xff] %v5096_v12  ;;  %4152 = sbr.rel (!%p4150_p0) target bundleno = 1143 (0x477), region = 112 }
 0x538   : >> { %v5063_v21 = vadd.f32 %v5055_v3, %v4983_v2 }
 0x53a   : >> { %v5097_v28 = vmul.f32 %v6107_v61, %v5063_v21 }
 0x53c   : >> { %5511 = vst [vmem:[%s8355_s17 + $0x138] sm:$0xff] %v5097_v28 }
 0x53d   : > { %s5531_s9 = sshll.u32 %s6162_s27, 5  ;;  %s5515_s22 = sshll.u32 %s6166_s28, 7 }
 0x53e   : > { %s5123_s0 = sadd.s32 %s5531_s9, %s5515_s22  ;;  %s9651_s5 = scalar_lea.vmem [#allocation3], %s6315_s21 }
 0x53f   : > { %s5142_s10 = sshll.u32 %s9651_s5, 4  ;;  %s5516_s1 = sshll.u32 %s5123_s0, 7  ;;  %s5143_s10 = int_to_ptr.vmem [resolvable:$true] %s5142_s10 }
 0x540   : > { %s5125_s13 = scalar_lea.hbm %s8996_s7, %s5516_s1  ;;  %s6194_s16 = smov 4096  }
 0x541   : > { %5569 = sst [smem:[#allocation6]] (%p6291_p3), %s6194_s16  ;;  %s6195_s2 = smov 8192  }
 0x542   : > { %5570 = sst [smem:[#allocation6 + $0x1]] (%p6291_p3), %s6195_s2  ;;  %s6196_s17 = smov 16  }
 0x543   : > { %5571 = sst [smem:[#allocation6 + $0x2]] (%p6291_p3), %s6196_s17  ;;  %s6197_s27 = smov 256  }
 0x544   : > { %5572 = sst [smem:[#allocation6 + $0x3]] (%p6291_p3), %s6197_s27  ;;  %s6198_s28 = smov [#allocation5]  }
 0x545   : > { %5573 = sst [smem:[#allocation6 + $0x4]] (%p6291_p3), %s6197_s27  ;;  %s6199_s21 = smov 0  }
 0x546   : > { %5574 = sst [smem:[#allocation6 + $0x5]] (%p6291_p3), %s6196_s17 }
 0x547   : > { %5575 = dma.general (%p6291_p3), %s5143_s10, 8192, %s5125_s13, %s5110_s23, %s6198_s28, [#allocation6], %s6199_s21, 0  }
 0x548 PF: > { %p5581_p1 = scmp.ge.s32.totalorder %s6178_s8, 2  ;;  %s5170_s20 = sand.u32 1, %s6150_s24  }
 0x549   : > { %s5171_s9 = scalar_lea.sflag [#allocation4], %s5170_s20 }
 0x54a   : > { %p5578_p2 = pnand %p5581_p1, %p6300_p8 }
 0x54c   : > { %6145 = dma.done.wait (!%p5578_p2), %s5171_s9, 8192  }
 0x54d   : > { %6147 = vsyncadd (!%p5578_p2), %s5171_s9, 4294959104  ;;  %s20_s8 = sadd.s32 1, %s6178_s8   ;;  %s9652_s14 = sld [smem:[#allocation8_spill]] }
 0x54e   : > { %p17_p4 = scmp.ge.s32.totalorder %s20_s8, 6   ;;  %s9653_s24 = smov %s6154_s25 }
 0x54f   : > { %s9654_s25 = smov %s6158_s26  ;;  %s9655_s26 = smov %s6309_s19 }
 0x550   : > { %s9656_s27 = smov %s6170_s29  ;;  %s9657_s28 = smov %s6174_s30 }
 0x551   : > { %s9658_s29 = smov %s9661_s11  ;;  %19 = sbr.rel (!%p17_p4) target bundleno = 10 (0xa), region = 123 }
 0x553   : > { %s9659_s30 = smov %s9652_s14 }
 0x558   :  { %5176 = vsyncpa [#allocation4], 1 }
 0x559   :  { %5178 = vsyncpa [#allocation4 + $0x1], 1 }

</bundles_post_ra>
